<compile_context>
chip_gen: v5e
topology: v5e:2x2
jax: 0.10.0
libtpu: 0.0.40
codegen_flags: <defaults>
</compile_context>

<pallas_src>
import functools

import jax
import jax.numpy as jnp
from jax import lax
from jax.experimental import pallas as pl
from jax.experimental.pallas import tpu as pltpu

EPS = 1e-5
LRELU_SLOPE = 0.2
VMEM_LIMIT = 48 * 1024 * 1024  # explicit scoped-VMEM budget, safe on v5e/v6e/v7x


def _round_up(x, m):
    return ((x + m - 1) // m) * m


def _choose_tile(m, target=512, align=32):
    """Row-tile size: multiple of 32 (bf16 sublane safe), capped at `target`."""
    if m >= target:
        return target
    return _round_up(m, align)


# ----------------------------------------------------------------------------
# Pallas kernels
# ----------------------------------------------------------------------------
def _matmul_affine_act_kernel(x_ref, w_ref, s_ref, b_ref, o_ref, *, slope):
    """o = leaky_relu(scale * (x @ w) + bias) for one row tile."""
    y = jnp.dot(x_ref[...], w_ref[...], preferred_element_type=jnp.float32)
    y = y * s_ref[...] + b_ref[...]
    o_ref[...] = jnp.maximum(y, slope * y)


def matmul_affine_act(x, w, scale, bias, slope=LRELU_SLOPE):
    """x: (M, Cin), w: (Cin, Cout), scale/bias: (Cout,) -> (M, Cout) f32."""
    M, Cin = x.shape
    Cout = w.shape[1]
    TM = _choose_tile(M)
    Mp = _round_up(M, TM)
    if Mp != M:
        x = jnp.pad(x, ((0, Mp - M), (0, 0)))
    s2 = scale.reshape(1, Cout).astype(jnp.float32)
    b2 = bias.reshape(1, Cout).astype(jnp.float32)
    out = pl.pallas_call(
        functools.partial(_matmul_affine_act_kernel, slope=slope),
        out_shape=jax.ShapeDtypeStruct((Mp, Cout), jnp.float32),
        grid_spec=pltpu.PrefetchScalarGridSpec(
            num_scalar_prefetch=0,
            grid=(Mp // TM,),
            in_specs=[
                pl.BlockSpec((TM, Cin), lambda i: (i, 0)),
                pl.BlockSpec((Cin, Cout), lambda i: (0, 0)),
                pl.BlockSpec((1, Cout), lambda i: (0, 0)),
                pl.BlockSpec((1, Cout), lambda i: (0, 0)),
            ],
            out_specs=pl.BlockSpec((TM, Cout), lambda i: (i, 0)),
        ),
        compiler_params=pltpu.CompilerParams(
            dimension_semantics=("parallel",), vmem_limit_bytes=VMEM_LIMIT),
    )(x.astype(jnp.bfloat16), w.astype(jnp.bfloat16), s2, b2)
    return out[:M] if Mp != M else out


def _edge_conv_max_kernel(nbr_ref, pts_ref, wa_ref, wd_ref, s_ref, b_ref,
                          o_ref, *, slope, k, tm):
    """EdgeConv + BN + LeakyReLU + max over k neighbours for one row tile.

    nbr_ref: (TM*k, C)  rows ordered [neighbour j, point r] within the tile
    pts_ref: (TM, C)    center points
    out[r]  = max_j lrelu(scale*(nbr[j,r]@Wa + ctr[r]@Wd) + bias),  Wd = Wb-Wa
    """
    s = s_ref[...]
    b = b_ref[...]
    ctr = jnp.dot(pts_ref[...], wd_ref[...],
                  preferred_element_type=jnp.float32)          # (TM, Cout)
    zc = ctr * s + b                                           # (TM, Cout)
    y = jnp.dot(nbr_ref[...], wa_ref[...],
                preferred_element_type=jnp.float32)            # (TM*k, Cout)
    acc = None
    for j in range(k):                                         # k is small/static
        t = y[j * tm:(j + 1) * tm, :] * s + zc
        t = jnp.maximum(t, slope * t)
        acc = t if acc is None else jnp.maximum(acc, t)
    o_ref[...] = acc


def edge_conv_max(nbr2d, pts, wa, wd, scale, bias, k, tm, slope=LRELU_SLOPE):
    """nbr2d: (Mp*k, C), pts: (Mp, C), wa/wd: (C, Cout) -> (Mp, Cout) f32."""
    Mp, C = pts.shape
    Cout = wa.shape[1]
    s2 = scale.reshape(1, Cout).astype(jnp.float32)
    b2 = bias.reshape(1, Cout).astype(jnp.float32)
    return pl.pallas_call(
        functools.partial(_edge_conv_max_kernel, slope=slope, k=k, tm=tm),
        out_shape=jax.ShapeDtypeStruct((Mp, Cout), jnp.float32),
        grid_spec=pltpu.PrefetchScalarGridSpec(
            num_scalar_prefetch=0,
            grid=(Mp // tm,),
            in_specs=[
                pl.BlockSpec((tm * k, C), lambda i: (i, 0)),
                pl.BlockSpec((tm, C), lambda i: (i, 0)),
                pl.BlockSpec((C, Cout), lambda i: (0, 0)),
                pl.BlockSpec((C, Cout), lambda i: (0, 0)),
                pl.BlockSpec((1, Cout), lambda i: (0, 0)),
                pl.BlockSpec((1, Cout), lambda i: (0, 0)),
            ],
            out_specs=pl.BlockSpec((tm, Cout), lambda i: (i, 0)),
        ),
        compiler_params=pltpu.CompilerParams(
            dimension_semantics=("parallel",), vmem_limit_bytes=VMEM_LIMIT),
    )(nbr2d.astype(jnp.bfloat16), pts.astype(jnp.bfloat16),
      wa.astype(jnp.bfloat16), wd.astype(jnp.bfloat16), s2, b2)


def _pairwise_kernel(q_ref, k_ref, nksq_ref, o_ref):
    """Negative squared pairwise distance for one query tile vs all keys."""
    q = q_ref[0]                               # (TN, C)
    kk = k_ref[0]                              # (N, C)
    inner = lax.dot_general(q, kk, (((1,), (1,)), ((), ())),
                            preferred_element_type=jnp.float32)   # (TN, N)
    qsq = jnp.sum(q * q, axis=1, keepdims=True)                   # (TN, 1)
    o_ref[0] = 2.0 * inner - qsq + nksq_ref[0]                    # + (-|k|^2)


def pairwise_neg_sqdist(p):
    """p: (B, N, C) -> (B, N, N) of -||pi - pj||^2 (query-row tiled)."""
    B, N, C = p.shape
    p = p.astype(jnp.float32)
    TN = 256 if (N > 256 and N % 256 == 0) else N
    nksq = -(jnp.sum(p * p, axis=-1)[:, None, :])  # (B, 1, N)
    return pl.pallas_call(
        _pairwise_kernel,
        out_shape=jax.ShapeDtypeStruct((B, N, N), jnp.float32),
        grid_spec=pltpu.PrefetchScalarGridSpec(
            num_scalar_prefetch=0,
            grid=(B, N // TN),
            in_specs=[
                pl.BlockSpec((1, TN, C), lambda b, i: (b, i, 0)),
                pl.BlockSpec((1, N, C), lambda b, i: (b, 0, 0)),
                pl.BlockSpec((1, 1, N), lambda b, i: (b, 0, 0)),
            ],
            out_specs=pl.BlockSpec((1, TN, N), lambda b, i: (b, i, 0)),
        ),
        compiler_params=pltpu.CompilerParams(
            dimension_semantics=("parallel", "parallel"),
            vmem_limit_bytes=VMEM_LIMIT),
    )(p, p, nksq)


def _mlp_head_kernel(g_ref, w1_ref, s1_ref, b1_ref, w2_ref, s2_ref, b2_ref,
                     w3_ref, b3_ref, o_ref, *, slope):
    """Fused classifier head: lin1+bn6+lrelu -> lin2+bn7+lrelu -> lin3."""
    h = jnp.dot(g_ref[...], w1_ref[...], preferred_element_type=jnp.float32)
    h = h * s1_ref[...] + b1_ref[...]
    h = jnp.maximum(h, slope * h)
    h = jnp.dot(h, w2_ref[...], preferred_element_type=jnp.float32)
    h = h * s2_ref[...] + b2_ref[...]
    h = jnp.maximum(h, slope * h)
    o_ref[...] = jnp.dot(h, w3_ref[...],
                         preferred_element_type=jnp.float32) + b3_ref[...]


def mlp_head(g, w1, s1, b1, w2, s2, b2, w3, b3, slope=LRELU_SLOPE):
    """g: (B, C0) -> (B, C3); single tiny pallas_call (B is a handful of rows)."""
    B, C0 = g.shape
    C1, C2, C3 = w1.shape[1], w2.shape[1], w3.shape[1]
    to2 = lambda v: v.reshape(1, -1).astype(jnp.float32)
    return pl.pallas_call(
        functools.partial(_mlp_head_kernel, slope=slope),
        out_shape=jax.ShapeDtypeStruct((B, C3), jnp.float32),
        grid_spec=pltpu.PrefetchScalarGridSpec(
            num_scalar_prefetch=0,
            grid=(1,),
            in_specs=[
                pl.BlockSpec((B, C0), lambda i: (0, 0)),
                pl.BlockSpec((C0, C1), lambda i: (0, 0)),
                pl.BlockSpec((1, C1), lambda i: (0, 0)),
                pl.BlockSpec((1, C1), lambda i: (0, 0)),
                pl.BlockSpec((C1, C2), lambda i: (0, 0)),
                pl.BlockSpec((1, C2), lambda i: (0, 0)),
                pl.BlockSpec((1, C2), lambda i: (0, 0)),
                pl.BlockSpec((C2, C3), lambda i: (0, 0)),
                pl.BlockSpec((1, C3), lambda i: (0, 0)),
            ],
            out_specs=pl.BlockSpec((B, C3), lambda i: (0, 0)),
        ),
        compiler_params=pltpu.CompilerParams(dimension_semantics=("arbitrary",)),
    )(g.astype(jnp.float32), w1.astype(jnp.float32), to2(s1), to2(b1),
      w2.astype(jnp.float32), to2(s2), to2(b2),
      w3.astype(jnp.float32), to2(b3))


# ----------------------------------------------------------------------------
# JAX glue (knn top-k, neighbour gather, block wrappers)
# ----------------------------------------------------------------------------
def edge_block(p, w, bn_scale, bn_bias, k):
    """One DGCNN EdgeConv block on channels-last points p: (B, N, C)."""
    B, N, C = p.shape
    Cout = w.shape[1]
    wa = w[:C]
    wd = w[C:] - w[:C]                       # ctr coefficient: Wb - Wa

    # kNN: Pallas pairwise (-sqdist) + XLA top_k (largest => nearest).
    # TODO(synk): neighbour selection (top_k) + gather stay in XLA; fusing the
    # gather into the kernel via scalar-prefetched indices is a further win.
    pd = pairwise_neg_sqdist(p)
    idx = lax.top_k(pd, k)[1]                # (B, N, k)

    M = B * N
    TM = _choose_tile(M)
    Mp = _round_up(M, TM)
    ntiles = Mp // TM

    # Flat global indices laid out in (tile, neighbour, row) order so the
    # kernel sees one contiguous (TM*k, C) slab per grid step (no reshapes).
    base = (jnp.arange(B, dtype=idx.dtype) * N)[:, None, None]
    gidx = (idx + base).reshape(M, k)
    if Mp != M:
        gidx = jnp.pad(gidx, ((0, Mp - M), (0, 0)))
    gidx = gidx.reshape(ntiles, TM, k).transpose(0, 2, 1).reshape(Mp * k)

    p_flat = p.reshape(M, C).astype(jnp.bfloat16)
    nbr2d = jnp.take(p_flat, gidx, axis=0)   # (Mp*k, C) bf16, already ordered
    pts = p_flat if Mp == M else jnp.pad(p_flat, ((0, Mp - M), (0, 0)))

    out = edge_conv_max(nbr2d, pts, wa, wd, bn_scale, bn_bias, k, TM)
    return out[:M].reshape(B, N, Cout)


def conv1d_bn_lrelu(p, w, bn_scale, bn_bias):
    """1x1 Conv1d + BN + LeakyReLU on channels-last points (B, N, Cin)."""
    B, N, Cin = p.shape
    y = matmul_affine_act(p.reshape(B * N, Cin), w, bn_scale, bn_bias)
    return y.reshape(B, N, -1)


def _tiny_proj(p2, w, bn):
    """2->2 channel NNML projection: left in plain XLA (MXU would be >98% idle)."""
    scale, bias = bn
    y = p2 @ w
    y = y * scale + bias
    return jnp.maximum(y, LRELU_SLOPE * y)


# ----------------------------------------------------------------------------
# Parameters (deterministic, fresh-module / eval-mode semantics)
# ----------------------------------------------------------------------------
def _bn_affine(c):
    gamma = jnp.ones((c,), jnp.float32)
    beta = jnp.zeros((c,), jnp.float32)
    running_mean = jnp.zeros((c,), jnp.float32)
    running_var = jnp.ones((c,), jnp.float32)
    scale = gamma / jnp.sqrt(running_var + EPS)
    bias = beta - running_mean * scale
    return scale, bias


def init_params(key, emb_dims=64, out_ch=40):
    ks = jax.random.split(key, 12)

    def w(kk, cin, cout):
        return jax.random.normal(kk, (cin, cout), jnp.float32) * 0.1

    return {
        "w0_0": w(ks[0], 2, 2), "bn0_0": _bn_affine(2),
        "w0_1": w(ks[1], 2, 2), "bn0_1": _bn_affine(2),
        "w0_2": w(ks[2], 2, 2), "bn0_2": _bn_affine(2),   # defined but unused (matches PyTorch forward)
        "w1": w(ks[3], 18, 64),   "bn1": _bn_affine(64),
        "w2": w(ks[4], 128, 64),  "bn2": _bn_affine(64),
        "w3": w(ks[5], 128, 128), "bn3": _bn_affine(128),
        "w4": w(ks[6], 256, 256), "bn4": _bn_affine(256),
        "w5": w(ks[7], 512, emb_dims), "bn5": _bn_affine(emb_dims),
        "wl1": w(ks[8], emb_dims * 2, 512), "bn6": _bn_affine(512),
        "wl2": w(ks[9], 512, 256),
        "bl2": jax.random.normal(ks[10], (256,), jnp.float32) * 0.01,
        "bn7": _bn_affine(256),
        "wl3": w(ks[11], 256, out_ch),
        "bl3": jnp.zeros((out_ch,), jnp.float32),
    }


# ----------------------------------------------------------------------------
# Forward pass
# ----------------------------------------------------------------------------
@functools.partial(jax.jit, static_argnames=("k",))
def point_manifold_nnml_forward(x, params, k):
    """x: (B, 3, N) as in PyTorch (NCW). Returns (B, output_channels)."""
    B, _, N = x.shape
    p = jnp.transpose(x, (0, 2, 1))  # (B, N, 3) channels-last

    c0, c1, c2 = p[..., 0:1], p[..., 1:2], p[..., 2:3]

    # NNML 2D projections (the original forward reuses conv0_1 for x_2d_x).
    x_2d_z = _tiny_proj(p[..., :2], params["w0_0"], params["bn0_0"]) * c2
    x_2d_y = _tiny_proj(jnp.concatenate([c0, c2], -1),
                        params["w0_1"], params["bn0_1"]) * c1
    x_2d_x = _tiny_proj(p[..., 1:3], params["w0_1"], params["bn0_1"]) * c0

    p9 = jnp.concatenate([p, x_2d_x, x_2d_y, x_2d_z], axis=-1)  # (B, N, 9)

    f1 = edge_block(p9, params["w1"], *params["bn1"], k=k)   # (B, N, 64)
    f2 = edge_block(f1, params["w2"], *params["bn2"], k=k)   # (B, N, 64)
    f3 = edge_block(f2, params["w3"], *params["bn3"], k=k)   # (B, N, 128)
    f4 = edge_block(f3, params["w4"], *params["bn4"], k=k)   # (B, N, 256)

    cat = jnp.concatenate([f1, f2, f3, f4], axis=-1)          # (B, N, 512)
    emb = conv1d_bn_lrelu(cat, params["w5"], *params["bn5"])  # (B, N, emb_dims)

    g_max = jnp.max(emb, axis=1)    # adaptive_max_pool1d(.,1)
    g_avg = jnp.mean(emb, axis=1)   # adaptive_avg_pool1d(.,1)
    g = jnp.concatenate([g_max, g_avg], axis=-1)              # (B, 2*emb_dims)

    # Fused head: linear1(no bias)+bn6+lrelu -> linear2(bias folded into bn7
    # affine)+lrelu -> linear3(bias).  Dropout is identity (eval mode).
    s7, b7 = params["bn7"]
    eff_b7 = s7 * params["bl2"] + b7
    out = mlp_head(g, params["wl1"], *params["bn6"],
                   params["wl2"], s7, eff_b7,
                   params["wl3"], params["bl3"])
    return out


if __name__ == "__main__":
    B, N, K_NN, EMB_DIMS, OUT_CH = 2, 32, 4, 64, 40
    key = jax.random.PRNGKey(0)
    k_x, k_p = jax.random.split(key)
    x = jax.random.normal(k_x, (B, 3, N), jnp.float32)   # point cloud, NCW like PyTorch
    params = init_params(k_p, emb_dims=EMB_DIMS, out_ch=OUT_CH)

    out = point_manifold_nnml_forward(x, params, k=K_NN)
    out = jax.block_until_ready(out)
    assert out.shape == (B, OUT_CH), out.shape
    assert jnp.all(jnp.isfinite(out))
    print("KERNEL_OK")
</pallas_src>

<mosaic_0001>
module attributes {stable_mosaic.version = 11 : i64} {
  func.func @_pairwise_kernel(%arg0: i32, %arg1: i32, %arg2: memref<1x32x9xf32, #tpu.memory_space<vmem>>, %arg3: memref<1x32x9xf32, #tpu.memory_space<vmem>>, %arg4: memref<1x1x32xf32, #tpu.memory_space<vmem>>, %arg5: memref<1x32x32xf32, #tpu.memory_space<vmem>>) attributes {dimension_semantics = [#tpu.dimension_semantics<parallel>, #tpu.dimension_semantics<parallel>], iteration_bounds = array<i64: 2, 1>, scalar_prefetch = 0 : i64, scratch_operands = 0 : i64, tpu.core_type = #tpu.core_type<tc>, window_params = [{transform_indices = @transform_0, window_bounds = array<i64: 1, 32, 9>}, {transform_indices = @transform_1, window_bounds = array<i64: 1, 32, 9>}, {transform_indices = @transform_2, window_bounds = array<i64: 1, 1, 32>}, {transform_indices = @transform_3, window_bounds = array<i64: 1, 32, 32>}]} {
    %c0 = arith.constant 0 : index
    %c0_0 = arith.constant 0 : index
    %c0_1 = arith.constant 0 : index
    %0 = vector.load %arg2[%c0, %c0_0, %c0_1] : memref<1x32x9xf32, #tpu.memory_space<vmem>>, vector<1x32x9xf32>
    %1 = vector.shape_cast %0 : vector<1x32x9xf32> to vector<32x9xf32>
    %c0_2 = arith.constant 0 : index
    %c0_3 = arith.constant 0 : index
    %c0_4 = arith.constant 0 : index
    %2 = vector.load %arg3[%c0_2, %c0_3, %c0_4] : memref<1x32x9xf32, #tpu.memory_space<vmem>>, vector<1x32x9xf32>
    %3 = vector.shape_cast %2 : vector<1x32x9xf32> to vector<32x9xf32>
    %cst = arith.constant dense<0.000000e+00> : vector<32x32xf32>
    %4 = tpu.matmul %1, %3, %cst {dimension_numbers = #tpu.dot_dimension_numbers<[1], [1], [0], [0], [0, 0, 1, 0], [], []>} : vector<32x9xf32>, vector<32x9xf32>, vector<32x32xf32> -> vector<32x32xf32>
    %5 = arith.mulf %1, %1 : vector<32x9xf32>
    %cst_5 = arith.constant dense<0.000000e+00> : vector<32xf32>
    %6 = vector.multi_reduction <add>, %5, %cst_5 [1] : vector<32x9xf32> to vector<32xf32>
    %7 = vector.shape_cast %6 : vector<32xf32> to vector<32x1xf32>
    %cst_6 = arith.constant 2.000000e+00 : f32
    %8 = vector.broadcast %cst_6 : f32 to vector<32x32xf32>
    %9 = arith.mulf %8, %4 : vector<32x32xf32>
    %10 = vector.broadcast %7 : vector<32x1xf32> to vector<32x32xf32>
    %11 = arith.subf %9, %10 : vector<32x32xf32>
    %c0_7 = arith.constant 0 : index
    %c0_8 = arith.constant 0 : index
    %c0_9 = arith.constant 0 : index
    %12 = vector.load %arg4[%c0_7, %c0_8, %c0_9] : memref<1x1x32xf32, #tpu.memory_space<vmem>>, vector<1x1x32xf32>
    %13 = vector.shape_cast %12 : vector<1x1x32xf32> to vector<1x32xf32>
    %14 = vector.broadcast %13 : vector<1x32xf32> to vector<32x32xf32>
    %15 = arith.addf %11, %14 : vector<32x32xf32>
    %c0_10 = arith.constant 0 : index
    %c0_11 = arith.constant 0 : index
    %c0_12 = arith.constant 0 : index
    %16 = vector.load %arg5[%c0_10, %c0_11, %c0_12] : memref<1x32x32xf32, #tpu.memory_space<vmem>>, vector<1x32x32xf32>
    %17 = vector.shape_cast %16 : vector<1x32x32xf32> to vector<32x32xf32>
    %18 = vector.shape_cast %15 : vector<32x32xf32> to vector<1x32x32xf32>
    tpu.vector_store %arg5[%c0_10, %c0_11, %c0_12], %18 {strides = array<i32>} : memref<1x32x32xf32, #tpu.memory_space<vmem>>, vector<1x32x32xf32>,
    return
  }
  func.func @transform_0(%arg0: i32, %arg1: i32) -> (i32, i32, i32) {
    %c0_i32 = arith.constant 0 : i32
    %c0_i32_0 = arith.constant 0 : i32
    return %arg0, %arg1, %c0_i32 : i32, i32, i32
  }
  func.func @transform_1(%arg0: i32, %arg1: i32) -> (i32, i32, i32) {
    %c0_i32 = arith.constant 0 : i32
    %c0_i32_0 = arith.constant 0 : i32
    %c0_i32_1 = arith.constant 0 : i32
    return %arg0, %c0_i32, %c0_i32_0 : i32, i32, i32
  }
  func.func @transform_2(%arg0: i32, %arg1: i32) -> (i32, i32, i32) {
    %c0_i32 = arith.constant 0 : i32
    %c0_i32_0 = arith.constant 0 : i32
    %c0_i32_1 = arith.constant 0 : i32
    return %arg0, %c0_i32, %c0_i32_0 : i32, i32, i32
  }
  func.func @transform_3(%arg0: i32, %arg1: i32) -> (i32, i32, i32) {
    %c0_i32 = arith.constant 0 : i32
    %c0_i32_0 = arith.constant 0 : i32
    return %arg0, %arg1, %c0_i32 : i32, i32, i32
  }
}

module attributes {stable_mosaic.version = 11 : i64} {
  func.func @_edge_conv_max_kernel(%arg0: i32, %arg1: memref<256x9xbf16, #tpu.memory_space<vmem>>, %arg2: memref<64x9xbf16, #tpu.memory_space<vmem>>, %arg3: memref<9x64xbf16, #tpu.memory_space<vmem>>, %arg4: memref<9x64xbf16, #tpu.memory_space<vmem>>, %arg5: memref<1x64xf32, #tpu.memory_space<vmem>>, %arg6: memref<1x64xf32, #tpu.memory_space<vmem>>, %arg7: memref<64x64xf32, #tpu.memory_space<vmem>>) attributes {dimension_semantics = [#tpu.dimension_semantics<parallel>], iteration_bounds = array<i64: 1>, scalar_prefetch = 0 : i64, scratch_operands = 0 : i64, tpu.core_type = #tpu.core_type<tc>, window_params = [{transform_indices = @transform_0, window_bounds = array<i64: 256, 9>}, {transform_indices = @transform_1, window_bounds = array<i64: 64, 9>}, {pipeline_mode = #tpu.pipeline_mode<synchronous>, transform_indices = @transform_2, window_bounds = array<i64: 9, 64>}, {pipeline_mode = #tpu.pipeline_mode<synchronous>, transform_indices = @transform_3, window_bounds = array<i64: 9, 64>}, {pipeline_mode = #tpu.pipeline_mode<synchronous>, transform_indices = @transform_4, window_bounds = array<i64: 1, 64>}, {pipeline_mode = #tpu.pipeline_mode<synchronous>, transform_indices = @transform_5, window_bounds = array<i64: 1, 64>}, {transform_indices = @transform_6, window_bounds = array<i64: 64, 64>}]} {
    %c0 = arith.constant 0 : index
    %c0_0 = arith.constant 0 : index
    %0 = vector.load %arg5[%c0, %c0_0] : memref<1x64xf32, #tpu.memory_space<vmem>>, vector<1x64xf32>
    %c0_1 = arith.constant 0 : index
    %c0_2 = arith.constant 0 : index
    %1 = vector.load %arg6[%c0_1, %c0_2] : memref<1x64xf32, #tpu.memory_space<vmem>>, vector<1x64xf32>
    %c0_3 = arith.constant 0 : index
    %c0_4 = arith.constant 0 : index
    %2 = vector.load %arg2[%c0_3, %c0_4] : memref<64x9xbf16, #tpu.memory_space<vmem>>, vector<64x9xbf16>
    %c0_5 = arith.constant 0 : index
    %c0_6 = arith.constant 0 : index
    %3 = vector.load %arg4[%c0_5, %c0_6] : memref<9x64xbf16, #tpu.memory_space<vmem>>, vector<9x64xbf16>
    %cst = arith.constant dense<0.000000e+00> : vector<64x64xf32>
    %4 = tpu.matmul %2, %3, %cst {dimension_numbers = #tpu.dot_dimension_numbers<[1], [0], [0], [1], [0, 0, 1, 1], [], []>} : vector<64x9xbf16>, vector<9x64xbf16>, vector<64x64xf32> -> vector<64x64xf32>
    %5 = vector.broadcast %0 : vector<1x64xf32> to vector<64x64xf32>
    %6 = arith.mulf %4, %5 : vector<64x64xf32>
    %7 = vector.broadcast %1 : vector<1x64xf32> to vector<64x64xf32>
    %8 = arith.addf %6, %7 : vector<64x64xf32>
    %c0_7 = arith.constant 0 : index
    %c0_8 = arith.constant 0 : index
    %9 = vector.load %arg1[%c0_7, %c0_8] : memref<256x9xbf16, #tpu.memory_space<vmem>>, vector<256x9xbf16>
    %c0_9 = arith.constant 0 : index
    %c0_10 = arith.constant 0 : index
    %10 = vector.load %arg3[%c0_9, %c0_10] : memref<9x64xbf16, #tpu.memory_space<vmem>>, vector<9x64xbf16>
    %cst_11 = arith.constant dense<0.000000e+00> : vector<256x64xf32>
    %11 = tpu.matmul %9, %10, %cst_11 {dimension_numbers = #tpu.dot_dimension_numbers<[1], [0], [0], [1], [0, 0, 1, 1], [], []>} : vector<256x9xbf16>, vector<9x64xbf16>, vector<256x64xf32> -> vector<256x64xf32>
    %12 = vector.extract_strided_slice %11 {offsets = [0, 0], sizes = [64, 64], strides = [1, 1]} : vector<256x64xf32> to vector<64x64xf32>
    %13 = vector.broadcast %0 : vector<1x64xf32> to vector<64x64xf32>
    %14 = arith.mulf %12, %13 : vector<64x64xf32>
    %15 = arith.addf %14, %8 : vector<64x64xf32>
    %cst_12 = arith.constant 2.000000e-01 : f32
    %16 = vector.broadcast %cst_12 : f32 to vector<64x64xf32>
    %17 = arith.mulf %16, %15 : vector<64x64xf32>
    %18 = arith.maximumf %15, %17 : vector<64x64xf32>
    %19 = vector.extract_strided_slice %11 {offsets = [64, 0], sizes = [64, 64], strides = [1, 1]} : vector<256x64xf32> to vector<64x64xf32>
    %20 = vector.broadcast %0 : vector<1x64xf32> to vector<64x64xf32>
    %21 = arith.mulf %19, %20 : vector<64x64xf32>
    %22 = arith.addf %21, %8 : vector<64x64xf32>
    %cst_13 = arith.constant 2.000000e-01 : f32
    %23 = vector.broadcast %cst_13 : f32 to vector<64x64xf32>
    %24 = arith.mulf %23, %22 : vector<64x64xf32>
    %25 = arith.maximumf %22, %24 : vector<64x64xf32>
    %26 = arith.maximumf %18, %25 : vector<64x64xf32>
    %27 = vector.extract_strided_slice %11 {offsets = [128, 0], sizes = [64, 64], strides = [1, 1]} : vector<256x64xf32> to vector<64x64xf32>
    %28 = vector.broadcast %0 : vector<1x64xf32> to vector<64x64xf32>
    %29 = arith.mulf %27, %28 : vector<64x64xf32>
    %30 = arith.addf %29, %8 : vector<64x64xf32>
    %cst_14 = arith.constant 2.000000e-01 : f32
    %31 = vector.broadcast %cst_14 : f32 to vector<64x64xf32>
    %32 = arith.mulf %31, %30 : vector<64x64xf32>
    %33 = arith.maximumf %30, %32 : vector<64x64xf32>
    %34 = arith.maximumf %26, %33 : vector<64x64xf32>
    %35 = vector.extract_strided_slice %11 {offsets = [192, 0], sizes = [64, 64], strides = [1, 1]} : vector<256x64xf32> to vector<64x64xf32>
    %36 = vector.broadcast %0 : vector<1x64xf32> to vector<64x64xf32>
    %37 = arith.mulf %35, %36 : vector<64x64xf32>
    %38 = arith.addf %37, %8 : vector<64x64xf32>
    %cst_15 = arith.constant 2.000000e-01 : f32
    %39 = vector.broadcast %cst_15 : f32 to vector<64x64xf32>
    %40 = arith.mulf %39, %38 : vector<64x64xf32>
    %41 = arith.maximumf %38, %40 : vector<64x64xf32>
    %42 = arith.maximumf %34, %41 : vector<64x64xf32>
    %c0_16 = arith.constant 0 : index
    %c0_17 = arith.constant 0 : index
    %43 = vector.load %arg7[%c0_16, %c0_17] : memref<64x64xf32, #tpu.memory_space<vmem>>, vector<64x64xf32>
    tpu.vector_store %arg7[%c0_16, %c0_17], %42 {strides = array<i32>} : memref<64x64xf32, #tpu.memory_space<vmem>>, vector<64x64xf32>,
    return
  }
  func.func @transform_0(%arg0: i32) -> (i32, i32) {
    %c0_i32 = arith.constant 0 : i32
    %c0_i32_0 = arith.constant 0 : i32
    return %arg0, %c0_i32 : i32, i32
  }
  func.func @transform_1(%arg0: i32) -> (i32, i32) {
    %c0_i32 = arith.constant 0 : i32
    %c0_i32_0 = arith.constant 0 : i32
    return %arg0, %c0_i32 : i32, i32
  }
  func.func @transform_2(%arg0: i32) -> (i32, i32) {
    %c0_i32 = arith.constant 0 : i32
    %c0_i32_0 = arith.constant 0 : i32
    %c0_i32_1 = arith.constant 0 : i32
    return %c0_i32, %c0_i32_0 : i32, i32
  }
  func.func @transform_3(%arg0: i32) -> (i32, i32) {
    %c0_i32 = arith.constant 0 : i32
    %c0_i32_0 = arith.constant 0 : i32
    %c0_i32_1 = arith.constant 0 : i32
    return %c0_i32, %c0_i32_0 : i32, i32
  }
  func.func @transform_4(%arg0: i32) -> (i32, i32) {
    %c0_i32 = arith.constant 0 : i32
    %c0_i32_0 = arith.constant 0 : i32
    %c0_i32_1 = arith.constant 0 : i32
    return %c0_i32, %c0_i32_0 : i32, i32
  }
  func.func @transform_5(%arg0: i32) -> (i32, i32) {
    %c0_i32 = arith.constant 0 : i32
    %c0_i32_0 = arith.constant 0 : i32
    %c0_i32_1 = arith.constant 0 : i32
    return %c0_i32, %c0_i32_0 : i32, i32
  }
  func.func @transform_6(%arg0: i32) -> (i32, i32) {
    %c0_i32 = arith.constant 0 : i32
    %c0_i32_0 = arith.constant 0 : i32
    return %arg0, %c0_i32 : i32, i32
  }
}

module attributes {stable_mosaic.version = 11 : i64} {
  func.func @_pairwise_kernel(%arg0: i32, %arg1: i32, %arg2: memref<1x32x64xf32, #tpu.memory_space<vmem>>, %arg3: memref<1x32x64xf32, #tpu.memory_space<vmem>>, %arg4: memref<1x1x32xf32, #tpu.memory_space<vmem>>, %arg5: memref<1x32x32xf32, #tpu.memory_space<vmem>>) attributes {dimension_semantics = [#tpu.dimension_semantics<parallel>, #tpu.dimension_semantics<parallel>], iteration_bounds = array<i64: 2, 1>, scalar_prefetch = 0 : i64, scratch_operands = 0 : i64, tpu.core_type = #tpu.core_type<tc>, window_params = [{transform_indices = @transform_0, window_bounds = array<i64: 1, 32, 64>}, {transform_indices = @transform_1, window_bounds = array<i64: 1, 32, 64>}, {transform_indices = @transform_2, window_bounds = array<i64: 1, 1, 32>}, {transform_indices = @transform_3, window_bounds = array<i64: 1, 32, 32>}]} {
    %c0 = arith.constant 0 : index
    %c0_0 = arith.constant 0 : index
    %c0_1 = arith.constant 0 : index
    %0 = vector.load %arg2[%c0, %c0_0, %c0_1] : memref<1x32x64xf32, #tpu.memory_space<vmem>>, vector<1x32x64xf32>
    %1 = vector.shape_cast %0 : vector<1x32x64xf32> to vector<32x64xf32>
    %c0_2 = arith.constant 0 : index
    %c0_3 = arith.constant 0 : index
    %c0_4 = arith.constant 0 : index
    %2 = vector.load %arg3[%c0_2, %c0_3, %c0_4] : memref<1x32x64xf32, #tpu.memory_space<vmem>>, vector<1x32x64xf32>
    %3 = vector.shape_cast %2 : vector<1x32x64xf32> to vector<32x64xf32>
    %cst = arith.constant dense<0.000000e+00> : vector<32x32xf32>
    %4 = tpu.matmul %1, %3, %cst {dimension_numbers = #tpu.dot_dimension_numbers<[1], [1], [0], [0], [0, 0, 1, 0], [], []>} : vector<32x64xf32>, vector<32x64xf32>, vector<32x32xf32> -> vector<32x32xf32>
    %5 = arith.mulf %1, %1 : vector<32x64xf32>
    %cst_5 = arith.constant dense<0.000000e+00> : vector<32xf32>
    %6 = vector.multi_reduction <add>, %5, %cst_5 [1] : vector<32x64xf32> to vector<32xf32>
    %7 = vector.shape_cast %6 : vector<32xf32> to vector<32x1xf32>
    %cst_6 = arith.constant 2.000000e+00 : f32
    %8 = vector.broadcast %cst_6 : f32 to vector<32x32xf32>
    %9 = arith.mulf %8, %4 : vector<32x32xf32>
    %10 = vector.broadcast %7 : vector<32x1xf32> to vector<32x32xf32>
    %11 = arith.subf %9, %10 : vector<32x32xf32>
    %c0_7 = arith.constant 0 : index
    %c0_8 = arith.constant 0 : index
    %c0_9 = arith.constant 0 : index
    %12 = vector.load %arg4[%c0_7, %c0_8, %c0_9] : memref<1x1x32xf32, #tpu.memory_space<vmem>>, vector<1x1x32xf32>
    %13 = vector.shape_cast %12 : vector<1x1x32xf32> to vector<1x32xf32>
    %14 = vector.broadcast %13 : vector<1x32xf32> to vector<32x32xf32>
    %15 = arith.addf %11, %14 : vector<32x32xf32>
    %c0_10 = arith.constant 0 : index
    %c0_11 = arith.constant 0 : index
    %c0_12 = arith.constant 0 : index
    %16 = vector.load %arg5[%c0_10, %c0_11, %c0_12] : memref<1x32x32xf32, #tpu.memory_space<vmem>>, vector<1x32x32xf32>
    %17 = vector.shape_cast %16 : vector<1x32x32xf32> to vector<32x32xf32>
    %18 = vector.shape_cast %15 : vector<32x32xf32> to vector<1x32x32xf32>
    tpu.vector_store %arg5[%c0_10, %c0_11, %c0_12], %18 {strides = array<i32>} : memref<1x32x32xf32, #tpu.memory_space<vmem>>, vector<1x32x32xf32>,
    return
  }
  func.func @transform_0(%arg0: i32, %arg1: i32) -> (i32, i32, i32) {
    %c0_i32 = arith.constant 0 : i32
    %c0_i32_0 = arith.constant 0 : i32
    return %arg0, %arg1, %c0_i32 : i32, i32, i32
  }
  func.func @transform_1(%arg0: i32, %arg1: i32) -> (i32, i32, i32) {
    %c0_i32 = arith.constant 0 : i32
    %c0_i32_0 = arith.constant 0 : i32
    %c0_i32_1 = arith.constant 0 : i32
    return %arg0, %c0_i32, %c0_i32_0 : i32, i32, i32
  }
  func.func @transform_2(%arg0: i32, %arg1: i32) -> (i32, i32, i32) {
    %c0_i32 = arith.constant 0 : i32
    %c0_i32_0 = arith.constant 0 : i32
    %c0_i32_1 = arith.constant 0 : i32
    return %arg0, %c0_i32, %c0_i32_0 : i32, i32, i32
  }
  func.func @transform_3(%arg0: i32, %arg1: i32) -> (i32, i32, i32) {
    %c0_i32 = arith.constant 0 : i32
    %c0_i32_0 = arith.constant 0 : i32
    return %arg0, %arg1, %c0_i32 : i32, i32, i32
  }
}

module attributes {stable_mosaic.version = 11 : i64} {
  func.func @_edge_conv_max_kernel(%arg0: i32, %arg1: memref<256x64xbf16, #tpu.memory_space<vmem>>, %arg2: memref<64x64xbf16, #tpu.memory_space<vmem>>, %arg3: memref<64x64xbf16, #tpu.memory_space<vmem>>, %arg4: memref<64x64xbf16, #tpu.memory_space<vmem>>, %arg5: memref<1x64xf32, #tpu.memory_space<vmem>>, %arg6: memref<1x64xf32, #tpu.memory_space<vmem>>, %arg7: memref<64x64xf32, #tpu.memory_space<vmem>>) attributes {dimension_semantics = [#tpu.dimension_semantics<parallel>], iteration_bounds = array<i64: 1>, scalar_prefetch = 0 : i64, scratch_operands = 0 : i64, tpu.core_type = #tpu.core_type<tc>, window_params = [{transform_indices = @transform_0, window_bounds = array<i64: 256, 64>}, {transform_indices = @transform_1, window_bounds = array<i64: 64, 64>}, {pipeline_mode = #tpu.pipeline_mode<synchronous>, transform_indices = @transform_2, window_bounds = array<i64: 64, 64>}, {pipeline_mode = #tpu.pipeline_mode<synchronous>, transform_indices = @transform_3, window_bounds = array<i64: 64, 64>}, {pipeline_mode = #tpu.pipeline_mode<synchronous>, transform_indices = @transform_4, window_bounds = array<i64: 1, 64>}, {pipeline_mode = #tpu.pipeline_mode<synchronous>, transform_indices = @transform_5, window_bounds = array<i64: 1, 64>}, {transform_indices = @transform_6, window_bounds = array<i64: 64, 64>}]} {
    %c0 = arith.constant 0 : index
    %c0_0 = arith.constant 0 : index
    %0 = vector.load %arg5[%c0, %c0_0] : memref<1x64xf32, #tpu.memory_space<vmem>>, vector<1x64xf32>
    %c0_1 = arith.constant 0 : index
    %c0_2 = arith.constant 0 : index
    %1 = vector.load %arg6[%c0_1, %c0_2] : memref<1x64xf32, #tpu.memory_space<vmem>>, vector<1x64xf32>
    %c0_3 = arith.constant 0 : index
    %c0_4 = arith.constant 0 : index
    %2 = vector.load %arg2[%c0_3, %c0_4] : memref<64x64xbf16, #tpu.memory_space<vmem>>, vector<64x64xbf16>
    %c0_5 = arith.constant 0 : index
    %c0_6 = arith.constant 0 : index
    %3 = vector.load %arg4[%c0_5, %c0_6] : memref<64x64xbf16, #tpu.memory_space<vmem>>, vector<64x64xbf16>
    %cst = arith.constant dense<0.000000e+00> : vector<64x64xf32>
    %4 = tpu.matmul %2, %3, %cst {dimension_numbers = #tpu.dot_dimension_numbers<[1], [0], [0], [1], [0, 0, 1, 1], [], []>} : vector<64x64xbf16>, vector<64x64xbf16>, vector<64x64xf32> -> vector<64x64xf32>
    %5 = vector.broadcast %0 : vector<1x64xf32> to vector<64x64xf32>
    %6 = arith.mulf %4, %5 : vector<64x64xf32>
    %7 = vector.broadcast %1 : vector<1x64xf32> to vector<64x64xf32>
    %8 = arith.addf %6, %7 : vector<64x64xf32>
    %c0_7 = arith.constant 0 : index
    %c0_8 = arith.constant 0 : index
    %9 = vector.load %arg1[%c0_7, %c0_8] : memref<256x64xbf16, #tpu.memory_space<vmem>>, vector<256x64xbf16>
    %c0_9 = arith.constant 0 : index
    %c0_10 = arith.constant 0 : index
    %10 = vector.load %arg3[%c0_9, %c0_10] : memref<64x64xbf16, #tpu.memory_space<vmem>>, vector<64x64xbf16>
    %cst_11 = arith.constant dense<0.000000e+00> : vector<256x64xf32>
    %11 = tpu.matmul %9, %10, %cst_11 {dimension_numbers = #tpu.dot_dimension_numbers<[1], [0], [0], [1], [0, 0, 1, 1], [], []>} : vector<256x64xbf16>, vector<64x64xbf16>, vector<256x64xf32> -> vector<256x64xf32>
    %12 = vector.extract_strided_slice %11 {offsets = [0, 0], sizes = [64, 64], strides = [1, 1]} : vector<256x64xf32> to vector<64x64xf32>
    %13 = vector.broadcast %0 : vector<1x64xf32> to vector<64x64xf32>
    %14 = arith.mulf %12, %13 : vector<64x64xf32>
    %15 = arith.addf %14, %8 : vector<64x64xf32>
    %cst_12 = arith.constant 2.000000e-01 : f32
    %16 = vector.broadcast %cst_12 : f32 to vector<64x64xf32>
    %17 = arith.mulf %16, %15 : vector<64x64xf32>
    %18 = arith.maximumf %15, %17 : vector<64x64xf32>
    %19 = vector.extract_strided_slice %11 {offsets = [64, 0], sizes = [64, 64], strides = [1, 1]} : vector<256x64xf32> to vector<64x64xf32>
    %20 = vector.broadcast %0 : vector<1x64xf32> to vector<64x64xf32>
    %21 = arith.mulf %19, %20 : vector<64x64xf32>
    %22 = arith.addf %21, %8 : vector<64x64xf32>
    %cst_13 = arith.constant 2.000000e-01 : f32
    %23 = vector.broadcast %cst_13 : f32 to vector<64x64xf32>
    %24 = arith.mulf %23, %22 : vector<64x64xf32>
    %25 = arith.maximumf %22, %24 : vector<64x64xf32>
    %26 = arith.maximumf %18, %25 : vector<64x64xf32>
    %27 = vector.extract_strided_slice %11 {offsets = [128, 0], sizes = [64, 64], strides = [1, 1]} : vector<256x64xf32> to vector<64x64xf32>
    %28 = vector.broadcast %0 : vector<1x64xf32> to vector<64x64xf32>
    %29 = arith.mulf %27, %28 : vector<64x64xf32>
    %30 = arith.addf %29, %8 : vector<64x64xf32>
    %cst_14 = arith.constant 2.000000e-01 : f32
    %31 = vector.broadcast %cst_14 : f32 to vector<64x64xf32>
    %32 = arith.mulf %31, %30 : vector<64x64xf32>
    %33 = arith.maximumf %30, %32 : vector<64x64xf32>
    %34 = arith.maximumf %26, %33 : vector<64x64xf32>
    %35 = vector.extract_strided_slice %11 {offsets = [192, 0], sizes = [64, 64], strides = [1, 1]} : vector<256x64xf32> to vector<64x64xf32>
    %36 = vector.broadcast %0 : vector<1x64xf32> to vector<64x64xf32>
    %37 = arith.mulf %35, %36 : vector<64x64xf32>
    %38 = arith.addf %37, %8 : vector<64x64xf32>
    %cst_15 = arith.constant 2.000000e-01 : f32
    %39 = vector.broadcast %cst_15 : f32 to vector<64x64xf32>
    %40 = arith.mulf %39, %38 : vector<64x64xf32>
    %41 = arith.maximumf %38, %40 : vector<64x64xf32>
    %42 = arith.maximumf %34, %41 : vector<64x64xf32>
    %c0_16 = arith.constant 0 : index
    %c0_17 = arith.constant 0 : index
    %43 = vector.load %arg7[%c0_16, %c0_17] : memref<64x64xf32, #tpu.memory_space<vmem>>, vector<64x64xf32>
    tpu.vector_store %arg7[%c0_16, %c0_17], %42 {strides = array<i32>} : memref<64x64xf32, #tpu.memory_space<vmem>>, vector<64x64xf32>,
    return
  }
  func.func @transform_0(%arg0: i32) -> (i32, i32) {
    %c0_i32 = arith.constant 0 : i32
    %c0_i32_0 = arith.constant 0 : i32
    return %arg0, %c0_i32 : i32, i32
  }
  func.func @transform_1(%arg0: i32) -> (i32, i32) {
    %c0_i32 = arith.constant 0 : i32
    %c0_i32_0 = arith.constant 0 : i32
    return %arg0, %c0_i32 : i32, i32
  }
  func.func @transform_2(%arg0: i32) -> (i32, i32) {
    %c0_i32 = arith.constant 0 : i32
    %c0_i32_0 = arith.constant 0 : i32
    %c0_i32_1 = arith.constant 0 : i32
    return %c0_i32, %c0_i32_0 : i32, i32
  }
  func.func @transform_3(%arg0: i32) -> (i32, i32) {
    %c0_i32 = arith.constant 0 : i32
    %c0_i32_0 = arith.constant 0 : i32
    %c0_i32_1 = arith.constant 0 : i32
    return %c0_i32, %c0_i32_0 : i32, i32
  }
  func.func @transform_4(%arg0: i32) -> (i32, i32) {
    %c0_i32 = arith.constant 0 : i32
    %c0_i32_0 = arith.constant 0 : i32
    %c0_i32_1 = arith.constant 0 : i32
    return %c0_i32, %c0_i32_0 : i32, i32
  }
  func.func @transform_5(%arg0: i32) -> (i32, i32) {
    %c0_i32 = arith.constant 0 : i32
    %c0_i32_0 = arith.constant 0 : i32
    %c0_i32_1 = arith.constant 0 : i32
    return %c0_i32, %c0_i32_0 : i32, i32
  }
  func.func @transform_6(%arg0: i32) -> (i32, i32) {
    %c0_i32 = arith.constant 0 : i32
    %c0_i32_0 = arith.constant 0 : i32
    return %arg0, %c0_i32 : i32, i32
  }
}

module attributes {stable_mosaic.version = 11 : i64} {
  func.func @_edge_conv_max_kernel(%arg0: i32, %arg1: memref<256x64xbf16, #tpu.memory_space<vmem>>, %arg2: memref<64x64xbf16, #tpu.memory_space<vmem>>, %arg3: memref<64x128xbf16, #tpu.memory_space<vmem>>, %arg4: memref<64x128xbf16, #tpu.memory_space<vmem>>, %arg5: memref<1x128xf32, #tpu.memory_space<vmem>>, %arg6: memref<1x128xf32, #tpu.memory_space<vmem>>, %arg7: memref<64x128xf32, #tpu.memory_space<vmem>>) attributes {dimension_semantics = [#tpu.dimension_semantics<parallel>], iteration_bounds = array<i64: 1>, scalar_prefetch = 0 : i64, scratch_operands = 0 : i64, tpu.core_type = #tpu.core_type<tc>, window_params = [{transform_indices = @transform_0, window_bounds = array<i64: 256, 64>}, {transform_indices = @transform_1, window_bounds = array<i64: 64, 64>}, {pipeline_mode = #tpu.pipeline_mode<synchronous>, transform_indices = @transform_2, window_bounds = array<i64: 64, 128>}, {pipeline_mode = #tpu.pipeline_mode<synchronous>, transform_indices = @transform_3, window_bounds = array<i64: 64, 128>}, {pipeline_mode = #tpu.pipeline_mode<synchronous>, transform_indices = @transform_4, window_bounds = array<i64: 1, 128>}, {pipeline_mode = #tpu.pipeline_mode<synchronous>, transform_indices = @transform_5, window_bounds = array<i64: 1, 128>}, {transform_indices = @transform_6, window_bounds = array<i64: 64, 128>}]} {
    %c0 = arith.constant 0 : index
    %c0_0 = arith.constant 0 : index
    %0 = vector.load %arg5[%c0, %c0_0] : memref<1x128xf32, #tpu.memory_space<vmem>>, vector<1x128xf32>
    %c0_1 = arith.constant 0 : index
    %c0_2 = arith.constant 0 : index
    %1 = vector.load %arg6[%c0_1, %c0_2] : memref<1x128xf32, #tpu.memory_space<vmem>>, vector<1x128xf32>
    %c0_3 = arith.constant 0 : index
    %c0_4 = arith.constant 0 : index
    %2 = vector.load %arg2[%c0_3, %c0_4] : memref<64x64xbf16, #tpu.memory_space<vmem>>, vector<64x64xbf16>
    %c0_5 = arith.constant 0 : index
    %c0_6 = arith.constant 0 : index
    %3 = vector.load %arg4[%c0_5, %c0_6] : memref<64x128xbf16, #tpu.memory_space<vmem>>, vector<64x128xbf16>
    %cst = arith.constant dense<0.000000e+00> : vector<64x128xf32>
    %4 = tpu.matmul %2, %3, %cst {dimension_numbers = #tpu.dot_dimension_numbers<[1], [0], [0], [1], [0, 0, 1, 1], [], []>} : vector<64x64xbf16>, vector<64x128xbf16>, vector<64x128xf32> -> vector<64x128xf32>
    %5 = vector.broadcast %0 : vector<1x128xf32> to vector<64x128xf32>
    %6 = arith.mulf %4, %5 : vector<64x128xf32>
    %7 = vector.broadcast %1 : vector<1x128xf32> to vector<64x128xf32>
    %8 = arith.addf %6, %7 : vector<64x128xf32>
    %c0_7 = arith.constant 0 : index
    %c0_8 = arith.constant 0 : index
    %9 = vector.load %arg1[%c0_7, %c0_8] : memref<256x64xbf16, #tpu.memory_space<vmem>>, vector<256x64xbf16>
    %c0_9 = arith.constant 0 : index
    %c0_10 = arith.constant 0 : index
    %10 = vector.load %arg3[%c0_9, %c0_10] : memref<64x128xbf16, #tpu.memory_space<vmem>>, vector<64x128xbf16>
    %cst_11 = arith.constant dense<0.000000e+00> : vector<256x128xf32>
    %11 = tpu.matmul %9, %10, %cst_11 {dimension_numbers = #tpu.dot_dimension_numbers<[1], [0], [0], [1], [0, 0, 1, 1], [], []>} : vector<256x64xbf16>, vector<64x128xbf16>, vector<256x128xf32> -> vector<256x128xf32>
    %12 = vector.extract_strided_slice %11 {offsets = [0, 0], sizes = [64, 128], strides = [1, 1]} : vector<256x128xf32> to vector<64x128xf32>
    %13 = vector.broadcast %0 : vector<1x128xf32> to vector<64x128xf32>
    %14 = arith.mulf %12, %13 : vector<64x128xf32>
    %15 = arith.addf %14, %8 : vector<64x128xf32>
    %cst_12 = arith.constant 2.000000e-01 : f32
    %16 = vector.broadcast %cst_12 : f32 to vector<64x128xf32>
    %17 = arith.mulf %16, %15 : vector<64x128xf32>
    %18 = arith.maximumf %15, %17 : vector<64x128xf32>
    %19 = vector.extract_strided_slice %11 {offsets = [64, 0], sizes = [64, 128], strides = [1, 1]} : vector<256x128xf32> to vector<64x128xf32>
    %20 = vector.broadcast %0 : vector<1x128xf32> to vector<64x128xf32>
    %21 = arith.mulf %19, %20 : vector<64x128xf32>
    %22 = arith.addf %21, %8 : vector<64x128xf32>
    %cst_13 = arith.constant 2.000000e-01 : f32
    %23 = vector.broadcast %cst_13 : f32 to vector<64x128xf32>
    %24 = arith.mulf %23, %22 : vector<64x128xf32>
    %25 = arith.maximumf %22, %24 : vector<64x128xf32>
    %26 = arith.maximumf %18, %25 : vector<64x128xf32>
    %27 = vector.extract_strided_slice %11 {offsets = [128, 0], sizes = [64, 128], strides = [1, 1]} : vector<256x128xf32> to vector<64x128xf32>
    %28 = vector.broadcast %0 : vector<1x128xf32> to vector<64x128xf32>
    %29 = arith.mulf %27, %28 : vector<64x128xf32>
    %30 = arith.addf %29, %8 : vector<64x128xf32>
    %cst_14 = arith.constant 2.000000e-01 : f32
    %31 = vector.broadcast %cst_14 : f32 to vector<64x128xf32>
    %32 = arith.mulf %31, %30 : vector<64x128xf32>
    %33 = arith.maximumf %30, %32 : vector<64x128xf32>
    %34 = arith.maximumf %26, %33 : vector<64x128xf32>
    %35 = vector.extract_strided_slice %11 {offsets = [192, 0], sizes = [64, 128], strides = [1, 1]} : vector<256x128xf32> to vector<64x128xf32>
    %36 = vector.broadcast %0 : vector<1x128xf32> to vector<64x128xf32>
    %37 = arith.mulf %35, %36 : vector<64x128xf32>
    %38 = arith.addf %37, %8 : vector<64x128xf32>
    %cst_15 = arith.constant 2.000000e-01 : f32
    %39 = vector.broadcast %cst_15 : f32 to vector<64x128xf32>
    %40 = arith.mulf %39, %38 : vector<64x128xf32>
    %41 = arith.maximumf %38, %40 : vector<64x128xf32>
    %42 = arith.maximumf %34, %41 : vector<64x128xf32>
    %c0_16 = arith.constant 0 : index
    %c0_17 = arith.constant 0 : index
    %43 = vector.load %arg7[%c0_16, %c0_17] : memref<64x128xf32, #tpu.memory_space<vmem>>, vector<64x128xf32>
    tpu.vector_store %arg7[%c0_16, %c0_17], %42 {strides = array<i32>} : memref<64x128xf32, #tpu.memory_space<vmem>>, vector<64x128xf32>,
    return
  }
  func.func @transform_0(%arg0: i32) -> (i32, i32) {
    %c0_i32 = arith.constant 0 : i32
    %c0_i32_0 = arith.constant 0 : i32
    return %arg0, %c0_i32 : i32, i32
  }
  func.func @transform_1(%arg0: i32) -> (i32, i32) {
    %c0_i32 = arith.constant 0 : i32
    %c0_i32_0 = arith.constant 0 : i32
    return %arg0, %c0_i32 : i32, i32
  }
  func.func @transform_2(%arg0: i32) -> (i32, i32) {
    %c0_i32 = arith.constant 0 : i32
    %c0_i32_0 = arith.constant 0 : i32
    %c0_i32_1 = arith.constant 0 : i32
    return %c0_i32, %c0_i32_0 : i32, i32
  }
  func.func @transform_3(%arg0: i32) -> (i32, i32) {
    %c0_i32 = arith.constant 0 : i32
    %c0_i32_0 = arith.constant 0 : i32
    %c0_i32_1 = arith.constant 0 : i32
    return %c0_i32, %c0_i32_0 : i32, i32
  }
  func.func @transform_4(%arg0: i32) -> (i32, i32) {
    %c0_i32 = arith.constant 0 : i32
    %c0_i32_0 = arith.constant 0 : i32
    %c0_i32_1 = arith.constant 0 : i32
    return %c0_i32, %c0_i32_0 : i32, i32
  }
  func.func @transform_5(%arg0: i32) -> (i32, i32) {
    %c0_i32 = arith.constant 0 : i32
    %c0_i32_0 = arith.constant 0 : i32
    %c0_i32_1 = arith.constant 0 : i32
    return %c0_i32, %c0_i32_0 : i32, i32
  }
  func.func @transform_6(%arg0: i32) -> (i32, i32) {
    %c0_i32 = arith.constant 0 : i32
    %c0_i32_0 = arith.constant 0 : i32
    return %arg0, %c0_i32 : i32, i32
  }
}

module attributes {stable_mosaic.version = 11 : i64} {
  func.func @_pairwise_kernel(%arg0: i32, %arg1: i32, %arg2: memref<1x32x128xf32, #tpu.memory_space<vmem>>, %arg3: memref<1x32x128xf32, #tpu.memory_space<vmem>>, %arg4: memref<1x1x32xf32, #tpu.memory_space<vmem>>, %arg5: memref<1x32x32xf32, #tpu.memory_space<vmem>>) attributes {dimension_semantics = [#tpu.dimension_semantics<parallel>, #tpu.dimension_semantics<parallel>], iteration_bounds = array<i64: 2, 1>, scalar_prefetch = 0 : i64, scratch_operands = 0 : i64, tpu.core_type = #tpu.core_type<tc>, window_params = [{transform_indices = @transform_0, window_bounds = array<i64: 1, 32, 128>}, {transform_indices = @transform_1, window_bounds = array<i64: 1, 32, 128>}, {transform_indices = @transform_2, window_bounds = array<i64: 1, 1, 32>}, {transform_indices = @transform_3, window_bounds = array<i64: 1, 32, 32>}]} {
    %c0 = arith.constant 0 : index
    %c0_0 = arith.constant 0 : index
    %c0_1 = arith.constant 0 : index
    %0 = vector.load %arg2[%c0, %c0_0, %c0_1] : memref<1x32x128xf32, #tpu.memory_space<vmem>>, vector<1x32x128xf32>
    %1 = vector.shape_cast %0 : vector<1x32x128xf32> to vector<32x128xf32>
    %c0_2 = arith.constant 0 : index
    %c0_3 = arith.constant 0 : index
    %c0_4 = arith.constant 0 : index
    %2 = vector.load %arg3[%c0_2, %c0_3, %c0_4] : memref<1x32x128xf32, #tpu.memory_space<vmem>>, vector<1x32x128xf32>
    %3 = vector.shape_cast %2 : vector<1x32x128xf32> to vector<32x128xf32>
    %cst = arith.constant dense<0.000000e+00> : vector<32x32xf32>
    %4 = tpu.matmul %1, %3, %cst {dimension_numbers = #tpu.dot_dimension_numbers<[1], [1], [0], [0], [0, 0, 1, 0], [], []>} : vector<32x128xf32>, vector<32x128xf32>, vector<32x32xf32> -> vector<32x32xf32>
    %5 = arith.mulf %1, %1 : vector<32x128xf32>
    %cst_5 = arith.constant dense<0.000000e+00> : vector<32xf32>
    %6 = vector.multi_reduction <add>, %5, %cst_5 [1] : vector<32x128xf32> to vector<32xf32>
    %7 = vector.shape_cast %6 : vector<32xf32> to vector<32x1xf32>
    %cst_6 = arith.constant 2.000000e+00 : f32
    %8 = vector.broadcast %cst_6 : f32 to vector<32x32xf32>
    %9 = arith.mulf %8, %4 : vector<32x32xf32>
    %10 = vector.broadcast %7 : vector<32x1xf32> to vector<32x32xf32>
    %11 = arith.subf %9, %10 : vector<32x32xf32>
    %c0_7 = arith.constant 0 : index
    %c0_8 = arith.constant 0 : index
    %c0_9 = arith.constant 0 : index
    %12 = vector.load %arg4[%c0_7, %c0_8, %c0_9] : memref<1x1x32xf32, #tpu.memory_space<vmem>>, vector<1x1x32xf32>
    %13 = vector.shape_cast %12 : vector<1x1x32xf32> to vector<1x32xf32>
    %14 = vector.broadcast %13 : vector<1x32xf32> to vector<32x32xf32>
    %15 = arith.addf %11, %14 : vector<32x32xf32>
    %c0_10 = arith.constant 0 : index
    %c0_11 = arith.constant 0 : index
    %c0_12 = arith.constant 0 : index
    %16 = vector.load %arg5[%c0_10, %c0_11, %c0_12] : memref<1x32x32xf32, #tpu.memory_space<vmem>>, vector<1x32x32xf32>
    %17 = vector.shape_cast %16 : vector<1x32x32xf32> to vector<32x32xf32>
    %18 = vector.shape_cast %15 : vector<32x32xf32> to vector<1x32x32xf32>
    tpu.vector_store %arg5[%c0_10, %c0_11, %c0_12], %18 {strides = array<i32>} : memref<1x32x32xf32, #tpu.memory_space<vmem>>, vector<1x32x32xf32>,
    return
  }
  func.func @transform_0(%arg0: i32, %arg1: i32) -> (i32, i32, i32) {
    %c0_i32 = arith.constant 0 : i32
    %c0_i32_0 = arith.constant 0 : i32
    return %arg0, %arg1, %c0_i32 : i32, i32, i32
  }
  func.func @transform_1(%arg0: i32, %arg1: i32) -> (i32, i32, i32) {
    %c0_i32 = arith.constant 0 : i32
    %c0_i32_0 = arith.constant 0 : i32
    %c0_i32_1 = arith.constant 0 : i32
    return %arg0, %c0_i32, %c0_i32_0 : i32, i32, i32
  }
  func.func @transform_2(%arg0: i32, %arg1: i32) -> (i32, i32, i32) {
    %c0_i32 = arith.constant 0 : i32
    %c0_i32_0 = arith.constant 0 : i32
    %c0_i32_1 = arith.constant 0 : i32
    return %arg0, %c0_i32, %c0_i32_0 : i32, i32, i32
  }
  func.func @transform_3(%arg0: i32, %arg1: i32) -> (i32, i32, i32) {
    %c0_i32 = arith.constant 0 : i32
    %c0_i32_0 = arith.constant 0 : i32
    return %arg0, %arg1, %c0_i32 : i32, i32, i32
  }
}

module attributes {stable_mosaic.version = 11 : i64} {
  func.func @_edge_conv_max_kernel(%arg0: i32, %arg1: memref<256x128xbf16, #tpu.memory_space<vmem>>, %arg2: memref<64x128xbf16, #tpu.memory_space<vmem>>, %arg3: memref<128x256xbf16, #tpu.memory_space<vmem>>, %arg4: memref<128x256xbf16, #tpu.memory_space<vmem>>, %arg5: memref<1x256xf32, #tpu.memory_space<vmem>>, %arg6: memref<1x256xf32, #tpu.memory_space<vmem>>, %arg7: memref<64x256xf32, #tpu.memory_space<vmem>>) attributes {dimension_semantics = [#tpu.dimension_semantics<parallel>], iteration_bounds = array<i64: 1>, scalar_prefetch = 0 : i64, scratch_operands = 0 : i64, tpu.core_type = #tpu.core_type<tc>, window_params = [{transform_indices = @transform_0, window_bounds = array<i64: 256, 128>}, {transform_indices = @transform_1, window_bounds = array<i64: 64, 128>}, {pipeline_mode = #tpu.pipeline_mode<synchronous>, transform_indices = @transform_2, window_bounds = array<i64: 128, 256>}, {pipeline_mode = #tpu.pipeline_mode<synchronous>, transform_indices = @transform_3, window_bounds = array<i64: 128, 256>}, {pipeline_mode = #tpu.pipeline_mode<synchronous>, transform_indices = @transform_4, window_bounds = array<i64: 1, 256>}, {pipeline_mode = #tpu.pipeline_mode<synchronous>, transform_indices = @transform_5, window_bounds = array<i64: 1, 256>}, {transform_indices = @transform_6, window_bounds = array<i64: 64, 256>}]} {
    %c0 = arith.constant 0 : index
    %c0_0 = arith.constant 0 : index
    %0 = vector.load %arg5[%c0, %c0_0] : memref<1x256xf32, #tpu.memory_space<vmem>>, vector<1x256xf32>
    %c0_1 = arith.constant 0 : index
    %c0_2 = arith.constant 0 : index
    %1 = vector.load %arg6[%c0_1, %c0_2] : memref<1x256xf32, #tpu.memory_space<vmem>>, vector<1x256xf32>
    %c0_3 = arith.constant 0 : index
    %c0_4 = arith.constant 0 : index
    %2 = vector.load %arg2[%c0_3, %c0_4] : memref<64x128xbf16, #tpu.memory_space<vmem>>, vector<64x128xbf16>
    %c0_5 = arith.constant 0 : index
    %c0_6 = arith.constant 0 : index
    %3 = vector.load %arg4[%c0_5, %c0_6] : memref<128x256xbf16, #tpu.memory_space<vmem>>, vector<128x256xbf16>
    %cst = arith.constant dense<0.000000e+00> : vector<64x256xf32>
    %4 = tpu.matmul %2, %3, %cst {dimension_numbers = #tpu.dot_dimension_numbers<[1], [0], [0], [1], [0, 0, 1, 1], [], []>} : vector<64x128xbf16>, vector<128x256xbf16>, vector<64x256xf32> -> vector<64x256xf32>
    %5 = vector.broadcast %0 : vector<1x256xf32> to vector<64x256xf32>
    %6 = arith.mulf %4, %5 : vector<64x256xf32>
    %7 = vector.broadcast %1 : vector<1x256xf32> to vector<64x256xf32>
    %8 = arith.addf %6, %7 : vector<64x256xf32>
    %c0_7 = arith.constant 0 : index
    %c0_8 = arith.constant 0 : index
    %9 = vector.load %arg1[%c0_7, %c0_8] : memref<256x128xbf16, #tpu.memory_space<vmem>>, vector<256x128xbf16>
    %c0_9 = arith.constant 0 : index
    %c0_10 = arith.constant 0 : index
    %10 = vector.load %arg3[%c0_9, %c0_10] : memref<128x256xbf16, #tpu.memory_space<vmem>>, vector<128x256xbf16>
    %cst_11 = arith.constant dense<0.000000e+00> : vector<256x256xf32>
    %11 = tpu.matmul %9, %10, %cst_11 {dimension_numbers = #tpu.dot_dimension_numbers<[1], [0], [0], [1], [0, 0, 1, 1], [], []>} : vector<256x128xbf16>, vector<128x256xbf16>, vector<256x256xf32> -> vector<256x256xf32>
    %12 = vector.extract_strided_slice %11 {offsets = [0, 0], sizes = [64, 256], strides = [1, 1]} : vector<256x256xf32> to vector<64x256xf32>
    %13 = vector.broadcast %0 : vector<1x256xf32> to vector<64x256xf32>
    %14 = arith.mulf %12, %13 : vector<64x256xf32>
    %15 = arith.addf %14, %8 : vector<64x256xf32>
    %cst_12 = arith.constant 2.000000e-01 : f32
    %16 = vector.broadcast %cst_12 : f32 to vector<64x256xf32>
    %17 = arith.mulf %16, %15 : vector<64x256xf32>
    %18 = arith.maximumf %15, %17 : vector<64x256xf32>
    %19 = vector.extract_strided_slice %11 {offsets = [64, 0], sizes = [64, 256], strides = [1, 1]} : vector<256x256xf32> to vector<64x256xf32>
    %20 = vector.broadcast %0 : vector<1x256xf32> to vector<64x256xf32>
    %21 = arith.mulf %19, %20 : vector<64x256xf32>
    %22 = arith.addf %21, %8 : vector<64x256xf32>
    %cst_13 = arith.constant 2.000000e-01 : f32
    %23 = vector.broadcast %cst_13 : f32 to vector<64x256xf32>
    %24 = arith.mulf %23, %22 : vector<64x256xf32>
    %25 = arith.maximumf %22, %24 : vector<64x256xf32>
    %26 = arith.maximumf %18, %25 : vector<64x256xf32>
    %27 = vector.extract_strided_slice %11 {offsets = [128, 0], sizes = [64, 256], strides = [1, 1]} : vector<256x256xf32> to vector<64x256xf32>
    %28 = vector.broadcast %0 : vector<1x256xf32> to vector<64x256xf32>
    %29 = arith.mulf %27, %28 : vector<64x256xf32>
    %30 = arith.addf %29, %8 : vector<64x256xf32>
    %cst_14 = arith.constant 2.000000e-01 : f32
    %31 = vector.broadcast %cst_14 : f32 to vector<64x256xf32>
    %32 = arith.mulf %31, %30 : vector<64x256xf32>
    %33 = arith.maximumf %30, %32 : vector<64x256xf32>
    %34 = arith.maximumf %26, %33 : vector<64x256xf32>
    %35 = vector.extract_strided_slice %11 {offsets = [192, 0], sizes = [64, 256], strides = [1, 1]} : vector<256x256xf32> to vector<64x256xf32>
    %36 = vector.broadcast %0 : vector<1x256xf32> to vector<64x256xf32>
    %37 = arith.mulf %35, %36 : vector<64x256xf32>
    %38 = arith.addf %37, %8 : vector<64x256xf32>
    %cst_15 = arith.constant 2.000000e-01 : f32
    %39 = vector.broadcast %cst_15 : f32 to vector<64x256xf32>
    %40 = arith.mulf %39, %38 : vector<64x256xf32>
    %41 = arith.maximumf %38, %40 : vector<64x256xf32>
    %42 = arith.maximumf %34, %41 : vector<64x256xf32>
    %c0_16 = arith.constant 0 : index
    %c0_17 = arith.constant 0 : index
    %43 = vector.load %arg7[%c0_16, %c0_17] : memref<64x256xf32, #tpu.memory_space<vmem>>, vector<64x256xf32>
    tpu.vector_store %arg7[%c0_16, %c0_17], %42 {strides = array<i32>} : memref<64x256xf32, #tpu.memory_space<vmem>>, vector<64x256xf32>,
    return
  }
  func.func @transform_0(%arg0: i32) -> (i32, i32) {
    %c0_i32 = arith.constant 0 : i32
    %c0_i32_0 = arith.constant 0 : i32
    return %arg0, %c0_i32 : i32, i32
  }
  func.func @transform_1(%arg0: i32) -> (i32, i32) {
    %c0_i32 = arith.constant 0 : i32
    %c0_i32_0 = arith.constant 0 : i32
    return %arg0, %c0_i32 : i32, i32
  }
  func.func @transform_2(%arg0: i32) -> (i32, i32) {
    %c0_i32 = arith.constant 0 : i32
    %c0_i32_0 = arith.constant 0 : i32
    %c0_i32_1 = arith.constant 0 : i32
    return %c0_i32, %c0_i32_0 : i32, i32
  }
  func.func @transform_3(%arg0: i32) -> (i32, i32) {
    %c0_i32 = arith.constant 0 : i32
    %c0_i32_0 = arith.constant 0 : i32
    %c0_i32_1 = arith.constant 0 : i32
    return %c0_i32, %c0_i32_0 : i32, i32
  }
  func.func @transform_4(%arg0: i32) -> (i32, i32) {
    %c0_i32 = arith.constant 0 : i32
    %c0_i32_0 = arith.constant 0 : i32
    %c0_i32_1 = arith.constant 0 : i32
    return %c0_i32, %c0_i32_0 : i32, i32
  }
  func.func @transform_5(%arg0: i32) -> (i32, i32) {
    %c0_i32 = arith.constant 0 : i32
    %c0_i32_0 = arith.constant 0 : i32
    %c0_i32_1 = arith.constant 0 : i32
    return %c0_i32, %c0_i32_0 : i32, i32
  }
  func.func @transform_6(%arg0: i32) -> (i32, i32) {
    %c0_i32 = arith.constant 0 : i32
    %c0_i32_0 = arith.constant 0 : i32
    return %arg0, %c0_i32 : i32, i32
  }
}

module attributes {stable_mosaic.version = 11 : i64} {
  func.func @_matmul_affine_act_kernel(%arg0: i32, %arg1: memref<64x512xbf16, #tpu.memory_space<vmem>>, %arg2: memref<512x64xbf16, #tpu.memory_space<vmem>>, %arg3: memref<1x64xf32, #tpu.memory_space<vmem>>, %arg4: memref<1x64xf32, #tpu.memory_space<vmem>>, %arg5: memref<64x64xf32, #tpu.memory_space<vmem>>) attributes {dimension_semantics = [#tpu.dimension_semantics<parallel>], iteration_bounds = array<i64: 1>, scalar_prefetch = 0 : i64, scratch_operands = 0 : i64, tpu.core_type = #tpu.core_type<tc>, window_params = [{transform_indices = @transform_0, window_bounds = array<i64: 64, 512>}, {pipeline_mode = #tpu.pipeline_mode<synchronous>, transform_indices = @transform_1, window_bounds = array<i64: 512, 64>}, {pipeline_mode = #tpu.pipeline_mode<synchronous>, transform_indices = @transform_2, window_bounds = array<i64: 1, 64>}, {pipeline_mode = #tpu.pipeline_mode<synchronous>, transform_indices = @transform_3, window_bounds = array<i64: 1, 64>}, {transform_indices = @transform_4, window_bounds = array<i64: 64, 64>}]} {
    %c0 = arith.constant 0 : index
    %c0_0 = arith.constant 0 : index
    %0 = vector.load %arg1[%c0, %c0_0] : memref<64x512xbf16, #tpu.memory_space<vmem>>, vector<64x512xbf16>
    %c0_1 = arith.constant 0 : index
    %c0_2 = arith.constant 0 : index
    %1 = vector.load %arg2[%c0_1, %c0_2] : memref<512x64xbf16, #tpu.memory_space<vmem>>, vector<512x64xbf16>
    %cst = arith.constant dense<0.000000e+00> : vector<64x64xf32>
    %2 = tpu.matmul %0, %1, %cst {dimension_numbers = #tpu.dot_dimension_numbers<[1], [0], [0], [1], [0, 0, 1, 1], [], []>} : vector<64x512xbf16>, vector<512x64xbf16>, vector<64x64xf32> -> vector<64x64xf32>
    %c0_3 = arith.constant 0 : index
    %c0_4 = arith.constant 0 : index
    %3 = vector.load %arg3[%c0_3, %c0_4] : memref<1x64xf32, #tpu.memory_space<vmem>>, vector<1x64xf32>
    %4 = vector.broadcast %3 : vector<1x64xf32> to vector<64x64xf32>
    %5 = arith.mulf %2, %4 : vector<64x64xf32>
    %c0_5 = arith.constant 0 : index
    %c0_6 = arith.constant 0 : index
    %6 = vector.load %arg4[%c0_5, %c0_6] : memref<1x64xf32, #tpu.memory_space<vmem>>, vector<1x64xf32>
    %7 = vector.broadcast %6 : vector<1x64xf32> to vector<64x64xf32>
    %8 = arith.addf %5, %7 : vector<64x64xf32>
    %cst_7 = arith.constant 2.000000e-01 : f32
    %9 = vector.broadcast %cst_7 : f32 to vector<64x64xf32>
    %10 = arith.mulf %9, %8 : vector<64x64xf32>
    %11 = arith.maximumf %8, %10 : vector<64x64xf32>
    %c0_8 = arith.constant 0 : index
    %c0_9 = arith.constant 0 : index
    %12 = vector.load %arg5[%c0_8, %c0_9] : memref<64x64xf32, #tpu.memory_space<vmem>>, vector<64x64xf32>
    tpu.vector_store %arg5[%c0_8, %c0_9], %11 {strides = array<i32>} : memref<64x64xf32, #tpu.memory_space<vmem>>, vector<64x64xf32>,
    return
  }
  func.func @transform_0(%arg0: i32) -> (i32, i32) {
    %c0_i32 = arith.constant 0 : i32
    %c0_i32_0 = arith.constant 0 : i32
    return %arg0, %c0_i32 : i32, i32
  }
  func.func @transform_1(%arg0: i32) -> (i32, i32) {
    %c0_i32 = arith.constant 0 : i32
    %c0_i32_0 = arith.constant 0 : i32
    %c0_i32_1 = arith.constant 0 : i32
    return %c0_i32, %c0_i32_0 : i32, i32
  }
  func.func @transform_2(%arg0: i32) -> (i32, i32) {
    %c0_i32 = arith.constant 0 : i32
    %c0_i32_0 = arith.constant 0 : i32
    %c0_i32_1 = arith.constant 0 : i32
    return %c0_i32, %c0_i32_0 : i32, i32
  }
  func.func @transform_3(%arg0: i32) -> (i32, i32) {
    %c0_i32 = arith.constant 0 : i32
    %c0_i32_0 = arith.constant 0 : i32
    %c0_i32_1 = arith.constant 0 : i32
    return %c0_i32, %c0_i32_0 : i32, i32
  }
  func.func @transform_4(%arg0: i32) -> (i32, i32) {
    %c0_i32 = arith.constant 0 : i32
    %c0_i32_0 = arith.constant 0 : i32
    return %arg0, %c0_i32 : i32, i32
  }
}

module attributes {stable_mosaic.version = 11 : i64} {
  func.func @_mlp_head_kernel(%arg0: i32, %arg1: memref<2x128xf32, #tpu.memory_space<vmem>>, %arg2: memref<128x512xf32, #tpu.memory_space<vmem>>, %arg3: memref<1x512xf32, #tpu.memory_space<vmem>>, %arg4: memref<1x512xf32, #tpu.memory_space<vmem>>, %arg5: memref<512x256xf32, #tpu.memory_space<vmem>>, %arg6: memref<1x256xf32, #tpu.memory_space<vmem>>, %arg7: memref<1x256xf32, #tpu.memory_space<vmem>>, %arg8: memref<256x40xf32, #tpu.memory_space<vmem>>, %arg9: memref<1x40xf32, #tpu.memory_space<vmem>>, %arg10: memref<2x40xf32, #tpu.memory_space<vmem>>) attributes {dimension_semantics = [#tpu.dimension_semantics<arbitrary>], iteration_bounds = array<i64: 1>, scalar_prefetch = 0 : i64, scratch_operands = 0 : i64, tpu.core_type = #tpu.core_type<tc>, window_params = [{pipeline_mode = #tpu.pipeline_mode<synchronous>, transform_indices = @transform_0, window_bounds = array<i64: 2, 128>}, {pipeline_mode = #tpu.pipeline_mode<synchronous>, transform_indices = @transform_1, window_bounds = array<i64: 128, 512>}, {pipeline_mode = #tpu.pipeline_mode<synchronous>, transform_indices = @transform_2, window_bounds = array<i64: 1, 512>}, {pipeline_mode = #tpu.pipeline_mode<synchronous>, transform_indices = @transform_3, window_bounds = array<i64: 1, 512>}, {pipeline_mode = #tpu.pipeline_mode<synchronous>, transform_indices = @transform_4, window_bounds = array<i64: 512, 256>}, {pipeline_mode = #tpu.pipeline_mode<synchronous>, transform_indices = @transform_5, window_bounds = array<i64: 1, 256>}, {pipeline_mode = #tpu.pipeline_mode<synchronous>, transform_indices = @transform_6, window_bounds = array<i64: 1, 256>}, {pipeline_mode = #tpu.pipeline_mode<synchronous>, transform_indices = @transform_7, window_bounds = array<i64: 256, 40>}, {pipeline_mode = #tpu.pipeline_mode<synchronous>, transform_indices = @transform_8, window_bounds = array<i64: 1, 40>}, {pipeline_mode = #tpu.pipeline_mode<synchronous>, transform_indices = @transform_9, window_bounds = array<i64: 2, 40>}]} {
    %c0 = arith.constant 0 : index
    %c0_0 = arith.constant 0 : index
    %0 = vector.load %arg1[%c0, %c0_0] : memref<2x128xf32, #tpu.memory_space<vmem>>, vector<2x128xf32>
    %c0_1 = arith.constant 0 : index
    %c0_2 = arith.constant 0 : index
    %1 = vector.load %arg2[%c0_1, %c0_2] : memref<128x512xf32, #tpu.memory_space<vmem>>, vector<128x512xf32>
    %cst = arith.constant dense<0.000000e+00> : vector<2x512xf32>
    %2 = tpu.matmul %0, %1, %cst {dimension_numbers = #tpu.dot_dimension_numbers<[1], [0], [0], [1], [0, 0, 1, 1], [], []>} : vector<2x128xf32>, vector<128x512xf32>, vector<2x512xf32> -> vector<2x512xf32>
    %c0_3 = arith.constant 0 : index
    %c0_4 = arith.constant 0 : index
    %3 = vector.load %arg3[%c0_3, %c0_4] : memref<1x512xf32, #tpu.memory_space<vmem>>, vector<1x512xf32>
    %4 = vector.broadcast %3 : vector<1x512xf32> to vector<2x512xf32>
    %5 = arith.mulf %2, %4 : vector<2x512xf32>
    %c0_5 = arith.constant 0 : index
    %c0_6 = arith.constant 0 : index
    %6 = vector.load %arg4[%c0_5, %c0_6] : memref<1x512xf32, #tpu.memory_space<vmem>>, vector<1x512xf32>
    %7 = vector.broadcast %6 : vector<1x512xf32> to vector<2x512xf32>
    %8 = arith.addf %5, %7 : vector<2x512xf32>
    %cst_7 = arith.constant 2.000000e-01 : f32
    %9 = vector.broadcast %cst_7 : f32 to vector<2x512xf32>
    %10 = arith.mulf %9, %8 : vector<2x512xf32>
    %11 = arith.maximumf %8, %10 : vector<2x512xf32>
    %c0_8 = arith.constant 0 : index
    %c0_9 = arith.constant 0 : index
    %12 = vector.load %arg5[%c0_8, %c0_9] : memref<512x256xf32, #tpu.memory_space<vmem>>, vector<512x256xf32>
    %cst_10 = arith.constant dense<0.000000e+00> : vector<2x256xf32>
    %13 = tpu.matmul %11, %12, %cst_10 {dimension_numbers = #tpu.dot_dimension_numbers<[1], [0], [0], [1], [0, 0, 1, 1], [], []>} : vector<2x512xf32>, vector<512x256xf32>, vector<2x256xf32> -> vector<2x256xf32>
    %c0_11 = arith.constant 0 : index
    %c0_12 = arith.constant 0 : index
    %14 = vector.load %arg6[%c0_11, %c0_12] : memref<1x256xf32, #tpu.memory_space<vmem>>, vector<1x256xf32>
    %15 = vector.broadcast %14 : vector<1x256xf32> to vector<2x256xf32>
    %16 = arith.mulf %13, %15 : vector<2x256xf32>
    %c0_13 = arith.constant 0 : index
    %c0_14 = arith.constant 0 : index
    %17 = vector.load %arg7[%c0_13, %c0_14] : memref<1x256xf32, #tpu.memory_space<vmem>>, vector<1x256xf32>
    %18 = vector.broadcast %17 : vector<1x256xf32> to vector<2x256xf32>
    %19 = arith.addf %16, %18 : vector<2x256xf32>
    %cst_15 = arith.constant 2.000000e-01 : f32
    %20 = vector.broadcast %cst_15 : f32 to vector<2x256xf32>
    %21 = arith.mulf %20, %19 : vector<2x256xf32>
    %22 = arith.maximumf %19, %21 : vector<2x256xf32>
    %c0_16 = arith.constant 0 : index
    %c0_17 = arith.constant 0 : index
    %23 = vector.load %arg8[%c0_16, %c0_17] : memref<256x40xf32, #tpu.memory_space<vmem>>, vector<256x40xf32>
    %cst_18 = arith.constant dense<0.000000e+00> : vector<2x40xf32>
    %24 = tpu.matmul %22, %23, %cst_18 {dimension_numbers = #tpu.dot_dimension_numbers<[1], [0], [0], [1], [0, 0, 1, 1], [], []>} : vector<2x256xf32>, vector<256x40xf32>, vector<2x40xf32> -> vector<2x40xf32>
    %c0_19 = arith.constant 0 : index
    %c0_20 = arith.constant 0 : index
    %25 = vector.load %arg9[%c0_19, %c0_20] : memref<1x40xf32, #tpu.memory_space<vmem>>, vector<1x40xf32>
    %26 = vector.broadcast %25 : vector<1x40xf32> to vector<2x40xf32>
    %27 = arith.addf %24, %26 : vector<2x40xf32>
    %c0_21 = arith.constant 0 : index
    %c0_22 = arith.constant 0 : index
    %28 = vector.load %arg10[%c0_21, %c0_22] : memref<2x40xf32, #tpu.memory_space<vmem>>, vector<2x40xf32>
    tpu.vector_store %arg10[%c0_21, %c0_22], %27 {strides = array<i32>} : memref<2x40xf32, #tpu.memory_space<vmem>>, vector<2x40xf32>,
    return
  }
  func.func @transform_0(%arg0: i32) -> (i32, i32) {
    %c0_i32 = arith.constant 0 : i32
    %c0_i32_0 = arith.constant 0 : i32
    %c0_i32_1 = arith.constant 0 : i32
    return %c0_i32, %c0_i32_0 : i32, i32
  }
  func.func @transform_1(%arg0: i32) -> (i32, i32) {
    %c0_i32 = arith.constant 0 : i32
    %c0_i32_0 = arith.constant 0 : i32
    %c0_i32_1 = arith.constant 0 : i32
    return %c0_i32, %c0_i32_0 : i32, i32
  }
  func.func @transform_2(%arg0: i32) -> (i32, i32) {
    %c0_i32 = arith.constant 0 : i32
    %c0_i32_0 = arith.constant 0 : i32
    %c0_i32_1 = arith.constant 0 : i32
    return %c0_i32, %c0_i32_0 : i32, i32
  }
  func.func @transform_3(%arg0: i32) -> (i32, i32) {
    %c0_i32 = arith.constant 0 : i32
    %c0_i32_0 = arith.constant 0 : i32
    %c0_i32_1 = arith.constant 0 : i32
    return %c0_i32, %c0_i32_0 : i32, i32
  }
  func.func @transform_4(%arg0: i32) -> (i32, i32) {
    %c0_i32 = arith.constant 0 : i32
    %c0_i32_0 = arith.constant 0 : i32
    %c0_i32_1 = arith.constant 0 : i32
    return %c0_i32, %c0_i32_0 : i32, i32
  }
  func.func @transform_5(%arg0: i32) -> (i32, i32) {
    %c0_i32 = arith.constant 0 : i32
    %c0_i32_0 = arith.constant 0 : i32
    %c0_i32_1 = arith.constant 0 : i32
    return %c0_i32, %c0_i32_0 : i32, i32
  }
  func.func @transform_6(%arg0: i32) -> (i32, i32) {
    %c0_i32 = arith.constant 0 : i32
    %c0_i32_0 = arith.constant 0 : i32
    %c0_i32_1 = arith.constant 0 : i32
    return %c0_i32, %c0_i32_0 : i32, i32
  }
  func.func @transform_7(%arg0: i32) -> (i32, i32) {
    %c0_i32 = arith.constant 0 : i32
    %c0_i32_0 = arith.constant 0 : i32
    %c0_i32_1 = arith.constant 0 : i32
    return %c0_i32, %c0_i32_0 : i32, i32
  }
  func.func @transform_8(%arg0: i32) -> (i32, i32) {
    %c0_i32 = arith.constant 0 : i32
    %c0_i32_0 = arith.constant 0 : i32
    %c0_i32_1 = arith.constant 0 : i32
    return %c0_i32, %c0_i32_0 : i32, i32
  }
  func.func @transform_9(%arg0: i32) -> (i32, i32) {
    %c0_i32 = arith.constant 0 : i32
    %c0_i32_0 = arith.constant 0 : i32
    %c0_i32_1 = arith.constant 0 : i32
    return %c0_i32, %c0_i32_0 : i32, i32
  }
}

</mosaic_0001>

<bundles_post_ra>
// kernel: neg.0
= control target key start
LH: loop header
LB: loop body
LE: loop exit
PB: predicated region body
PF: predicated region fallthrough
CT: control target
= control target key end

     0   :  { %s24_s0 = inlined_call_operand.vmem [shape: f32[2,32], index: 0, kind: input, shape index: {}]   ;;  %s25_s1 = inlined_call_operand.vmem [shape: f32[2,32], index: 1, kind: output, shape index: {}]  }
   0x1   :  { %v2_v0 = vld [vmem:[%s24_s0] sm:$0x3] }
   0x2   :  { %v5_v1 = vxor.u32 2147483648, %v2_v0 }
   0x4   :  { %7 = vst [vmem:[%s25_s1] sm:$0x3] %v5_v1 }

// kernel: neg.1
= control target key start
LH: loop header
LB: loop body
LE: loop exit
PB: predicated region body
PF: predicated region fallthrough
CT: control target
= control target key end

     0   :  { %s24_s0 = inlined_call_operand.vmem [shape: f32[64], index: 0, kind: input, shape index: {}]   ;;  %s25_s1 = inlined_call_operand.vmem [shape: f32[64], index: 1, kind: output, shape index: {}]  }
   0x1   :  { %v2_v0 = vld [vmem:[%s24_s0] sm:$0x1] }
   0x2   :  { %v5_v1 = vxor.u32 2147483648, %v2_v0 }
   0x4   :  { %7 = vst [vmem:[%s25_s1] sm:$0x1] %v5_v1 }

// kernel: point_manifold_nnml_forward.10
= control target key start
LH: loop header
LB: loop body
LE: loop exit
PB: predicated region body
PF: predicated region fallthrough
CT: control target
= control target key end

     0   :  { %s556_s12 = smov 0   ;;  %s558_s13 = smov 0   ;;  %s637_s0 = inlined_call_operand.vmem [shape: f32[2,32,9], index: 0, kind: input, shape index: {}, may-alias: {0,1}]   ;;  %s638_s1 = inlined_call_operand.vmem [shape: f32[2,32,9], index: 1, kind: input, shape index: {}, may-alias: {0,1}]   ;;  %s639_s2 = inlined_call_operand.vmem [shape: f32[2,1,32], index: 2, kind: input, shape index: {}]   ;;  %s640_s3 = inlined_call_operand.vmem [shape: f32[2,32,32], index: 3, kind: output, shape index: {}]  }
   0x1   :  { %s560_s14 = smov 0  }
   0x2 LB: > { %s25_s15 = sadd.s32 1, %s530_s13  ;;  %p455_p0 = scmp.ge.s32.totalorder %s534_s14, 1  ;;  %s534_s14 = sphi %s560_s14, %s13_s14   ;;  %s530_s13 = sphi %s558_s13, %s642_s13   ;;  %s526_s12 = sphi %s556_s12, %s641_s12  }
   0x3   : > { %p27_p1 = scmp.ge.s32.totalorder %s25_s15, 2  ;;  %p176_p2 = scmp.lt.s32.totalorder %s534_s14, 3 }
   0x5   : > { %s644_s15 = smov (%p27_p1, %s25_s15), 0  ;;  %p177_p3 = pnand %p455_p0, %p176_p2 }
   0x6   : > { %p217_p4 = scmp.lt.s32.totalorder (!%p177_p3), %s526_s12, 1 }
   0x7   : > { %180 = sbr.rel (%p177_p3) target bundleno = 171 (0xab), region = 32 }
   0xc   : > { %s646_s12 = smov (!%p217_p4, %s526_s12), 1  ;;  %vm252_vm0 = vcmask 72704   ;;  %vm338_vm1 = vcmask 261120  }
   0xd   : > { %s577_s16 = sshll.u32 %s646_s12, 5  ;;  %s233_s19 = scalar_lea.vmem %s639_s2, %s646_s12 }
   0xe   : > { %s230_s22 = scalar_lea.vmem %s638_s1, %s577_s16  ;;  %s224_s25 = scalar_lea.vmem %s637_s0, %s577_s16  ;;  %v511_v20 = vld [vmem:[%s233_s19] ss:$0 sm:$0xff] }
   0xf   : > { %v251_v0 = vld [vmem:[%s230_s22 + $0x18] sm:$0xff]  ;;  %v244_v1 = vld [vmem:[%s224_s25] sm:$0xff]  ;;  %v246_v2 = vld [vmem:[%s224_s25 + $0x10] sm:$0xff]  ;;  %s242_s30 = scalar_lea.vmem %s640_s3, %s577_s16 }
  0x10   : > { %462 = vmatpush.xpose.msk.msra.mxu0 %vm252_vm0, %v251_v0  ;;  %476 = vmatpush.xpose.msk.msra.mxu2 %vm252_vm0, %v251_v0  ;;  %v250_v3 = vld [vmem:[%s230_s22 + $0x10] sm:$0xff]  ;;  %v308_v4 = vmul.f32 %v246_v2, %v246_v2  ;;  %v306_v5 = vmul.f32 %v244_v1, %v244_v1  ;;  %v249_v8 = vld [vmem:[%s230_s22 + $0x8] sm:$0xff]  ;;  %v247_v9 = vld [vmem:[%s224_s25 + $0x18] sm:$0xff] }
  0x11   : > { %477 = vmatpush.xpose.msk.msra.mxu3 %vm252_vm0, %v251_v0  ;;  %475 = vmatpush.xpose.msk.msra.mxu1 %vm252_vm0, %v251_v0  ;;  %v245_v10 = vld [vmem:[%s224_s25 + $0x8] sm:$0xff]  ;;  %v309_v11 = vmul.f32 %v247_v9, %v247_v9  ;;  %v248_v13 = vld [vmem:[%s230_s22] sm:$0xff] }
  0x12   : > { %v316_v6 = vsel %vm252_vm0, %v308_v4, 0.0  ;;  %v310_v7 = vsel %vm252_vm0, %v306_v5, 0.0  ;;  %v307_v12 = vmul.f32 %v245_v10, %v245_v10 }
  0x13   : > { %317 = vadd.xlane.f32.xlu1 %v316_v6  ;;  %311 = vadd.xlane.f32.xlu0 %v310_v7  ;;  %v319_v14 = vsel %vm252_vm0, %v309_v11, 0.0 }
  0x14   : > { %463 = vmatpush.xpose.msk.msra.mxu0 %vm252_vm0, %v250_v3  ;;  %479 = vmatpush.xpose.msk.msra.mxu2 %vm252_vm0, %v250_v3  ;;  %v313_v15 = vsel %vm252_vm0, %v307_v12, 0.0 }
  0x15   : > { %480 = vmatpush.xpose.msk.msra.mxu3 %vm252_vm0, %v250_v3  ;;  %478 = vmatpush.xpose.msk.msra.mxu1 %vm252_vm0, %v250_v3 }
  0x18   : > { %464 = vmatpush.xpose.msk.msra.mxu0 %vm252_vm0, %v249_v8  ;;  %482 = vmatpush.xpose.msk.msra.mxu2 %vm252_vm0, %v249_v8 }
  0x19   : > { %483 = vmatpush.xpose.msk.msra.mxu3 %vm252_vm0, %v249_v8  ;;  %481 = vmatpush.xpose.msk.msra.mxu1 %vm252_vm0, %v249_v8 }
  0x1b   : > { %320 = vadd.xlane.f32.xlu1 %v319_v14  ;;  %314 = vadd.xlane.f32.xlu0 %v313_v15 }
  0x1c   : > { %465 = vmatpush.xpose.msk.msra.mxu0 %vm252_vm0, %v248_v13  ;;  %485 = vmatpush.xpose.msk.msra.mxu2 %vm252_vm0, %v248_v13 }
  0x1d   : > { %486 = vmatpush.xpose.msk.msra.mxu3 %vm252_vm0, %v248_v13  ;;  %484 = vmatpush.xpose.msk.msra.mxu1 %vm252_vm0, %v248_v13 }
  0x1f   : > { %466 = vmatmul.msk.f32.vlgmr.msra.gmra.mxu0 %vm252_vm0, %v244_v1  ;;  %468 = vmatmul.msk.f32.vlgmr.msra.gmra.mxu2 %vm252_vm0, %v246_v2 }
  0x20   : > { %469 = vmatmul.msk.f32.vlgmr.msra.gmra.mxu3 %vm252_vm0, %v247_v9  ;;  %467 = vmatmul.msk.f32.vlgmr.msra.gmra.mxu1 %vm252_vm0, %v245_v10 }
  0x86   : > { %v312_v16 = vpop.xlane.xlu0 %311  ;;  %v318_v17 = vpop.xlane.xlu1 %317 }
  0x8e   : > { %v315_v22 = vpop.xlane.xlu0 %314  ;;  %v321_v31 = vpop.xlane.xlu1 %320 }
  0x9c   : > { %v294_v18 = vpop.f32.mrf.mxu0 }
  0x9d   : > { %v322_v19 = vmul.f32 2.0, %v294_v18  ;;  %v297_v21 = vpop.f32.mrf.mxu1 }
  0x9e   : > { %v323_v23 = vmul.f32 2.0, %v297_v21 }
  0x9f   : > { %v326_v24 = vsub.f32 %v322_v19, %v312_v16 }
  0xa0   : > { %v327_v25 = vsub.f32 %v323_v23, %v315_v22 }
  0xa1   : > { %v334_v26 = vadd.f32 %v511_v20, %v326_v24 }
  0xa2   : > { %v300_v27 = vpop.f32.mrf.mxu2  ;;  %v335_v28 = vadd.f32 %v511_v20, %v327_v25 }
  0xa3   : > { %339 = vst.msk [vmem:[%s242_s30] sm:$0xff] %vm338_vm1, %v334_v26  ;;  %v324_v29 = vmul.f32 2.0, %v300_v27  ;;  %v303_v30 = vpop.f32.mrf.mxu3 }
  0xa4   : > { %v325_v32 = vmul.f32 2.0, %v303_v30  ;;  %340 = vst.msk [vmem:[%s242_s30 + $0x8] sm:$0xff] %vm338_vm1, %v335_v28 }
  0xa5   : > { %v328_v33 = vsub.f32 %v324_v29, %v318_v17 }
  0xa6   : > { %v329_v34 = vsub.f32 %v325_v32, %v321_v31 }
  0xa7   : > { %v336_v35 = vadd.f32 %v511_v20, %v328_v33 }
  0xa8   : > { %v337_v36 = vadd.f32 %v511_v20, %v329_v34 }
  0xa9   : > { %341 = vst.msk [vmem:[%s242_s30 + $0x10] sm:$0xff] %vm338_vm1, %v336_v35 }
  0xaa   : > { %342 = vst.msk [vmem:[%s242_s30 + $0x18] sm:$0xff] %vm338_vm1, %v337_v36 }
  0xab PF: > { %s13_s14 = sadd.s32 1, %s534_s14   ;;  %s641_s12 = smov %s530_s13 }
  0xac   : > { %p10_p5 = scmp.ge.s32.totalorder %s13_s14, 4   ;;  %s642_s13 = smov %s644_s15 }
  0xae   :  { %12 = sbr.rel (!%p10_p5) target bundleno = 2 (0x2), region = 68 }

// kernel: point_manifold_nnml_forward.11
= control target key start
LH: loop header
LB: loop body
LE: loop exit
PB: predicated region body
PF: predicated region fallthrough
CT: control target
= control target key end

     0   :  { %vm74_vm0 = vcmask 1043456   ;;  %vm75_vm1 = vcmask 1044480   ;;  %v692_v2 = vmov 65535   ;;  %vm61_vm2 = vcmask 72704   ;;  %s1082_s2 = inlined_call_operand.vmem [shape: bf16[9,64], index: 2, kind: input, shape index: {}]   ;;  %s1083_s3 = inlined_call_operand.vmem [shape: bf16[9,64], index: 3, kind: input, shape index: {}]   ;;  %s1084_s1 = inlined_call_operand.vmem [shape: bf16[64,9], index: 1, kind: input, shape index: {}]   ;;  %s1085_s0 = inlined_call_operand.vmem [shape: bf16[256,9], index: 0, kind: input, shape index: {}]   ;;  %s1086_s4 = inlined_call_operand.vmem [shape: f32[1,64], index: 4, kind: input, shape index: {}]   ;;  %s1087_s5 = inlined_call_operand.vmem [shape: f32[1,64], index: 5, kind: input, shape index: {}]   ;;  %s1088_s6 = inlined_call_operand.vmem [shape: f32[64,64], index: 6, kind: output, shape index: {}]  }
   0x1   :  { %v574_v0 = vld [vmem:[%s1083_s3] sm:$0xf]  ;;  %v668_v1 = vld [vmem:[%s1083_s3] sm:$0x10]  ;;  %v76_v3 = vsel %vm74_vm0, 4294967295, %v692_v2  ;;  %v670_v12 = vld [vmem:[%s1085_s0 + $0x8] sm:$0xff] }
   0x2   :  { %v575_v4 = vor.u32 %v668_v1, %v574_v0  ;;  %v77_v5 = vsel %vm75_vm1, %v76_v3, 0  ;;  %v646_v6 = vld [vmem:[%s1082_s2] sm:$0xf]  ;;  %v685_v7 = vld [vmem:[%s1082_s2] sm:$0x10]  ;;  %v675_v13 = vld [vmem:[%s1085_s0 + $0x30] sm:$0xff] }
   0x3   :  { %v647_v8 = vor.u32 %v685_v7, %v646_v6  ;;  %v664_v11 = vld [vmem:[%s1084_s1] sm:$0xff]  ;;  %v680_v14 = vld [vmem:[%s1085_s0 + $0x58] sm:$0xff]  ;;  %v665_v15 = vld [vmem:[%s1084_s1 + $0x8] sm:$0xff]  ;;  %vm543_vm3 = vcmask 523264  }
   0x4   :  { %v79_v9 = vand.u32 %v575_v4, %v77_v5  ;;  %v671_v16 = vld [vmem:[%s1085_s0 + $0x10] sm:$0xff]  ;;  %v676_v17 = vld [vmem:[%s1085_s0 + $0x38] sm:$0xff]  ;;  %v681_v18 = vld [vmem:[%s1085_s0 + $0x60] sm:$0xff] }
   0x5   :  { %v300_v10 = vand.u32 %v647_v8, %v77_v5  ;;  %v666_v19 = vld [vmem:[%s1084_s1 + $0x10] sm:$0xff]  ;;  %v672_v20 = vld [vmem:[%s1085_s0 + $0x18] sm:$0xff]  ;;  %v677_v21 = vld [vmem:[%s1085_s0 + $0x40] sm:$0xff] }
   0x6   :  { %88 = vmatpush.bf16.msra.mxu0 %v79_v9  ;;  %v682_v22 = vld [vmem:[%s1085_s0 + $0x68] sm:$0xff]  ;;  %v667_v23 = vld [vmem:[%s1084_s1 + $0x18] sm:$0xff]  ;;  %v673_v24 = vld [vmem:[%s1085_s0 + $0x20] sm:$0xff] }
   0x7   :  { %686 = vmatpush.bf16.msra.mxu1 %v300_v10  ;;  %687 = vmatpush.bf16.msra.mxu2 %v300_v10  ;;  %v678_v25 = vld [vmem:[%s1085_s0 + $0x48] sm:$0xff]  ;;  %v683_v26 = vld [vmem:[%s1085_s0 + $0x70] sm:$0xff]  ;;  %v669_v27 = vld [vmem:[%s1085_s0] sm:$0xff] }
   0x8   :  { %688 = vmatpush.bf16.msra.mxu3 %v300_v10  ;;  %v674_v28 = vld [vmem:[%s1085_s0 + $0x28] sm:$0xff]  ;;  %v679_v29 = vld [vmem:[%s1085_s0 + $0x50] sm:$0xff]  ;;  %v684_v30 = vld [vmem:[%s1085_s0 + $0x78] sm:$0xff] }
   0x9   :  { %576 = vmatmul.msk.bf16.vlgmr.msra.gmra.mxu0 %vm61_vm2, %v664_v11  ;;  %v823_v49 = vld [vmem:[%s1086_s4] ss:$0 sm:$0xff] }
   0xa   :  { %309 = vmatpush.bf16.msrb.mxu0 %v300_v10  ;;  %649 = vmatmul.msk.bf16.vlgmr.msra.gmra.mxu1 %vm61_vm2, %v670_v12  ;;  %v829_v54 = vld [vmem:[%s1087_s5] ss:$0 sm:$0xff] }
   0xb   :  { %654 = vmatmul.msk.bf16.vlgmr.msra.gmra.mxu2 %vm61_vm2, %v675_v13  ;;  %659 = vmatmul.msk.bf16.vlgmr.msra.gmra.mxu3 %vm61_vm2, %v680_v14 }
  0x19   :  { %577 = vmatmul.msk.bf16.gmra.mxu0 %vm61_vm2, %v665_v15 }
  0x1a   :  { %650 = vmatmul.msk.bf16.gmra.mxu1 %vm61_vm2, %v671_v16 }
  0x1b   :  { %655 = vmatmul.msk.bf16.gmra.mxu2 %vm61_vm2, %v676_v17  ;;  %660 = vmatmul.msk.bf16.gmra.mxu3 %vm61_vm2, %v681_v18 }
  0x29   :  { %578 = vmatmul.msk.bf16.gmra.mxu0 %vm61_vm2, %v666_v19 }
  0x2a   :  { %651 = vmatmul.msk.bf16.gmra.mxu1 %vm61_vm2, %v672_v20 }
  0x2b   :  { %656 = vmatmul.msk.bf16.gmra.mxu2 %vm61_vm2, %v677_v21  ;;  %661 = vmatmul.msk.bf16.gmra.mxu3 %vm61_vm2, %v682_v22 }
  0x39   :  { %579 = vmatmul.msk.bf16.gmra.mxu0 %vm61_vm2, %v667_v23 }
  0x3a   :  { %652 = vmatmul.msk.bf16.gmra.mxu1 %vm61_vm2, %v673_v24 }
  0x3b   :  { %657 = vmatmul.msk.bf16.gmra.mxu2 %vm61_vm2, %v678_v25  ;;  %662 = vmatmul.msk.bf16.gmra.mxu3 %vm61_vm2, %v683_v26 }
  0x49   :  { %648 = vmatmul.msk.bf16.vlgmr.msrb.gmra.mxu0 %vm61_vm2, %v669_v27 }
  0x4a   :  { %653 = vmatmul.msk.bf16.gmra.mxu1 %vm61_vm2, %v674_v28 }
  0x4b   :  { %658 = vmatmul.msk.bf16.gmra.mxu2 %vm61_vm2, %v679_v29  ;;  %663 = vmatmul.msk.bf16.gmra.mxu3 %vm61_vm2, %v684_v30 }
  0x86   :  { %v90_v31 = vpop.f32.mrf.mxu0 }
  0x87   :  { %v316_v32 = vpop.f32.mrf.mxu1  ;;  %v113_v57 = vmul.f32 %v823_v49, %v90_v31 }
  0x88   :  { %v393_v61 = vmul.f32 %v823_v49, %v316_v32 }
  0x89   :  { %v845_v63 = vadd.f32 %v829_v54, %v113_v57 }
  0x8e   :  { %v341_v33 = vpop.f32.mrf.mxu2  ;;  %v366_v34 = vpop.f32.mrf.mxu3 }
  0x8f   :  { %v92_v35 = vpop.f32.mrf.mxu0  ;;  %v318_v36 = vpop.f32.mrf.mxu1  ;;  %v427_v4 = vmul.f32 %v823_v49, %v341_v33  ;;  %v469_v19 = vmul.f32 %v823_v49, %v366_v34 }
  0x90   :  { %v394_v1 = vmul.f32 %v823_v49, %v318_v36  ;;  %v114_v5 = vmul.f32 %v823_v49, %v92_v35 }
  0x92   :  { %v874_v20 = vadd.f32 %v829_v54, %v114_v5 }
  0x96   :  { %v343_v37 = vpop.f32.mrf.mxu2  ;;  %v368_v38 = vpop.f32.mrf.mxu3 }
  0x97   :  { %v95_v39 = vpop.f32.mrf.mxu0  ;;  %v321_v40 = vpop.f32.mrf.mxu1  ;;  %v428_v23 = vmul.f32 %v823_v49, %v343_v37  ;;  %v893_v31 = vmul.f32 %v823_v49, %v368_v38 }
  0x98   :  { %v115_v50 = vmul.f32 %v823_v49, %v95_v39  ;;  %v395_v6 = vmul.f32 %v823_v49, %v321_v40 }
  0x9a   :  { %v837_v59 = vadd.f32 %v829_v54, %v115_v50 }
  0x9c   :  { %v852_v3 = vadd.f32 %v393_v61, %v837_v59 }
  0x9e   :  { %v346_v41 = vpop.f32.mrf.mxu2  ;;  %v371_v42 = vpop.f32.mrf.mxu3  ;;  %v870_v18 = vmul.f32 0.2, %v852_v3 }
  0x9f   :  { %v97_v43 = vpop.f32.mrf.mxu0  ;;  %v323_v44 = vpop.f32.mrf.mxu1  ;;  %v503_v60 = vmul.f32 %v823_v49, %v371_v42  ;;  %v429_v24 = vmul.f32 %v823_v49, %v346_v41 }
  0xa0   :  { %v116_v55 = vmul.f32 %v823_v49, %v97_v43  ;;  %v417_v35 = vmax.f32 %v852_v3, %v870_v18  ;;  %v396_v37 = vmul.f32 %v823_v49, %v323_v44 }
  0xa1   :  { %v858_v7 = vadd.f32 %v503_v60, %v845_v63 }
  0xa2   :  { %v842_v62 = vadd.f32 %v829_v54, %v116_v55 }
  0xa3   :  { %v877_v21 = vmul.f32 0.2, %v858_v7 }
  0xa4   :  { %v862_v12 = vadd.f32 %v394_v1, %v842_v62 }
  0xa5   :  { %v527_v36 = vmax.f32 %v858_v7, %v877_v21 }
  0xa6   :  { %v348_v45 = vpop.f32.mrf.mxu2  ;;  %v373_v46 = vpop.f32.mrf.mxu3  ;;  %v886_v26 = vmul.f32 0.2, %v862_v12 }
  0xa7   :  { %v100_v47 = vpop.f32.mrf.mxu0  ;;  %v326_v48 = vpop.f32.mrf.mxu1  ;;  %v504_v16 = vmul.f32 %v823_v49, %v373_v46  ;;  %v430_v42 = vmul.f32 %v823_v49, %v348_v45 }
  0xa8   :  { %v117_v58 = vmul.f32 %v823_v49, %v100_v47  ;;  %v397_v25 = vmul.f32 %v823_v49, %v326_v48  ;;  %v418_v48 = vmax.f32 %v862_v12, %v886_v26 }
  0xa9   :  { %v896_v32 = vadd.f32 %v504_v16, %v874_v20 }
  0xaa   :  { %v848_v0 = vadd.f32 %v829_v54, %v117_v58 }
  0xac   :  { %v403_v13 = vadd.f32 %v395_v6, %v848_v0  ;;  %v435_v14 = vadd.f32 %v427_v4, %v848_v0 }
  0xae   :  { %v351_v51 = vpop.f32.mrf.mxu2  ;;  %v376_v52 = vpop.f32.mrf.mxu3  ;;  %v411_v29 = vmul.f32 0.2, %v403_v13  ;;  %v443_v30 = vmul.f32 0.2, %v435_v14 }
  0xaf   :  { %v102_v53 = vpop.f32.mrf.mxu0  ;;  %v832_v56 = vpop.f32.mrf.mxu1  ;;  %v463_v17 = vmul.f32 %v823_v49, %v351_v51  ;;  %v505_v27 = vmul.f32 %v823_v49, %v376_v52 }
  0xb0   :  { %v118_v15 = vmul.f32 %v823_v49, %v102_v53  ;;  %v419_v51 = vmax.f32 %v403_v13, %v411_v29  ;;  %v451_v52 = vmax.f32 %v435_v14, %v443_v30  ;;  %v920_v53 = vmul.f32 0.2, %v896_v32 }
  0xb1   :  { %v899_v33 = vadd.f32 %v463_v17, %v845_v63  ;;  %v914_v50 = vadd.f32 %v505_v27, %v837_v59 }
  0xb2   :  { %v890_v28 = vadd.f32 %v829_v54, %v118_v15 }
  0xb3   :  { %v923_v45 = vmul.f32 0.2, %v899_v33 }
  0xb4   :  { %v917_v44 = vadd.f32 %v396_v37, %v890_v28  ;;  %v926_v55 = vadd.f32 %v428_v23, %v890_v28 }
  0xb6   :  { %v353_v2 = vpop.f32.mrf.mxu2  ;;  %v378_v8 = vpop.f32.mrf.mxu3  ;;  %v954_v16 = vmul.f32 0.2, %v926_v55 }
  0xb7   :  { %v105_v9 = vpop.f32.mrf.mxu0  ;;  %v331_v11 = vpop.f32.mrf.mxu1  ;;  %v464_v43 = vmul.f32 %v823_v49, %v353_v2  ;;  %v506_v58 = vmul.f32 %v823_v49, %v378_v8  ;;  %v398_v2 = vmul.f32 %v823_v49, %v832_v56  ;;  %v942_v8 = vmax.f32 %v419_v51, %v451_v52 }
  0xb8   :  { %v119_v10 = vmul.f32 %v823_v49, %v105_v9  ;;  %v423_v46 = vmul.f32 %v823_v49, %v331_v11  ;;  %v939_v9 = vmul.f32 0.2, %v914_v50  ;;  %v945_v11 = vmul.f32 0.2, %v917_v44 }
  0xb9   :  { %v934_v4 = vadd.f32 %v464_v43, %v874_v20  ;;  %v487_v56 = vmax.f32 %v899_v33, %v923_v45  ;;  %v957_v17 = vadd.f32 %v506_v58, %v842_v62 }
  0xba   :  { %v880_v22 = vadd.f32 %v829_v54, %v119_v10  ;;  %v431_v5 = vadd.f32 %v423_v46, %v845_v63 }
  0xbb   :  { %v963_v29 = vmul.f32 0.2, %v934_v4  ;;  %v982_v51 = vmul.f32 0.2, %v957_v17 }
  0xbc   :  { %v405_v39 = vadd.f32 %v397_v25, %v880_v22  ;;  %v437_v38 = vadd.f32 %v429_v24, %v880_v22  ;;  %v477_v10 = vadd.f32 %v469_v19, %v880_v22  ;;  %v439_v30 = vmul.f32 0.2, %v431_v5 }
  0xbd   :  { %v530_v12 = vmax.f32 %v957_v17, %v982_v51 }
  0xbe   :  { %v356_v34 = vpop.f32.mrf.mxu2  ;;  %v381_v40 = vpop.f32.mrf.mxu3  ;;  %v413_v60 = vmul.f32 0.2, %v405_v39  ;;  %v445_v61 = vmul.f32 0.2, %v437_v38  ;;  %v485_v43 = vmul.f32 0.2, %v477_v10  ;;  %v447_v58 = vmax.f32 %v431_v5, %v439_v30 }
  0xbf   :  { %v107_v41 = vpop.f32.mrf.mxu0  ;;  %v333_v47 = vpop.f32.mrf.mxu1  ;;  %v465_v57 = vmul.f32 %v823_v49, %v356_v34  ;;  %v507_v1 = vmul.f32 %v823_v49, %v381_v40  ;;  %v529_v40 = vmax.f32 %v914_v50, %v939_v9 }
  0xc0   :  { %v120_v6 = vmul.f32 %v823_v49, %v107_v41  ;;  %v424_v14 = vmul.f32 %v823_v49, %v333_v47  ;;  %v421_v25 = vmax.f32 %v405_v39, %v413_v60  ;;  %v453_v27 = vmax.f32 %v437_v38, %v445_v61 }
  0xc1   :  { %v950_v13 = vadd.f32 %v465_v57, %v837_v59  ;;  %v960_v19 = vadd.f32 %v507_v1, %v848_v0  ;;  %v420_v39 = vmax.f32 %v917_v44, %v945_v11  ;;  %v452_v47 = vmax.f32 %v926_v55, %v954_v16 }
  0xc2   :  { %v966_v33 = vadd.f32 %v829_v54, %v120_v6  ;;  %v976_v46 = vadd.f32 %v424_v14, %v874_v20  ;;  %v461_v45 = vmax.f32 %v421_v25, %v453_v27  ;;  %v488_v57 = vmax.f32 %v934_v4, %v963_v29 }
  0xc3   :  { %v481_v38 = vmul.f32 0.2, %v950_v13  ;;  %v985_v50 = vmul.f32 0.2, %v960_v19  ;;  %v493_v9 = vmax.f32 %v477_v10, %v485_v43  ;;  %v460_v17 = vmax.f32 %v420_v39, %v452_v47 }
  0xc4   :  { %v991_v60 = vadd.f32 %v398_v2, %v966_v33  ;;  %v994_v61 = vadd.f32 %v430_v42, %v966_v33 }
  0xc5   :  { %v489_v14 = vmax.f32 %v950_v13, %v481_v38  ;;  %v531_v2 = vmax.f32 %v960_v19, %v985_v50 }
  0xc6   :  { %v358_v15 = vpop.f32.mrf.mxu2  ;;  %v383_v23 = vpop.f32.mrf.mxu3  ;;  %v414_v10 = vmul.f32 0.2, %v991_v60  ;;  %v446_v50 = vmul.f32 0.2, %v994_v61 }
  0xc7   :  { %v311_v24 = vpop.f32.mrf.mxu0  ;;  %v336_v37 = vpop.f32.mrf.mxu1  ;;  %v466_v1 = vmul.f32 %v823_v49, %v358_v15  ;;  %v501_v15 = vmax.f32 %v461_v45, %v493_v9 }
  0xc8   :  { %v391_v34 = vmul.f32 %v823_v49, %v311_v24  ;;  %v425_v41 = vmul.f32 %v823_v49, %v336_v37  ;;  %v440_v24 = vmul.f32 0.2, %v976_v46 }
  0xc9   :  { %v474_v43 = vadd.f32 %v466_v1, %v842_v62 }
  0xca   :  { %v399_v54 = vadd.f32 %v391_v34, %v845_v63  ;;  %v433_v52 = vadd.f32 %v425_v41, %v837_v59  ;;  %v1000_v59 = vadd.f32 %v893_v31, %v966_v33  ;;  %v448_v3 = vmax.f32 %v976_v46, %v440_v24 }
  0xcb   :  { %v422_v46 = vmax.f32 %v991_v60, %v414_v10 }
  0xcc   :  { %v407_v63 = vmul.f32 0.2, %v399_v54  ;;  %v441_v6 = vmul.f32 0.2, %v433_v52 }
  0xce   :  { %v415_v5 = vmax.f32 %v399_v54, %v407_v63  ;;  %v361_v25 = vpop.f32.mrf.mxu2  ;;  %v449_v27 = vmax.f32 %v433_v52, %v441_v6  ;;  %v386_v30 = vpop.f32.mrf.mxu3  ;;  %v508_v63 = vmul.f32 %v823_v49, %v383_v23 }
  0xcf   :  { %v467_v42 = vmul.f32 %v823_v49, %v361_v25  ;;  %v313_v34 = vpop.f32.mrf.mxu0  ;;  %v509_v37 = vmul.f32 %v823_v49, %v386_v30  ;;  %v338_v41 = vpop.f32.mrf.mxu1  ;;  %v486_v30 = vmul.f32 0.2, %v1000_v59 }
  0xd0   :  { %v455_v13 = vmax.f32 %v415_v5, %v447_v58  ;;  %v392_v31 = vmul.f32 %v823_v49, %v313_v34  ;;  %v457_v19 = vmax.f32 %v417_v35, %v449_v27  ;;  %v426_v54 = vmul.f32 %v823_v49, %v338_v41 }
  0xd1   :  { %v475_v38 = vadd.f32 %v467_v42, %v848_v0  ;;  %v517_v45 = vadd.f32 %v509_v37, %v880_v22  ;;  %v482_v5 = vmul.f32 0.2, %v474_v43  ;;  %v516_v7 = vadd.f32 %v508_v63, %v890_v28 }
  0xd2   :  { %v495_v52 = vmax.f32 %v455_v13, %v487_v56  ;;  %v400_v58 = vadd.f32 %v392_v31, %v874_v20  ;;  %v497_v6 = vmax.f32 %v457_v19, %v489_v14  ;;  %v434_v1 = vadd.f32 %v426_v54, %v842_v62 }
  0xd3   :  { %v483_v9 = vmul.f32 0.2, %v475_v38  ;;  %v525_v18 = vmul.f32 0.2, %v517_v45  ;;  %v454_v14 = vmax.f32 %v994_v61, %v446_v50  ;;  %v490_v61 = vmax.f32 %v474_v43, %v482_v5 }
  0xd4   :  { %v535_v0 = vmax.f32 %v495_v52, %v527_v36  ;;  %v408_v35 = vmul.f32 0.2, %v400_v58  ;;  %v537_v56 = vmax.f32 %v497_v6, %v529_v40  ;;  %v442_v22 = vmul.f32 0.2, %v434_v1 }
  0xd5   :  { %v491_v25 = vmax.f32 %v475_v38, %v483_v9  ;;  %v533_v20 = vmax.f32 %v517_v45, %v525_v18  ;;  %v524_v26 = vmul.f32 0.2, %v516_v7 }
  0xd6   :  { %544 = vst.msk [vmem:[%s1088_s6] sm:$0xff] %vm543_vm3, %v535_v0  ;;  %v416_v23 = vmax.f32 %v400_v58, %v408_v35  ;;  %v363_v62 = vpop.f32.mrf.mxu2  ;;  %v450_v36 = vmax.f32 %v434_v1, %v442_v22  ;;  %v388_v24 = vpop.f32.mrf.mxu3 }
  0xd7   :  { %546 = vst.msk [vmem:[%s1088_s6 + $0x10] sm:$0xff] %vm543_vm3, %v537_v56  ;;  %v499_v21 = vmax.f32 %v942_v8, %v491_v25  ;;  %v468_v40 = vmul.f32 %v823_v49, %v363_v62  ;;  %v541_v27 = vmax.f32 %v501_v15, %v533_v20  ;;  %v510_v60 = vmul.f32 %v823_v49, %v388_v24 }
  0xd8   :  { %v456_v42 = vmax.f32 %v416_v23, %v448_v3  ;;  %v458_v10 = vmax.f32 %v418_v48, %v450_v36  ;;  %v528_v8 = vmax.f32 %v896_v32, %v920_v53  ;;  %v462_v15 = vmax.f32 %v422_v46, %v454_v14 }
  0xd9   :  { %v539_v34 = vmax.f32 %v499_v21, %v531_v2  ;;  %v476_v13 = vadd.f32 %v468_v40, %v890_v28  ;;  %550 = vst.msk [vmem:[%s1088_s6 + $0x30] sm:$0xff] %vm543_vm3, %v541_v27  ;;  %v518_v2 = vadd.f32 %v510_v60, %v966_v33  ;;  %v494_v53 = vmax.f32 %v1000_v59, %v486_v30 }
  0xda   :  { %v496_v49 = vmax.f32 %v456_v42, %v488_v57  ;;  %v498_v28 = vmax.f32 %v458_v10, %v490_v61  ;;  %v532_v57 = vmax.f32 %v516_v7, %v524_v26 }
  0xdb   :  { %548 = vst.msk [vmem:[%s1088_s6 + $0x20] sm:$0xff] %vm543_vm3, %v539_v34  ;;  %v484_v32 = vmul.f32 0.2, %v476_v13  ;;  %v526_v37 = vmul.f32 0.2, %v518_v2  ;;  %v502_v33 = vmax.f32 %v462_v15, %v494_v53 }
  0xdc   :  { %v536_v48 = vmax.f32 %v496_v49, %v528_v8  ;;  %v538_v4 = vmax.f32 %v498_v28, %v530_v12 }
  0xdd   :  { %v492_v29 = vmax.f32 %v476_v13, %v484_v32  ;;  %v534_v51 = vmax.f32 %v518_v2, %v526_v37 }
  0xde   :  { %545 = vst.msk [vmem:[%s1088_s6 + $0x8] sm:$0xff] %vm543_vm3, %v536_v48 }
  0xdf   :  { %547 = vst.msk [vmem:[%s1088_s6 + $0x18] sm:$0xff] %vm543_vm3, %v538_v4  ;;  %v500_v59 = vmax.f32 %v460_v17, %v492_v29  ;;  %v542_v55 = vmax.f32 %v502_v33, %v534_v51 }
  0xe1   :  { %v540_v16 = vmax.f32 %v500_v59, %v532_v57  ;;  %551 = vst.msk [vmem:[%s1088_s6 + $0x38] sm:$0xff] %vm543_vm3, %v542_v55 }
  0xe3   :  { %549 = vst.msk [vmem:[%s1088_s6 + $0x28] sm:$0xff] %vm543_vm3, %v540_v16 }

// kernel: point_manifold_nnml_forward.12
= control target key start
LH: loop header
LB: loop body
LE: loop exit
PB: predicated region body
PF: predicated region fallthrough
CT: control target
= control target key end

     0   :  { %s556_s12 = smov 0   ;;  %s558_s13 = smov 0   ;;  %s637_s0 = inlined_call_operand.vmem [shape: f32[2,32,64], index: 0, kind: input, shape index: {}, may-alias: {0,1}]   ;;  %s638_s1 = inlined_call_operand.vmem [shape: f32[2,32,64], index: 1, kind: input, shape index: {}, may-alias: {0,1}]   ;;  %s639_s2 = inlined_call_operand.vmem [shape: f32[2,1,32], index: 2, kind: input, shape index: {}]   ;;  %s640_s3 = inlined_call_operand.vmem [shape: f32[2,32,32], index: 3, kind: output, shape index: {}]  }
   0x1   :  { %s560_s14 = smov 0  }
   0x2 LB: > { %s25_s15 = sadd.s32 1, %s530_s13  ;;  %p455_p0 = scmp.ge.s32.totalorder %s534_s14, 1  ;;  %s534_s14 = sphi %s560_s14, %s13_s14   ;;  %s530_s13 = sphi %s558_s13, %s642_s13   ;;  %s526_s12 = sphi %s556_s12, %s641_s12  }
   0x3   : > { %p27_p1 = scmp.ge.s32.totalorder %s25_s15, 2  ;;  %p176_p2 = scmp.lt.s32.totalorder %s534_s14, 3 }
   0x5   : > { %s644_s15 = smov (%p27_p1, %s25_s15), 0  ;;  %p177_p3 = pnand %p455_p0, %p176_p2 }
   0x6   : > { %p217_p4 = scmp.lt.s32.totalorder (!%p177_p3), %s526_s12, 1 }
   0x7   : > { %180 = sbr.rel (%p177_p3) target bundleno = 171 (0xab), region = 32 }
   0xc   : > { %s646_s12 = smov (!%p217_p4, %s526_s12), 1  ;;  %vm252_vm0 = vcmask 523264   ;;  %vm338_vm1 = vcmask 261120  }
   0xd   : > { %s577_s16 = sshll.u32 %s646_s12, 5  ;;  %s233_s19 = scalar_lea.vmem %s639_s2, %s646_s12 }
   0xe   : > { %s230_s22 = scalar_lea.vmem %s638_s1, %s577_s16  ;;  %s224_s25 = scalar_lea.vmem %s637_s0, %s577_s16  ;;  %v511_v20 = vld [vmem:[%s233_s19] ss:$0 sm:$0xff] }
   0xf   : > { %v251_v0 = vld [vmem:[%s230_s22 + $0x18] sm:$0xff]  ;;  %v244_v1 = vld [vmem:[%s224_s25] sm:$0xff]  ;;  %v246_v2 = vld [vmem:[%s224_s25 + $0x10] sm:$0xff]  ;;  %s242_s30 = scalar_lea.vmem %s640_s3, %s577_s16 }
  0x10   : > { %462 = vmatpush.xpose.msk.msra.mxu0 %vm252_vm0, %v251_v0  ;;  %476 = vmatpush.xpose.msk.msra.mxu2 %vm252_vm0, %v251_v0  ;;  %v250_v3 = vld [vmem:[%s230_s22 + $0x10] sm:$0xff]  ;;  %v308_v4 = vmul.f32 %v246_v2, %v246_v2  ;;  %v306_v5 = vmul.f32 %v244_v1, %v244_v1  ;;  %v249_v8 = vld [vmem:[%s230_s22 + $0x8] sm:$0xff]  ;;  %v247_v9 = vld [vmem:[%s224_s25 + $0x18] sm:$0xff] }
  0x11   : > { %477 = vmatpush.xpose.msk.msra.mxu3 %vm252_vm0, %v251_v0  ;;  %475 = vmatpush.xpose.msk.msra.mxu1 %vm252_vm0, %v251_v0  ;;  %v245_v10 = vld [vmem:[%s224_s25 + $0x8] sm:$0xff]  ;;  %v309_v11 = vmul.f32 %v247_v9, %v247_v9  ;;  %v248_v13 = vld [vmem:[%s230_s22] sm:$0xff] }
  0x12   : > { %v316_v6 = vsel %vm252_vm0, %v308_v4, 0.0  ;;  %v310_v7 = vsel %vm252_vm0, %v306_v5, 0.0  ;;  %v307_v12 = vmul.f32 %v245_v10, %v245_v10 }
  0x13   : > { %317 = vadd.xlane.f32.xlu1 %v316_v6  ;;  %311 = vadd.xlane.f32.xlu0 %v310_v7  ;;  %v319_v14 = vsel %vm252_vm0, %v309_v11, 0.0 }
  0x14   : > { %463 = vmatpush.xpose.msk.msra.mxu0 %vm252_vm0, %v250_v3  ;;  %479 = vmatpush.xpose.msk.msra.mxu2 %vm252_vm0, %v250_v3  ;;  %v313_v15 = vsel %vm252_vm0, %v307_v12, 0.0 }
  0x15   : > { %480 = vmatpush.xpose.msk.msra.mxu3 %vm252_vm0, %v250_v3  ;;  %478 = vmatpush.xpose.msk.msra.mxu1 %vm252_vm0, %v250_v3 }
  0x18   : > { %464 = vmatpush.xpose.msk.msra.mxu0 %vm252_vm0, %v249_v8  ;;  %482 = vmatpush.xpose.msk.msra.mxu2 %vm252_vm0, %v249_v8 }
  0x19   : > { %483 = vmatpush.xpose.msk.msra.mxu3 %vm252_vm0, %v249_v8  ;;  %481 = vmatpush.xpose.msk.msra.mxu1 %vm252_vm0, %v249_v8 }
  0x1b   : > { %320 = vadd.xlane.f32.xlu1 %v319_v14  ;;  %314 = vadd.xlane.f32.xlu0 %v313_v15 }
  0x1c   : > { %465 = vmatpush.xpose.msk.msra.mxu0 %vm252_vm0, %v248_v13  ;;  %485 = vmatpush.xpose.msk.msra.mxu2 %vm252_vm0, %v248_v13 }
  0x1d   : > { %486 = vmatpush.xpose.msk.msra.mxu3 %vm252_vm0, %v248_v13  ;;  %484 = vmatpush.xpose.msk.msra.mxu1 %vm252_vm0, %v248_v13 }
  0x1f   : > { %466 = vmatmul.msk.f32.vlgmr.msra.gmra.mxu0 %vm252_vm0, %v244_v1  ;;  %468 = vmatmul.msk.f32.vlgmr.msra.gmra.mxu2 %vm252_vm0, %v246_v2 }
  0x20   : > { %469 = vmatmul.msk.f32.vlgmr.msra.gmra.mxu3 %vm252_vm0, %v247_v9  ;;  %467 = vmatmul.msk.f32.vlgmr.msra.gmra.mxu1 %vm252_vm0, %v245_v10 }
  0x86   : > { %v312_v16 = vpop.xlane.xlu0 %311  ;;  %v318_v17 = vpop.xlane.xlu1 %317 }
  0x8e   : > { %v315_v22 = vpop.xlane.xlu0 %314  ;;  %v321_v31 = vpop.xlane.xlu1 %320 }
  0x9c   : > { %v294_v18 = vpop.f32.mrf.mxu0 }
  0x9d   : > { %v322_v19 = vmul.f32 2.0, %v294_v18  ;;  %v297_v21 = vpop.f32.mrf.mxu1 }
  0x9e   : > { %v323_v23 = vmul.f32 2.0, %v297_v21 }
  0x9f   : > { %v326_v24 = vsub.f32 %v322_v19, %v312_v16 }
  0xa0   : > { %v327_v25 = vsub.f32 %v323_v23, %v315_v22 }
  0xa1   : > { %v334_v26 = vadd.f32 %v511_v20, %v326_v24 }
  0xa2   : > { %v300_v27 = vpop.f32.mrf.mxu2  ;;  %v335_v28 = vadd.f32 %v511_v20, %v327_v25 }
  0xa3   : > { %339 = vst.msk [vmem:[%s242_s30] sm:$0xff] %vm338_vm1, %v334_v26  ;;  %v324_v29 = vmul.f32 2.0, %v300_v27  ;;  %v303_v30 = vpop.f32.mrf.mxu3 }
  0xa4   : > { %v325_v32 = vmul.f32 2.0, %v303_v30  ;;  %340 = vst.msk [vmem:[%s242_s30 + $0x8] sm:$0xff] %vm338_vm1, %v335_v28 }
  0xa5   : > { %v328_v33 = vsub.f32 %v324_v29, %v318_v17 }
  0xa6   : > { %v329_v34 = vsub.f32 %v325_v32, %v321_v31 }
  0xa7   : > { %v336_v35 = vadd.f32 %v511_v20, %v328_v33 }
  0xa8   : > { %v337_v36 = vadd.f32 %v511_v20, %v329_v34 }
  0xa9   : > { %341 = vst.msk [vmem:[%s242_s30 + $0x10] sm:$0xff] %vm338_vm1, %v336_v35 }
  0xaa   : > { %342 = vst.msk [vmem:[%s242_s30 + $0x18] sm:$0xff] %vm338_vm1, %v337_v36 }
  0xab PF: > { %s13_s14 = sadd.s32 1, %s534_s14   ;;  %s641_s12 = smov %s530_s13 }
  0xac   : > { %p10_p5 = scmp.ge.s32.totalorder %s13_s14, 4   ;;  %s642_s13 = smov %s644_s15 }
  0xae   :  { %12 = sbr.rel (!%p10_p5) target bundleno = 2 (0x2), region = 68 }

// kernel: point_manifold_nnml_forward.16
= control target key start
LH: loop header
LB: loop body
LE: loop exit
PB: predicated region body
PF: predicated region fallthrough
CT: control target
= control target key end

     0   :  { %s519_s12 = smov 0   ;;  %s521_s13 = smov 0   ;;  %s576_s0 = inlined_call_operand.vmem [shape: f32[2,32,128], index: 0, kind: input, shape index: {}, may-alias: {0,1}]   ;;  %s577_s1 = inlined_call_operand.vmem [shape: f32[2,32,128], index: 1, kind: input, shape index: {}, may-alias: {0,1}]   ;;  %s578_s2 = inlined_call_operand.vmem [shape: f32[2,1,32], index: 2, kind: input, shape index: {}]   ;;  %s579_s3 = inlined_call_operand.vmem [shape: f32[2,32,32], index: 3, kind: output, shape index: {}]  }
   0x1   :  { %s523_s14 = smov 0  }
   0x2 LB: > { %s25_s15 = sadd.s32 1, %s493_s13  ;;  %p426_p0 = scmp.ge.s32.totalorder %s497_s14, 1  ;;  %s497_s14 = sphi %s523_s14, %s13_s14   ;;  %s493_s13 = sphi %s521_s13, %s581_s13   ;;  %s489_s12 = sphi %s519_s12, %s580_s12  }
   0x3   : > { %p27_p1 = scmp.ge.s32.totalorder %s25_s15, 2  ;;  %p176_p2 = scmp.lt.s32.totalorder %s497_s14, 3 }
   0x5   : > { %s583_s15 = smov (%p27_p1, %s25_s15), 0  ;;  %p177_p3 = pnand %p426_p0, %p176_p2 }
   0x6   : > { %p217_p4 = scmp.lt.s32.totalorder (!%p177_p3), %s489_s12, 1 }
   0x7   : > { %180 = sbr.rel (%p177_p3) target bundleno = 171 (0xab), region = 32 }
   0xc   : > { %s585_s12 = smov (!%p217_p4, %s489_s12), 1  ;;  %vm309_vm0 = vcmask 261120  }
   0xd   : > { %s540_s16 = sshll.u32 %s585_s12, 5  ;;  %s233_s19 = scalar_lea.vmem %s578_s2, %s585_s12 }
   0xe   : > { %s230_s22 = scalar_lea.vmem %s577_s1, %s540_s16  ;;  %s224_s25 = scalar_lea.vmem %s576_s0, %s540_s16  ;;  %v474_v16 = vld [vmem:[%s233_s19] ss:$0 sm:$0xff] }
   0xf   : > { %v251_v0 = vld [vmem:[%s230_s22 + $0x18] sm:$0xff]  ;;  %v244_v1 = vld [vmem:[%s224_s25] sm:$0xff]  ;;  %v246_v2 = vld [vmem:[%s224_s25 + $0x10] sm:$0xff]  ;;  %s242_s30 = scalar_lea.vmem %s579_s3, %s540_s16 }
  0x10   : > { %264 = vmatpush.xpose.msra.mxu0 %v251_v0  ;;  %439 = vmatpush.xpose.msra.mxu2 %v251_v0  ;;  %v250_v3 = vld [vmem:[%s230_s22 + $0x10] sm:$0xff]  ;;  %v283_v4 = vmul.f32 %v246_v2, %v246_v2  ;;  %v281_v5 = vmul.f32 %v244_v1, %v244_v1  ;;  %v249_v6 = vld [vmem:[%s230_s22 + $0x8] sm:$0xff]  ;;  %v247_v7 = vld [vmem:[%s224_s25 + $0x18] sm:$0xff] }
  0x11   : > { %440 = vmatpush.xpose.msra.mxu3 %v251_v0  ;;  %438 = vmatpush.xpose.msra.mxu1 %v251_v0  ;;  %v245_v8 = vld [vmem:[%s224_s25 + $0x8] sm:$0xff]  ;;  %v284_v9 = vmul.f32 %v247_v7, %v247_v7  ;;  %v248_v11 = vld [vmem:[%s230_s22] sm:$0xff] }
  0x12   : > { %289 = vadd.xlane.f32.xlu1 %v283_v4  ;;  %285 = vadd.xlane.f32.xlu0 %v281_v5  ;;  %v282_v10 = vmul.f32 %v245_v8, %v245_v8 }
  0x14   : > { %265 = vmatpush.xpose.msra.mxu0 %v250_v3  ;;  %442 = vmatpush.xpose.msra.mxu2 %v250_v3 }
  0x15   : > { %443 = vmatpush.xpose.msra.mxu3 %v250_v3  ;;  %441 = vmatpush.xpose.msra.mxu1 %v250_v3 }
  0x18   : > { %266 = vmatpush.xpose.msra.mxu0 %v249_v6  ;;  %445 = vmatpush.xpose.msra.mxu2 %v249_v6 }
  0x19   : > { %446 = vmatpush.xpose.msra.mxu3 %v249_v6  ;;  %444 = vmatpush.xpose.msra.mxu1 %v249_v6 }
  0x1a   : > { %291 = vadd.xlane.f32.xlu1 %v284_v9  ;;  %287 = vadd.xlane.f32.xlu0 %v282_v10 }
  0x1c   : > { %267 = vmatpush.xpose.msra.mxu0 %v248_v11  ;;  %448 = vmatpush.xpose.msra.mxu2 %v248_v11 }
  0x1d   : > { %449 = vmatpush.xpose.msra.mxu3 %v248_v11  ;;  %447 = vmatpush.xpose.msra.mxu1 %v248_v11 }
  0x1f   : > { %268 = vmatmul.f32.vlgmr.msra.gmra.mxu0 %v244_v1  ;;  %274 = vmatmul.f32.vlgmr.msra.gmra.mxu2 %v246_v2 }
  0x20   : > { %277 = vmatmul.f32.vlgmr.msra.gmra.mxu3 %v247_v7  ;;  %271 = vmatmul.f32.vlgmr.msra.gmra.mxu1 %v245_v8 }
  0x85   : > { %v286_v12 = vpop.xlane.xlu0 %285  ;;  %v290_v13 = vpop.xlane.xlu1 %289 }
  0x8d   : > { %v288_v18 = vpop.xlane.xlu0 %287  ;;  %v292_v27 = vpop.xlane.xlu1 %291 }
  0x9c   : > { %v269_v14 = vpop.f32.mrf.mxu0 }
  0x9d   : > { %v293_v15 = vmul.f32 2.0, %v269_v14  ;;  %v272_v17 = vpop.f32.mrf.mxu1 }
  0x9e   : > { %v294_v19 = vmul.f32 2.0, %v272_v17 }
  0x9f   : > { %v297_v20 = vsub.f32 %v293_v15, %v286_v12 }
  0xa0   : > { %v298_v21 = vsub.f32 %v294_v19, %v288_v18 }
  0xa1   : > { %v305_v22 = vadd.f32 %v474_v16, %v297_v20 }
  0xa2   : > { %v275_v23 = vpop.f32.mrf.mxu2  ;;  %v306_v24 = vadd.f32 %v474_v16, %v298_v21 }
  0xa3   : > { %310 = vst.msk [vmem:[%s242_s30] sm:$0xff] %vm309_vm0, %v305_v22  ;;  %v295_v25 = vmul.f32 2.0, %v275_v23  ;;  %v278_v26 = vpop.f32.mrf.mxu3 }
  0xa4   : > { %v296_v28 = vmul.f32 2.0, %v278_v26  ;;  %311 = vst.msk [vmem:[%s242_s30 + $0x8] sm:$0xff] %vm309_vm0, %v306_v24 }
  0xa5   : > { %v299_v29 = vsub.f32 %v295_v25, %v290_v13 }
  0xa6   : > { %v300_v30 = vsub.f32 %v296_v28, %v292_v27 }
  0xa7   : > { %v307_v31 = vadd.f32 %v474_v16, %v299_v29 }
  0xa8   : > { %v308_v32 = vadd.f32 %v474_v16, %v300_v30 }
  0xa9   : > { %312 = vst.msk [vmem:[%s242_s30 + $0x10] sm:$0xff] %vm309_vm0, %v307_v31 }
  0xaa   : > { %313 = vst.msk [vmem:[%s242_s30 + $0x18] sm:$0xff] %vm309_vm0, %v308_v32 }
  0xab PF: > { %s13_s14 = sadd.s32 1, %s497_s14   ;;  %s580_s12 = smov %s493_s13 }
  0xac   : > { %p10_p5 = scmp.ge.s32.totalorder %s13_s14, 4   ;;  %s581_s13 = smov %s583_s15 }
  0xae   :  { %12 = sbr.rel (!%p10_p5) target bundleno = 2 (0x2), region = 68 }

// kernel: point_manifold_nnml_forward.13
= control target key start
LH: loop header
LB: loop body
LE: loop exit
PB: predicated region body
PF: predicated region fallthrough
CT: control target
= control target key end

     0   :  { %vm86_vm0 = vcmask 523264   ;;  %s1162_s3 = inlined_call_operand.vmem [shape: bf16[64,64], index: 3, kind: input, shape index: {}]   ;;  %s1163_s2 = inlined_call_operand.vmem [shape: bf16[64,64], index: 2, kind: input, shape index: {}]   ;;  %s1164_s4 = inlined_call_operand.vmem [shape: f32[1,64], index: 4, kind: input, shape index: {}]   ;;  %s1165_s5 = inlined_call_operand.vmem [shape: f32[1,64], index: 5, kind: input, shape index: {}]   ;;  %s1166_s1 = inlined_call_operand.vmem [shape: bf16[64,64], index: 1, kind: input, shape index: {}]   ;;  %s1167_s0 = inlined_call_operand.vmem [shape: bf16[256,64], index: 0, kind: input, shape index: {}]   ;;  %s1168_s6 = inlined_call_operand.vmem [shape: f32[64,64], index: 6, kind: output, shape index: {}]  }
   0x1   :  { %v734_v0 = vld [vmem:[%s1162_s3 + $0x18] sm:$0xff]  ;;  %v733_v2 = vld [vmem:[%s1162_s3 + $0x10] sm:$0xff]  ;;  %v732_v4 = vld [vmem:[%s1162_s3 + $0x8] sm:$0xff] }
   0x2   :  { %v754_v1 = vld [vmem:[%s1163_s2 + $0x18] sm:$0xff]  ;;  %103 = vmatpush.bf16.msra.mxu0 %v734_v0  ;;  %v753_v3 = vld [vmem:[%s1163_s2 + $0x10] sm:$0xff]  ;;  %v752_v5 = vld [vmem:[%s1163_s2 + $0x8] sm:$0xff] }
   0x3   :  { %755 = vmatpush.bf16.msra.mxu1 %v754_v1  ;;  %756 = vmatpush.bf16.msra.mxu2 %v754_v1  ;;  %v731_v6 = vld [vmem:[%s1162_s3] sm:$0xff]  ;;  %v736_v9 = vld [vmem:[%s1167_s0 + $0x8] sm:$0xff]  ;;  %v741_v10 = vld [vmem:[%s1167_s0 + $0x30] sm:$0xff] }
   0x4   :  { %757 = vmatpush.bf16.msra.mxu3 %v754_v1  ;;  %v751_v7 = vld [vmem:[%s1163_s2] sm:$0xff]  ;;  %v746_v11 = vld [vmem:[%s1167_s0 + $0x58] sm:$0xff]  ;;  %v728_v12 = vld [vmem:[%s1166_s1 + $0x8] sm:$0xff] }
   0x5   :  { %v727_v8 = vld [vmem:[%s1166_s1] sm:$0xff]  ;;  %v737_v13 = vld [vmem:[%s1167_s0 + $0x10] sm:$0xff]  ;;  %v742_v14 = vld [vmem:[%s1167_s0 + $0x38] sm:$0xff] }
   0x6   :  { %104 = vmatpush.bf16.msra.mxu0 %v733_v2  ;;  %v747_v15 = vld [vmem:[%s1167_s0 + $0x60] sm:$0xff]  ;;  %v729_v16 = vld [vmem:[%s1166_s1 + $0x10] sm:$0xff]  ;;  %v738_v17 = vld [vmem:[%s1167_s0 + $0x18] sm:$0xff] }
   0x7   :  { %758 = vmatpush.bf16.msra.mxu1 %v753_v3  ;;  %759 = vmatpush.bf16.msra.mxu2 %v753_v3  ;;  %v743_v18 = vld [vmem:[%s1167_s0 + $0x40] sm:$0xff]  ;;  %v748_v19 = vld [vmem:[%s1167_s0 + $0x68] sm:$0xff]  ;;  %v730_v20 = vld [vmem:[%s1166_s1 + $0x18] sm:$0xff] }
   0x8   :  { %760 = vmatpush.bf16.msra.mxu3 %v753_v3  ;;  %v739_v21 = vld [vmem:[%s1167_s0 + $0x20] sm:$0xff]  ;;  %v744_v22 = vld [vmem:[%s1167_s0 + $0x48] sm:$0xff]  ;;  %v749_v23 = vld [vmem:[%s1167_s0 + $0x70] sm:$0xff] }
   0x9   :  { %v735_v24 = vld [vmem:[%s1167_s0] sm:$0xff]  ;;  %v740_v25 = vld [vmem:[%s1167_s0 + $0x28] sm:$0xff]  ;;  %v745_v26 = vld [vmem:[%s1167_s0 + $0x50] sm:$0xff] }
   0xa   :  { %105 = vmatpush.bf16.msra.mxu0 %v732_v4  ;;  %v750_v27 = vld [vmem:[%s1167_s0 + $0x78] sm:$0xff]  ;;  %v911_v46 = vld [vmem:[%s1164_s4] ss:$0 sm:$0xff] }
   0xb   :  { %761 = vmatpush.bf16.msra.mxu1 %v752_v5  ;;  %762 = vmatpush.bf16.msra.mxu2 %v752_v5  ;;  %v922_v55 = vld [vmem:[%s1165_s5] ss:$0 sm:$0xff] }
   0xc   :  { %763 = vmatpush.bf16.msra.mxu3 %v752_v5 }
   0xe   :  { %106 = vmatpush.bf16.msra.mxu0 %v731_v6 }
   0xf   :  { %764 = vmatpush.bf16.msra.mxu1 %v751_v7  ;;  %765 = vmatpush.bf16.msra.mxu2 %v751_v7 }
  0x10   :  { %766 = vmatpush.bf16.msra.mxu3 %v751_v7 }
  0x11   :  { %627 = vmatmul.msk.bf16.vlgmr.msra.gmra.mxu0 %vm86_vm0, %v727_v8 }
  0x12   :  { %346 = vmatpush.bf16.msrb.mxu0 %v754_v1  ;;  %712 = vmatmul.msk.bf16.vlgmr.msra.gmra.mxu1 %vm86_vm0, %v736_v9 }
  0x13   :  { %717 = vmatmul.msk.bf16.vlgmr.msra.gmra.mxu2 %vm86_vm0, %v741_v10  ;;  %722 = vmatmul.msk.bf16.vlgmr.msra.gmra.mxu3 %vm86_vm0, %v746_v11 }
  0x16   :  { %347 = vmatpush.bf16.msrb.mxu0 %v753_v3 }
  0x1a   :  { %348 = vmatpush.bf16.msrb.mxu0 %v752_v5 }
  0x1e   :  { %349 = vmatpush.bf16.msrb.mxu0 %v751_v7 }
  0x21   :  { %628 = vmatmul.msk.bf16.gmra.mxu0 %vm86_vm0, %v728_v12 }
  0x22   :  { %713 = vmatmul.msk.bf16.gmra.mxu1 %vm86_vm0, %v737_v13 }
  0x23   :  { %718 = vmatmul.msk.bf16.gmra.mxu2 %vm86_vm0, %v742_v14  ;;  %723 = vmatmul.msk.bf16.gmra.mxu3 %vm86_vm0, %v747_v15 }
  0x31   :  { %629 = vmatmul.msk.bf16.gmra.mxu0 %vm86_vm0, %v729_v16 }
  0x32   :  { %714 = vmatmul.msk.bf16.gmra.mxu1 %vm86_vm0, %v738_v17 }
  0x33   :  { %719 = vmatmul.msk.bf16.gmra.mxu2 %vm86_vm0, %v743_v18  ;;  %724 = vmatmul.msk.bf16.gmra.mxu3 %vm86_vm0, %v748_v19 }
  0x41   :  { %630 = vmatmul.msk.bf16.gmra.mxu0 %vm86_vm0, %v730_v20 }
  0x42   :  { %715 = vmatmul.msk.bf16.gmra.mxu1 %vm86_vm0, %v739_v21 }
  0x43   :  { %720 = vmatmul.msk.bf16.gmra.mxu2 %vm86_vm0, %v744_v22  ;;  %725 = vmatmul.msk.bf16.gmra.mxu3 %vm86_vm0, %v749_v23 }
  0x51   :  { %711 = vmatmul.msk.bf16.vlgmr.msrb.gmra.mxu0 %vm86_vm0, %v735_v24 }
  0x52   :  { %716 = vmatmul.msk.bf16.gmra.mxu1 %vm86_vm0, %v740_v25 }
  0x53   :  { %721 = vmatmul.msk.bf16.gmra.mxu2 %vm86_vm0, %v745_v26  ;;  %726 = vmatmul.msk.bf16.gmra.mxu3 %vm86_vm0, %v750_v27 }
  0x8e   :  { %v108_v28 = vpop.f32.mrf.mxu0 }
  0x8f   :  { %v356_v29 = vpop.f32.mrf.mxu1  ;;  %v131_v54 = vmul.f32 %v911_v46, %v108_v28 }
  0x90   :  { %v433_v62 = vmul.f32 %v911_v46, %v356_v29 }
  0x91   :  { %v936_v61 = vadd.f32 %v922_v55, %v131_v54 }
  0x96   :  { %v381_v30 = vpop.f32.mrf.mxu2  ;;  %v406_v31 = vpop.f32.mrf.mxu3 }
  0x97   :  { %v110_v32 = vpop.f32.mrf.mxu0  ;;  %v358_v33 = vpop.f32.mrf.mxu1  ;;  %v467_v0 = vmul.f32 %v911_v46, %v381_v30  ;;  %v509_v16 = vmul.f32 %v911_v46, %v406_v31 }
  0x98   :  { %v132_v56 = vmul.f32 %v911_v46, %v110_v32  ;;  %v434_v1 = vmul.f32 %v911_v46, %v358_v33 }
  0x9a   :  { %v944_v5 = vadd.f32 %v922_v55, %v132_v56 }
  0x9e   :  { %v383_v34 = vpop.f32.mrf.mxu2  ;;  %v408_v35 = vpop.f32.mrf.mxu3 }
  0x9f   :  { %v113_v36 = vpop.f32.mrf.mxu0  ;;  %v361_v37 = vpop.f32.mrf.mxu1  ;;  %v468_v27 = vmul.f32 %v911_v46, %v383_v34  ;;  %v981_v28 = vmul.f32 %v911_v46, %v408_v35 }
  0xa0   :  { %v133_v49 = vmul.f32 %v911_v46, %v113_v36  ;;  %v435_v2 = vmul.f32 %v911_v46, %v361_v37 }
  0xa2   :  { %v926_v57 = vadd.f32 %v922_v55, %v133_v49 }
  0xa4   :  { %v950_v9 = vadd.f32 %v433_v62, %v926_v57 }
  0xa6   :  { %v386_v38 = vpop.f32.mrf.mxu2  ;;  %v411_v39 = vpop.f32.mrf.mxu3  ;;  %v973_v22 = vmul.f32 0.2, %v950_v9 }
  0xa7   :  { %v115_v40 = vpop.f32.mrf.mxu0  ;;  %v363_v41 = vpop.f32.mrf.mxu1  ;;  %v543_v58 = vmul.f32 %v911_v46, %v411_v39  ;;  %v469_v19 = vmul.f32 %v911_v46, %v386_v38 }
  0xa8   :  { %v134_v52 = vmul.f32 %v911_v46, %v115_v40  ;;  %v436_v31 = vmul.f32 %v911_v46, %v363_v41  ;;  %v457_v41 = vmax.f32 %v950_v9, %v973_v22 }
  0xa9   :  { %v947_v6 = vadd.f32 %v543_v58, %v936_v61 }
  0xaa   :  { %v930_v59 = vadd.f32 %v922_v55, %v134_v52 }
  0xab   :  { %v969_v20 = vmul.f32 0.2, %v947_v6 }
  0xac   :  { %v956_v13 = vadd.f32 %v434_v1, %v930_v59 }
  0xad   :  { %v567_v35 = vmax.f32 %v947_v6, %v969_v20 }
  0xae   :  { %v388_v42 = vpop.f32.mrf.mxu2  ;;  %v413_v43 = vpop.f32.mrf.mxu3  ;;  %v977_v26 = vmul.f32 0.2, %v956_v13 }
  0xaf   :  { %v118_v44 = vpop.f32.mrf.mxu0  ;;  %v366_v45 = vpop.f32.mrf.mxu1  ;;  %v544_v63 = vmul.f32 %v911_v46, %v413_v43  ;;  %v470_v38 = vmul.f32 %v911_v46, %v388_v42 }
  0xb0   :  { %v135_v53 = vmul.f32 %v911_v46, %v118_v44  ;;  %v437_v23 = vmul.f32 %v911_v46, %v366_v45 }
  0xb1   :  { %v959_v14 = vadd.f32 %v544_v63, %v944_v5 }
  0xb2   :  { %v933_v60 = vadd.f32 %v922_v55, %v135_v53 }
  0xb3   :  { %v984_v29 = vmul.f32 0.2, %v959_v14 }
  0xb4   :  { %v443_v10 = vadd.f32 %v435_v2, %v933_v60  ;;  %v475_v11 = vadd.f32 %v467_v0, %v933_v60 }
  0xb5   :  { %v568_v49 = vmax.f32 %v959_v14, %v984_v29 }
  0xb6   :  { %v391_v47 = vpop.f32.mrf.mxu2  ;;  %v416_v48 = vpop.f32.mrf.mxu3  ;;  %v451_v24 = vmul.f32 0.2, %v443_v10  ;;  %v483_v25 = vmul.f32 0.2, %v475_v11 }
  0xb7   :  { %v120_v50 = vpop.f32.mrf.mxu0  ;;  %v914_v51 = vpop.f32.mrf.mxu1  ;;  %v503_v17 = vmul.f32 %v911_v46, %v391_v47  ;;  %v545_v21 = vmul.f32 %v911_v46, %v416_v48  ;;  %v458_v48 = vmax.f32 %v956_v13, %v977_v26 }
  0xb8   :  { %v136_v15 = vmul.f32 %v911_v46, %v120_v50  ;;  %v459_v45 = vmax.f32 %v443_v10, %v451_v24  ;;  %v491_v47 = vmax.f32 %v475_v11, %v483_v25  ;;  %v438_v2 = vmul.f32 %v911_v46, %v914_v51 }
  0xb9   :  { %v991_v32 = vadd.f32 %v503_v17, %v936_v61  ;;  %v999_v39 = vadd.f32 %v545_v21, %v926_v57 }
  0xba   :  { %v987_v30 = vadd.f32 %v922_v55, %v136_v15  ;;  %v1029_v10 = vmax.f32 %v459_v45, %v491_v47 }
  0xbb   :  { %v1016_v53 = vmul.f32 0.2, %v991_v32  ;;  %v1020_v62 = vmul.f32 0.2, %v999_v39 }
  0xbc   :  { %v1009_v42 = vadd.f32 %v436_v31, %v987_v30  ;;  %v1012_v50 = vadd.f32 %v468_v27, %v987_v30 }
  0xbe   :  { %v393_v3 = vpop.f32.mrf.mxu2  ;;  %v418_v4 = vpop.f32.mrf.mxu3  ;;  %v1034_v15 = vmul.f32 0.2, %v1009_v42 }
  0xbf   :  { %v123_v7 = vpop.f32.mrf.mxu0  ;;  %v371_v8 = vpop.f32.mrf.mxu1  ;;  %v504_v63 = vmul.f32 %v911_v46, %v393_v3  ;;  %v546_v0 = vmul.f32 %v911_v46, %v418_v4  ;;  %v1037_v3 = vmul.f32 0.2, %v1012_v50  ;;  %v527_v4 = vmax.f32 %v991_v32, %v1016_v53 }
  0xc0   :  { %v137_v12 = vmul.f32 %v911_v46, %v123_v7  ;;  %v463_v44 = vmul.f32 %v911_v46, %v371_v8 }
  0xc1   :  { %v1047_v24 = vadd.f32 %v504_v63, %v944_v5  ;;  %v1050_v25 = vadd.f32 %v546_v0, %v930_v59 }
  0xc2   :  { %v965_v18 = vadd.f32 %v922_v55, %v137_v12  ;;  %v471_v8 = vadd.f32 %v463_v44, %v936_v61  ;;  %v492_v44 = vmax.f32 %v1012_v50, %v1037_v3 }
  0xc3   :  { %v1070_v53 = vmul.f32 0.2, %v1047_v24 }
  0xc4   :  { %v445_v33 = vadd.f32 %v437_v23, %v965_v18  ;;  %v477_v36 = vadd.f32 %v469_v19, %v965_v18  ;;  %v517_v7 = vadd.f32 %v509_v16, %v965_v18  ;;  %v569_v23 = vmax.f32 %v999_v39, %v1020_v62 }
  0xc6   :  { %v396_v37 = vpop.f32.mrf.mxu2  ;;  %v421_v34 = vpop.f32.mrf.mxu3  ;;  %v453_v54 = vmul.f32 0.2, %v445_v33  ;;  %v485_v56 = vmul.f32 0.2, %v477_v36 }
  0xc7   :  { %v125_v40 = vpop.f32.mrf.mxu0  ;;  %v373_v43 = vpop.f32.mrf.mxu1  ;;  %v505_v52 = vmul.f32 %v911_v46, %v396_v37  ;;  %v547_v58 = vmul.f32 %v911_v46, %v421_v34  ;;  %v479_v37 = vmul.f32 0.2, %v471_v8 }
  0xc8   :  { %v138_v1 = vmul.f32 %v911_v46, %v125_v40  ;;  %v464_v12 = vmul.f32 %v911_v46, %v373_v43  ;;  %v461_v19 = vmax.f32 %v445_v33, %v453_v54  ;;  %v493_v21 = vmax.f32 %v477_v36, %v485_v56 }
  0xc9   :  { %v513_v11 = vadd.f32 %v505_v52, %v926_v57  ;;  %v1042_v51 = vadd.f32 %v547_v58, %v933_v60  ;;  %v525_v36 = vmul.f32 0.2, %v517_v7  ;;  %v460_v43 = vmax.f32 %v1009_v42, %v1034_v15 }
  0xca   :  { %v1053_v27 = vadd.f32 %v922_v55, %v138_v1  ;;  %v1058_v39 = vadd.f32 %v464_v12, %v944_v5  ;;  %v501_v52 = vmax.f32 %v461_v19, %v493_v21  ;;  %v1073_v54 = vmul.f32 0.2, %v1050_v25 }
  0xcb   :  { %v521_v40 = vmul.f32 0.2, %v513_v11  ;;  %v1065_v55 = vmul.f32 0.2, %v1042_v51  ;;  %v487_v62 = vmax.f32 %v471_v8, %v479_v37  ;;  %v533_v1 = vmax.f32 %v517_v7, %v525_v36 }
  0xcc   :  { %v1076_v56 = vadd.f32 %v438_v2, %v1053_v27  ;;  %v480_v19 = vmul.f32 0.2, %v1058_v39 }
  0xcd   :  { %v529_v12 = vmax.f32 %v513_v11, %v521_v40  ;;  %v571_v21 = vmax.f32 %v1042_v51, %v1065_v55  ;;  %v541_v8 = vmax.f32 %v501_v52, %v533_v1 }
  0xce   :  { %v398_v16 = vpop.f32.mrf.mxu2  ;;  %v423_v17 = vpop.f32.mrf.mxu3  ;;  %v454_v37 = vmul.f32 0.2, %v1076_v56  ;;  %v488_v9 = vmax.f32 %v1058_v39, %v480_v19 }
  0xcf   :  { %v351_v31 = vpop.f32.mrf.mxu0  ;;  %v376_v32 = vpop.f32.mrf.mxu1  ;;  %v506_v58 = vmul.f32 %v911_v46, %v398_v16 }
  0xd0   :  { %v431_v34 = vmul.f32 %v911_v46, %v351_v31  ;;  %v465_v33 = vmul.f32 %v911_v46, %v376_v32 }
  0xd1   :  { %v514_v7 = vadd.f32 %v506_v58, %v930_v59 }
  0xd2   :  { %v439_v45 = vadd.f32 %v431_v34, %v936_v61  ;;  %v473_v47 = vadd.f32 %v465_v33, %v926_v57  ;;  %v478_v61 = vadd.f32 %v470_v38, %v1053_v27  ;;  %v1082_v57 = vadd.f32 %v981_v28, %v1053_v27 }
  0xd3   :  { %v522_v22 = vmul.f32 0.2, %v514_v7 }
  0xd4   :  { %v447_v63 = vmul.f32 0.2, %v439_v45  ;;  %v481_v0 = vmul.f32 0.2, %v473_v47  ;;  %v486_v55 = vmul.f32 0.2, %v478_v61 }
  0xd5   :  { %v526_v20 = vmul.f32 0.2, %v1082_v57 }
  0xd6   :  { %v455_v2 = vmax.f32 %v439_v45, %v447_v63  ;;  %v489_v31 = vmax.f32 %v473_v47, %v481_v0  ;;  %v401_v32 = vpop.f32.mrf.mxu2  ;;  %v426_v16 = vpop.f32.mrf.mxu3  ;;  %v548_v45 = vmul.f32 %v911_v46, %v423_v17 }
  0xd7   :  { %v507_v38 = vmul.f32 %v911_v46, %v401_v32  ;;  %v549_v11 = vmul.f32 %v911_v46, %v426_v16  ;;  %v353_v28 = vpop.f32.mrf.mxu0  ;;  %v378_v34 = vpop.f32.mrf.mxu1  ;;  %v528_v16 = vmax.f32 %v1047_v24, %v1070_v53  ;;  %v570_v24 = vmax.f32 %v1050_v25, %v1073_v54 }
  0xd8   :  { %v495_v33 = vmax.f32 %v455_v2, %v487_v62  ;;  %v497_v51 = vmax.f32 %v457_v41, %v489_v31  ;;  %v432_v36 = vmul.f32 %v911_v46, %v353_v28  ;;  %v466_v40 = vmul.f32 %v911_v46, %v378_v34 }
  0xd9   :  { %v515_v47 = vadd.f32 %v507_v38, %v933_v60  ;;  %v557_v52 = vadd.f32 %v549_v11, %v965_v18  ;;  %v534_v26 = vmax.f32 %v1082_v57, %v526_v20  ;;  %v500_v25 = vmax.f32 %v460_v43, %v492_v44 }
  0xda   :  { %v535_v58 = vmax.f32 %v495_v33, %v527_v4  ;;  %v537_v63 = vmax.f32 %v497_v51, %v529_v12  ;;  %v440_v0 = vadd.f32 %v432_v36, %v944_v5  ;;  %v474_v62 = vadd.f32 %v466_v40, %v930_v59 }
  0xdb   :  { %v523_v41 = vmul.f32 0.2, %v515_v47  ;;  %v565_v1 = vmul.f32 0.2, %v557_v52  ;;  %v462_v4 = vmax.f32 %v1076_v56, %v454_v37  ;;  %v494_v12 = vmax.f32 %v478_v61, %v486_v55 }
  0xdc   :  { %v575_v2 = vmax.f32 %v535_v58, %v567_v35  ;;  %v577_v17 = vmax.f32 %v537_v63, %v569_v23  ;;  %v448_v31 = vmul.f32 0.2, %v440_v0  ;;  %v482_v60 = vmul.f32 0.2, %v474_v62 }
  0xdd   :  { %v531_v32 = vmax.f32 %v515_v47, %v523_v41  ;;  %v573_v18 = vmax.f32 %v557_v52, %v565_v1  ;;  %v556_v5 = vadd.f32 %v548_v45, %v987_v30  ;;  %v530_v37 = vmax.f32 %v514_v7, %v522_v22 }
  0xde   :  { %583 = vst.msk [vmem:[%s1168_s6] sm:$0xff] %vm86_vm0, %v575_v2  ;;  %v456_v59 = vmax.f32 %v440_v0, %v448_v31  ;;  %v490_v39 = vmax.f32 %v474_v62, %v482_v60  ;;  %v403_v19 = vpop.f32.mrf.mxu2  ;;  %v428_v6 = vpop.f32.mrf.mxu3 }
  0xdf   :  { %585 = vst.msk [vmem:[%s1168_s6 + $0x10] sm:$0xff] %vm86_vm0, %v577_v17  ;;  %v539_v35 = vmax.f32 %v1029_v10, %v531_v32  ;;  %v581_v23 = vmax.f32 %v541_v8, %v573_v18  ;;  %v508_v56 = vmul.f32 %v911_v46, %v403_v19  ;;  %v550_v61 = vmul.f32 %v911_v46, %v428_v6 }
  0xe0   :  { %v496_v38 = vmax.f32 %v456_v59, %v488_v9  ;;  %v498_v11 = vmax.f32 %v458_v48, %v490_v39  ;;  %v502_v8 = vmax.f32 %v462_v4, %v494_v12  ;;  %v564_v53 = vmul.f32 0.2, %v556_v5 }
  0xe1   :  { %v579_v28 = vmax.f32 %v539_v35, %v571_v21  ;;  %589 = vst.msk [vmem:[%s1168_s6 + $0x30] sm:$0xff] %vm86_vm0, %v581_v23  ;;  %v516_v10 = vadd.f32 %v508_v56, %v987_v30  ;;  %v558_v46 = vadd.f32 %v550_v61, %v1053_v27 }
  0xe2   :  { %v536_v7 = vmax.f32 %v496_v38, %v528_v16  ;;  %v538_v34 = vmax.f32 %v498_v11, %v530_v37  ;;  %v542_v21 = vmax.f32 %v502_v8, %v534_v26  ;;  %v572_v57 = vmax.f32 %v556_v5, %v564_v53 }
  0xe3   :  { %587 = vst.msk [vmem:[%s1168_s6 + $0x20] sm:$0xff] %vm86_vm0, %v579_v28  ;;  %v524_v13 = vmul.f32 0.2, %v516_v10  ;;  %v566_v48 = vmul.f32 0.2, %v558_v46 }
  0xe4   :  { %v576_v30 = vmax.f32 %v536_v7, %v568_v49  ;;  %v578_v27 = vmax.f32 %v538_v34, %v570_v24 }
  0xe5   :  { %v532_v54 = vmax.f32 %v516_v10, %v524_v13  ;;  %v574_v33 = vmax.f32 %v558_v46, %v566_v48 }
  0xe6   :  { %584 = vst.msk [vmem:[%s1168_s6 + $0x8] sm:$0xff] %vm86_vm0, %v576_v30 }
  0xe7   :  { %586 = vst.msk [vmem:[%s1168_s6 + $0x18] sm:$0xff] %vm86_vm0, %v578_v27  ;;  %v540_v14 = vmax.f32 %v500_v25, %v532_v54  ;;  %v582_v29 = vmax.f32 %v542_v21, %v574_v33 }
  0xe9   :  { %v580_v49 = vmax.f32 %v540_v14, %v572_v57  ;;  %590 = vst.msk [vmem:[%s1168_s6 + $0x38] sm:$0xff] %vm86_vm0, %v582_v29 }
  0xeb   :  { %588 = vst.msk [vmem:[%s1168_s6 + $0x28] sm:$0xff] %vm86_vm0, %v580_v49 }

// kernel: point_manifold_nnml_forward.15
= control target key start
LH: loop header
LB: loop body
LE: loop exit
PB: predicated region body
PF: predicated region fallthrough
CT: control target
= control target key end

     0   :  { %vm86_vm0 = vcmask 523264   ;;  %s1154_s3 = inlined_call_operand.vmem [shape: bf16[64,128], index: 3, kind: input, shape index: {}]   ;;  %s1155_s2 = inlined_call_operand.vmem [shape: bf16[64,128], index: 2, kind: input, shape index: {}]   ;;  %s1156_s4 = inlined_call_operand.vmem [shape: f32[1,128], index: 4, kind: input, shape index: {}]   ;;  %s1157_s5 = inlined_call_operand.vmem [shape: f32[1,128], index: 5, kind: input, shape index: {}]   ;;  %s1158_s1 = inlined_call_operand.vmem [shape: bf16[64,64], index: 1, kind: input, shape index: {}]   ;;  %s1159_s0 = inlined_call_operand.vmem [shape: bf16[256,64], index: 0, kind: input, shape index: {}]   ;;  %s1160_s6 = inlined_call_operand.vmem [shape: f32[64,128], index: 6, kind: output, shape index: {}]  }
   0x1   :  { %v734_v0 = vld [vmem:[%s1154_s3 + $0x18] sm:$0xff]  ;;  %v733_v2 = vld [vmem:[%s1154_s3 + $0x10] sm:$0xff]  ;;  %v732_v4 = vld [vmem:[%s1154_s3 + $0x8] sm:$0xff] }
   0x2   :  { %v754_v1 = vld [vmem:[%s1155_s2 + $0x18] sm:$0xff]  ;;  %103 = vmatpush.bf16.msra.mxu0 %v734_v0  ;;  %v753_v3 = vld [vmem:[%s1155_s2 + $0x10] sm:$0xff]  ;;  %v752_v5 = vld [vmem:[%s1155_s2 + $0x8] sm:$0xff] }
   0x3   :  { %755 = vmatpush.bf16.msra.mxu1 %v754_v1  ;;  %756 = vmatpush.bf16.msra.mxu2 %v754_v1  ;;  %v731_v6 = vld [vmem:[%s1154_s3] sm:$0xff]  ;;  %v736_v9 = vld [vmem:[%s1159_s0 + $0x8] sm:$0xff]  ;;  %v741_v10 = vld [vmem:[%s1159_s0 + $0x30] sm:$0xff] }
   0x4   :  { %757 = vmatpush.bf16.msra.mxu3 %v754_v1  ;;  %v751_v7 = vld [vmem:[%s1155_s2] sm:$0xff]  ;;  %v746_v11 = vld [vmem:[%s1159_s0 + $0x58] sm:$0xff]  ;;  %v728_v12 = vld [vmem:[%s1158_s1 + $0x8] sm:$0xff] }
   0x5   :  { %v727_v8 = vld [vmem:[%s1158_s1] sm:$0xff]  ;;  %v737_v13 = vld [vmem:[%s1159_s0 + $0x10] sm:$0xff]  ;;  %v742_v14 = vld [vmem:[%s1159_s0 + $0x38] sm:$0xff] }
   0x6   :  { %104 = vmatpush.bf16.msra.mxu0 %v733_v2  ;;  %v747_v15 = vld [vmem:[%s1159_s0 + $0x60] sm:$0xff]  ;;  %v729_v16 = vld [vmem:[%s1158_s1 + $0x10] sm:$0xff]  ;;  %v738_v17 = vld [vmem:[%s1159_s0 + $0x18] sm:$0xff] }
   0x7   :  { %758 = vmatpush.bf16.msra.mxu1 %v753_v3  ;;  %759 = vmatpush.bf16.msra.mxu2 %v753_v3  ;;  %v743_v18 = vld [vmem:[%s1159_s0 + $0x40] sm:$0xff]  ;;  %v748_v19 = vld [vmem:[%s1159_s0 + $0x68] sm:$0xff]  ;;  %v730_v20 = vld [vmem:[%s1158_s1 + $0x18] sm:$0xff] }
   0x8   :  { %760 = vmatpush.bf16.msra.mxu3 %v753_v3  ;;  %v739_v21 = vld [vmem:[%s1159_s0 + $0x20] sm:$0xff]  ;;  %v744_v22 = vld [vmem:[%s1159_s0 + $0x48] sm:$0xff]  ;;  %v749_v23 = vld [vmem:[%s1159_s0 + $0x70] sm:$0xff] }
   0x9   :  { %v735_v24 = vld [vmem:[%s1159_s0] sm:$0xff]  ;;  %v740_v25 = vld [vmem:[%s1159_s0 + $0x28] sm:$0xff]  ;;  %v745_v26 = vld [vmem:[%s1159_s0 + $0x50] sm:$0xff] }
   0xa   :  { %105 = vmatpush.bf16.msra.mxu0 %v732_v4  ;;  %v750_v27 = vld [vmem:[%s1159_s0 + $0x78] sm:$0xff]  ;;  %v911_v46 = vld [vmem:[%s1156_s4] ss:$0 sm:$0xff] }
   0xb   :  { %761 = vmatpush.bf16.msra.mxu1 %v752_v5  ;;  %762 = vmatpush.bf16.msra.mxu2 %v752_v5  ;;  %v922_v55 = vld [vmem:[%s1157_s5] ss:$0 sm:$0xff] }
   0xc   :  { %763 = vmatpush.bf16.msra.mxu3 %v752_v5 }
   0xe   :  { %106 = vmatpush.bf16.msra.mxu0 %v731_v6 }
   0xf   :  { %764 = vmatpush.bf16.msra.mxu1 %v751_v7  ;;  %765 = vmatpush.bf16.msra.mxu2 %v751_v7 }
  0x10   :  { %766 = vmatpush.bf16.msra.mxu3 %v751_v7 }
  0x11   :  { %627 = vmatmul.msk.bf16.vlgmr.msra.gmra.mxu0 %vm86_vm0, %v727_v8 }
  0x12   :  { %346 = vmatpush.bf16.msrb.mxu0 %v754_v1  ;;  %712 = vmatmul.msk.bf16.vlgmr.msra.gmra.mxu1 %vm86_vm0, %v736_v9 }
  0x13   :  { %717 = vmatmul.msk.bf16.vlgmr.msra.gmra.mxu2 %vm86_vm0, %v741_v10  ;;  %722 = vmatmul.msk.bf16.vlgmr.msra.gmra.mxu3 %vm86_vm0, %v746_v11 }
  0x16   :  { %347 = vmatpush.bf16.msrb.mxu0 %v753_v3 }
  0x1a   :  { %348 = vmatpush.bf16.msrb.mxu0 %v752_v5 }
  0x1e   :  { %349 = vmatpush.bf16.msrb.mxu0 %v751_v7 }
  0x21   :  { %628 = vmatmul.msk.bf16.gmra.mxu0 %vm86_vm0, %v728_v12 }
  0x22   :  { %713 = vmatmul.msk.bf16.gmra.mxu1 %vm86_vm0, %v737_v13 }
  0x23   :  { %718 = vmatmul.msk.bf16.gmra.mxu2 %vm86_vm0, %v742_v14  ;;  %723 = vmatmul.msk.bf16.gmra.mxu3 %vm86_vm0, %v747_v15 }
  0x31   :  { %629 = vmatmul.msk.bf16.gmra.mxu0 %vm86_vm0, %v729_v16 }
  0x32   :  { %714 = vmatmul.msk.bf16.gmra.mxu1 %vm86_vm0, %v738_v17 }
  0x33   :  { %719 = vmatmul.msk.bf16.gmra.mxu2 %vm86_vm0, %v743_v18  ;;  %724 = vmatmul.msk.bf16.gmra.mxu3 %vm86_vm0, %v748_v19 }
  0x41   :  { %630 = vmatmul.msk.bf16.gmra.mxu0 %vm86_vm0, %v730_v20 }
  0x42   :  { %715 = vmatmul.msk.bf16.gmra.mxu1 %vm86_vm0, %v739_v21 }
  0x43   :  { %720 = vmatmul.msk.bf16.gmra.mxu2 %vm86_vm0, %v744_v22  ;;  %725 = vmatmul.msk.bf16.gmra.mxu3 %vm86_vm0, %v749_v23 }
  0x51   :  { %711 = vmatmul.msk.bf16.vlgmr.msrb.gmra.mxu0 %vm86_vm0, %v735_v24 }
  0x52   :  { %716 = vmatmul.msk.bf16.gmra.mxu1 %vm86_vm0, %v740_v25 }
  0x53   :  { %721 = vmatmul.msk.bf16.gmra.mxu2 %vm86_vm0, %v745_v26  ;;  %726 = vmatmul.msk.bf16.gmra.mxu3 %vm86_vm0, %v750_v27 }
  0x8e   :  { %v108_v28 = vpop.f32.mrf.mxu0 }
  0x8f   :  { %v356_v29 = vpop.f32.mrf.mxu1  ;;  %v131_v54 = vmul.f32 %v911_v46, %v108_v28 }
  0x90   :  { %v433_v62 = vmul.f32 %v911_v46, %v356_v29 }
  0x91   :  { %v936_v61 = vadd.f32 %v922_v55, %v131_v54 }
  0x96   :  { %v381_v30 = vpop.f32.mrf.mxu2  ;;  %v406_v31 = vpop.f32.mrf.mxu3 }
  0x97   :  { %v110_v32 = vpop.f32.mrf.mxu0  ;;  %v358_v33 = vpop.f32.mrf.mxu1  ;;  %v467_v0 = vmul.f32 %v911_v46, %v381_v30  ;;  %v509_v16 = vmul.f32 %v911_v46, %v406_v31 }
  0x98   :  { %v132_v56 = vmul.f32 %v911_v46, %v110_v32  ;;  %v434_v1 = vmul.f32 %v911_v46, %v358_v33 }
  0x9a   :  { %v944_v5 = vadd.f32 %v922_v55, %v132_v56 }
  0x9e   :  { %v383_v34 = vpop.f32.mrf.mxu2  ;;  %v408_v35 = vpop.f32.mrf.mxu3 }
  0x9f   :  { %v113_v36 = vpop.f32.mrf.mxu0  ;;  %v361_v37 = vpop.f32.mrf.mxu1  ;;  %v468_v27 = vmul.f32 %v911_v46, %v383_v34  ;;  %v981_v28 = vmul.f32 %v911_v46, %v408_v35 }
  0xa0   :  { %v133_v49 = vmul.f32 %v911_v46, %v113_v36  ;;  %v435_v2 = vmul.f32 %v911_v46, %v361_v37 }
  0xa2   :  { %v926_v57 = vadd.f32 %v922_v55, %v133_v49 }
  0xa4   :  { %v950_v9 = vadd.f32 %v433_v62, %v926_v57 }
  0xa6   :  { %v386_v38 = vpop.f32.mrf.mxu2  ;;  %v411_v39 = vpop.f32.mrf.mxu3  ;;  %v973_v22 = vmul.f32 0.2, %v950_v9 }
  0xa7   :  { %v115_v40 = vpop.f32.mrf.mxu0  ;;  %v363_v41 = vpop.f32.mrf.mxu1  ;;  %v543_v58 = vmul.f32 %v911_v46, %v411_v39  ;;  %v469_v19 = vmul.f32 %v911_v46, %v386_v38 }
  0xa8   :  { %v134_v52 = vmul.f32 %v911_v46, %v115_v40  ;;  %v436_v31 = vmul.f32 %v911_v46, %v363_v41  ;;  %v457_v41 = vmax.f32 %v950_v9, %v973_v22 }
  0xa9   :  { %v947_v6 = vadd.f32 %v543_v58, %v936_v61 }
  0xaa   :  { %v930_v59 = vadd.f32 %v922_v55, %v134_v52 }
  0xab   :  { %v969_v20 = vmul.f32 0.2, %v947_v6 }
  0xac   :  { %v956_v13 = vadd.f32 %v434_v1, %v930_v59 }
  0xad   :  { %v567_v35 = vmax.f32 %v947_v6, %v969_v20 }
  0xae   :  { %v388_v42 = vpop.f32.mrf.mxu2  ;;  %v413_v43 = vpop.f32.mrf.mxu3  ;;  %v977_v26 = vmul.f32 0.2, %v956_v13 }
  0xaf   :  { %v118_v44 = vpop.f32.mrf.mxu0  ;;  %v366_v45 = vpop.f32.mrf.mxu1  ;;  %v544_v63 = vmul.f32 %v911_v46, %v413_v43  ;;  %v470_v38 = vmul.f32 %v911_v46, %v388_v42 }
  0xb0   :  { %v135_v53 = vmul.f32 %v911_v46, %v118_v44  ;;  %v437_v23 = vmul.f32 %v911_v46, %v366_v45 }
  0xb1   :  { %v959_v14 = vadd.f32 %v544_v63, %v944_v5 }
  0xb2   :  { %v933_v60 = vadd.f32 %v922_v55, %v135_v53 }
  0xb3   :  { %v984_v29 = vmul.f32 0.2, %v959_v14 }
  0xb4   :  { %v443_v10 = vadd.f32 %v435_v2, %v933_v60  ;;  %v475_v11 = vadd.f32 %v467_v0, %v933_v60 }
  0xb5   :  { %v568_v49 = vmax.f32 %v959_v14, %v984_v29 }
  0xb6   :  { %v391_v47 = vpop.f32.mrf.mxu2  ;;  %v416_v48 = vpop.f32.mrf.mxu3  ;;  %v451_v24 = vmul.f32 0.2, %v443_v10  ;;  %v483_v25 = vmul.f32 0.2, %v475_v11 }
  0xb7   :  { %v120_v50 = vpop.f32.mrf.mxu0  ;;  %v914_v51 = vpop.f32.mrf.mxu1  ;;  %v503_v17 = vmul.f32 %v911_v46, %v391_v47  ;;  %v545_v21 = vmul.f32 %v911_v46, %v416_v48  ;;  %v458_v48 = vmax.f32 %v956_v13, %v977_v26 }
  0xb8   :  { %v136_v15 = vmul.f32 %v911_v46, %v120_v50  ;;  %v459_v45 = vmax.f32 %v443_v10, %v451_v24  ;;  %v491_v47 = vmax.f32 %v475_v11, %v483_v25  ;;  %v438_v2 = vmul.f32 %v911_v46, %v914_v51 }
  0xb9   :  { %v991_v32 = vadd.f32 %v503_v17, %v936_v61  ;;  %v999_v39 = vadd.f32 %v545_v21, %v926_v57 }
  0xba   :  { %v987_v30 = vadd.f32 %v922_v55, %v136_v15  ;;  %v1029_v10 = vmax.f32 %v459_v45, %v491_v47 }
  0xbb   :  { %v1016_v53 = vmul.f32 0.2, %v991_v32  ;;  %v1020_v62 = vmul.f32 0.2, %v999_v39 }
  0xbc   :  { %v1009_v42 = vadd.f32 %v436_v31, %v987_v30  ;;  %v1012_v50 = vadd.f32 %v468_v27, %v987_v30 }
  0xbe   :  { %v393_v3 = vpop.f32.mrf.mxu2  ;;  %v418_v4 = vpop.f32.mrf.mxu3  ;;  %v1034_v15 = vmul.f32 0.2, %v1009_v42 }
  0xbf   :  { %v123_v7 = vpop.f32.mrf.mxu0  ;;  %v371_v8 = vpop.f32.mrf.mxu1  ;;  %v504_v63 = vmul.f32 %v911_v46, %v393_v3  ;;  %v546_v0 = vmul.f32 %v911_v46, %v418_v4  ;;  %v1037_v3 = vmul.f32 0.2, %v1012_v50  ;;  %v527_v4 = vmax.f32 %v991_v32, %v1016_v53 }
  0xc0   :  { %v137_v12 = vmul.f32 %v911_v46, %v123_v7  ;;  %v463_v44 = vmul.f32 %v911_v46, %v371_v8 }
  0xc1   :  { %v1047_v24 = vadd.f32 %v504_v63, %v944_v5  ;;  %v1050_v25 = vadd.f32 %v546_v0, %v930_v59 }
  0xc2   :  { %v965_v18 = vadd.f32 %v922_v55, %v137_v12  ;;  %v471_v8 = vadd.f32 %v463_v44, %v936_v61  ;;  %v492_v44 = vmax.f32 %v1012_v50, %v1037_v3 }
  0xc3   :  { %v1070_v53 = vmul.f32 0.2, %v1047_v24 }
  0xc4   :  { %v445_v33 = vadd.f32 %v437_v23, %v965_v18  ;;  %v477_v36 = vadd.f32 %v469_v19, %v965_v18  ;;  %v517_v7 = vadd.f32 %v509_v16, %v965_v18  ;;  %v569_v23 = vmax.f32 %v999_v39, %v1020_v62 }
  0xc6   :  { %v396_v37 = vpop.f32.mrf.mxu2  ;;  %v421_v34 = vpop.f32.mrf.mxu3  ;;  %v453_v54 = vmul.f32 0.2, %v445_v33  ;;  %v485_v56 = vmul.f32 0.2, %v477_v36 }
  0xc7   :  { %v125_v40 = vpop.f32.mrf.mxu0  ;;  %v373_v43 = vpop.f32.mrf.mxu1  ;;  %v505_v52 = vmul.f32 %v911_v46, %v396_v37  ;;  %v547_v58 = vmul.f32 %v911_v46, %v421_v34  ;;  %v479_v37 = vmul.f32 0.2, %v471_v8 }
  0xc8   :  { %v138_v1 = vmul.f32 %v911_v46, %v125_v40  ;;  %v464_v12 = vmul.f32 %v911_v46, %v373_v43  ;;  %v461_v19 = vmax.f32 %v445_v33, %v453_v54  ;;  %v493_v21 = vmax.f32 %v477_v36, %v485_v56 }
  0xc9   :  { %v513_v11 = vadd.f32 %v505_v52, %v926_v57  ;;  %v1042_v51 = vadd.f32 %v547_v58, %v933_v60  ;;  %v525_v36 = vmul.f32 0.2, %v517_v7  ;;  %v460_v43 = vmax.f32 %v1009_v42, %v1034_v15 }
  0xca   :  { %v1053_v27 = vadd.f32 %v922_v55, %v138_v1  ;;  %v1058_v39 = vadd.f32 %v464_v12, %v944_v5  ;;  %v501_v52 = vmax.f32 %v461_v19, %v493_v21  ;;  %v1073_v54 = vmul.f32 0.2, %v1050_v25 }
  0xcb   :  { %v521_v40 = vmul.f32 0.2, %v513_v11  ;;  %v1065_v55 = vmul.f32 0.2, %v1042_v51  ;;  %v487_v62 = vmax.f32 %v471_v8, %v479_v37  ;;  %v533_v1 = vmax.f32 %v517_v7, %v525_v36 }
  0xcc   :  { %v1076_v56 = vadd.f32 %v438_v2, %v1053_v27  ;;  %v480_v19 = vmul.f32 0.2, %v1058_v39 }
  0xcd   :  { %v529_v12 = vmax.f32 %v513_v11, %v521_v40  ;;  %v571_v21 = vmax.f32 %v1042_v51, %v1065_v55  ;;  %v541_v8 = vmax.f32 %v501_v52, %v533_v1 }
  0xce   :  { %v398_v16 = vpop.f32.mrf.mxu2  ;;  %v423_v17 = vpop.f32.mrf.mxu3  ;;  %v454_v37 = vmul.f32 0.2, %v1076_v56  ;;  %v488_v9 = vmax.f32 %v1058_v39, %v480_v19 }
  0xcf   :  { %v351_v31 = vpop.f32.mrf.mxu0  ;;  %v376_v32 = vpop.f32.mrf.mxu1  ;;  %v506_v58 = vmul.f32 %v911_v46, %v398_v16 }
  0xd0   :  { %v431_v34 = vmul.f32 %v911_v46, %v351_v31  ;;  %v465_v33 = vmul.f32 %v911_v46, %v376_v32 }
  0xd1   :  { %v514_v7 = vadd.f32 %v506_v58, %v930_v59 }
  0xd2   :  { %v439_v45 = vadd.f32 %v431_v34, %v936_v61  ;;  %v473_v47 = vadd.f32 %v465_v33, %v926_v57  ;;  %v478_v61 = vadd.f32 %v470_v38, %v1053_v27  ;;  %v1082_v57 = vadd.f32 %v981_v28, %v1053_v27 }
  0xd3   :  { %v522_v22 = vmul.f32 0.2, %v514_v7 }
  0xd4   :  { %v447_v63 = vmul.f32 0.2, %v439_v45  ;;  %v481_v0 = vmul.f32 0.2, %v473_v47  ;;  %v486_v55 = vmul.f32 0.2, %v478_v61 }
  0xd5   :  { %v526_v6 = vmul.f32 0.2, %v1082_v57 }
  0xd6   :  { %v455_v2 = vmax.f32 %v439_v45, %v447_v63  ;;  %v489_v31 = vmax.f32 %v473_v47, %v481_v0  ;;  %v401_v32 = vpop.f32.mrf.mxu2  ;;  %v426_v16 = vpop.f32.mrf.mxu3  ;;  %v548_v45 = vmul.f32 %v911_v46, %v423_v17 }
  0xd7   :  { %v507_v38 = vmul.f32 %v911_v46, %v401_v32  ;;  %v549_v11 = vmul.f32 %v911_v46, %v426_v16  ;;  %v353_v28 = vpop.f32.mrf.mxu0  ;;  %v378_v34 = vpop.f32.mrf.mxu1  ;;  %v534_v26 = vmax.f32 %v1082_v57, %v526_v6 }
  0xd8   :  { %v495_v33 = vmax.f32 %v455_v2, %v487_v62  ;;  %v497_v51 = vmax.f32 %v457_v41, %v489_v31  ;;  %v432_v36 = vmul.f32 %v911_v46, %v353_v28  ;;  %v466_v40 = vmul.f32 %v911_v46, %v378_v34 }
  0xd9   :  { %v515_v47 = vadd.f32 %v507_v38, %v933_v60  ;;  %v557_v52 = vadd.f32 %v549_v11, %v965_v18 }
  0xda   :  { %v535_v58 = vmax.f32 %v495_v33, %v527_v4  ;;  %v537_v63 = vmax.f32 %v497_v51, %v529_v12  ;;  %v440_v0 = vadd.f32 %v432_v36, %v944_v5  ;;  %v474_v62 = vadd.f32 %v466_v40, %v930_v59 }
  0xdb   :  { %v523_v41 = vmul.f32 0.2, %v515_v47  ;;  %v565_v1 = vmul.f32 0.2, %v557_v52  ;;  %v462_v4 = vmax.f32 %v1076_v56, %v454_v37  ;;  %v494_v12 = vmax.f32 %v478_v61, %v486_v55 }
  0xdc   :  { %v575_v2 = vmax.f32 %v535_v58, %v567_v35  ;;  %v577_v17 = vmax.f32 %v537_v63, %v569_v23  ;;  %v448_v31 = vmul.f32 0.2, %v440_v0  ;;  %v482_v60 = vmul.f32 0.2, %v474_v62 }
  0xdd   :  { %v531_v32 = vmax.f32 %v515_v47, %v523_v41  ;;  %v573_v18 = vmax.f32 %v557_v52, %v565_v1  ;;  %v556_v5 = vadd.f32 %v548_v45, %v987_v30  ;;  %v528_v61 = vmax.f32 %v1047_v24, %v1070_v53 }
  0xde   :  { %583 = vst [vmem:[%s1160_s6] sm:$0xff] %v575_v2  ;;  %v456_v59 = vmax.f32 %v440_v0, %v448_v31  ;;  %v490_v39 = vmax.f32 %v474_v62, %v482_v60  ;;  %v403_v19 = vpop.f32.mrf.mxu2  ;;  %v428_v16 = vpop.f32.mrf.mxu3  ;;  %v530_v37 = vmax.f32 %v514_v7, %v522_v22 }
  0xdf   :  { %585 = vst [vmem:[%s1160_s6 + $0x10] sm:$0xff] %v577_v17  ;;  %v539_v20 = vmax.f32 %v1029_v10, %v531_v32  ;;  %v581_v35 = vmax.f32 %v541_v8, %v573_v18  ;;  %v508_v23 = vmul.f32 %v911_v46, %v403_v19  ;;  %v550_v56 = vmul.f32 %v911_v46, %v428_v16 }
  0xe0   :  { %v496_v38 = vmax.f32 %v456_v59, %v488_v9  ;;  %v498_v11 = vmax.f32 %v458_v48, %v490_v39  ;;  %v502_v8 = vmax.f32 %v462_v4, %v494_v12  ;;  %v570_v46 = vmax.f32 %v1050_v25, %v1073_v54 }
  0xe1   :  { %v579_v28 = vmax.f32 %v539_v20, %v571_v21  ;;  %589 = vst [vmem:[%s1160_s6 + $0x30] sm:$0xff] %v581_v35  ;;  %v516_v10 = vadd.f32 %v508_v23, %v987_v30  ;;  %v558_v34 = vadd.f32 %v550_v56, %v1053_v27  ;;  %v564_v24 = vmul.f32 0.2, %v556_v5 }
  0xe2   :  { %v536_v53 = vmax.f32 %v496_v38, %v528_v61  ;;  %v538_v7 = vmax.f32 %v498_v11, %v530_v37  ;;  %v500_v25 = vmax.f32 %v460_v43, %v492_v44  ;;  %v542_v54 = vmax.f32 %v502_v8, %v534_v26 }
  0xe3   :  { %587 = vst [vmem:[%s1160_s6 + $0x20] sm:$0xff] %v579_v28  ;;  %v524_v13 = vmul.f32 0.2, %v516_v10  ;;  %v566_v48 = vmul.f32 0.2, %v558_v34  ;;  %v572_v57 = vmax.f32 %v556_v5, %v564_v24 }
  0xe4   :  { %v576_v30 = vmax.f32 %v536_v53, %v568_v49  ;;  %v578_v21 = vmax.f32 %v538_v7, %v570_v46 }
  0xe5   :  { %v532_v27 = vmax.f32 %v516_v10, %v524_v13  ;;  %v574_v33 = vmax.f32 %v558_v34, %v566_v48 }
  0xe6   :  { %584 = vst [vmem:[%s1160_s6 + $0x8] sm:$0xff] %v576_v30 }
  0xe7   :  { %586 = vst [vmem:[%s1160_s6 + $0x18] sm:$0xff] %v578_v21  ;;  %v540_v14 = vmax.f32 %v500_v25, %v532_v27  ;;  %v582_v29 = vmax.f32 %v542_v54, %v574_v33 }
  0xe9   :  { %v580_v49 = vmax.f32 %v540_v14, %v572_v57  ;;  %590 = vst [vmem:[%s1160_s6 + $0x38] sm:$0xff] %v582_v29 }
  0xeb   :  { %588 = vst [vmem:[%s1160_s6 + $0x28] sm:$0xff] %v580_v49 }

// kernel: point_manifold_nnml_forward.18
= control target key start
LH: loop header
LB: loop body
LE: loop exit
PB: predicated region body
PF: predicated region fallthrough
CT: control target
= control target key end

     0   :  { %vm525_vm0 = vcmask 523264   ;;  %s1055_s1 = inlined_call_operand.vmem [shape: bf16[512,64], index: 1, kind: input, shape index: {}]   ;;  %s1056_s0 = inlined_call_operand.vmem [shape: bf16[64,512], index: 0, kind: input, shape index: {}]   ;;  %s1057_s2 = inlined_call_operand.vmem [shape: f32[1,64], index: 2, kind: input, shape index: {}]   ;;  %s1058_s3 = inlined_call_operand.vmem [shape: f32[1,64], index: 3, kind: input, shape index: {}]   ;;  %s1059_s4 = inlined_call_operand.vmem [shape: f32[64,64], index: 4, kind: output, shape index: {}]  }
   0x1   :  { %v753_v0 = vld [vmem:[%s1055_s1 + $0x38] sm:$0xff]  ;;  %v752_v4 = vld [vmem:[%s1055_s1 + $0x30] sm:$0xff]  ;;  %v751_v8 = vld [vmem:[%s1055_s1 + $0x28] sm:$0xff] }
   0x2   :  { %v761_v1 = vld [vmem:[%s1055_s1 + $0x78] sm:$0xff]  ;;  %369 = vmatpush.bf16.msra.mxu0 %v753_v0  ;;  %v760_v5 = vld [vmem:[%s1055_s1 + $0x70] sm:$0xff]  ;;  %v759_v9 = vld [vmem:[%s1055_s1 + $0x68] sm:$0xff] }
   0x3   :  { %v769_v2 = vld [vmem:[%s1055_s1 + $0xb8] sm:$0xff]  ;;  %398 = vmatpush.bf16.msra.mxu1 %v761_v1  ;;  %v768_v6 = vld [vmem:[%s1055_s1 + $0xb0] sm:$0xff]  ;;  %v767_v10 = vld [vmem:[%s1055_s1 + $0xa8] sm:$0xff] }
   0x4   :  { %v777_v3 = vld [vmem:[%s1055_s1 + $0xf8] sm:$0xff]  ;;  %427 = vmatpush.bf16.msra.mxu2 %v769_v2  ;;  %v776_v7 = vld [vmem:[%s1055_s1 + $0xf0] sm:$0xff]  ;;  %v775_v11 = vld [vmem:[%s1055_s1 + $0xe8] sm:$0xff] }
   0x5   :  { %456 = vmatpush.bf16.msra.mxu3 %v777_v3  ;;  %v750_v12 = vld [vmem:[%s1055_s1 + $0x20] sm:$0xff]  ;;  %v749_v16 = vld [vmem:[%s1055_s1 + $0x18] sm:$0xff]  ;;  %v748_v20 = vld [vmem:[%s1055_s1 + $0x10] sm:$0xff] }
   0x6   :  { %370 = vmatpush.bf16.msra.mxu0 %v752_v4  ;;  %v758_v13 = vld [vmem:[%s1055_s1 + $0x60] sm:$0xff]  ;;  %v757_v17 = vld [vmem:[%s1055_s1 + $0x58] sm:$0xff]  ;;  %v756_v21 = vld [vmem:[%s1055_s1 + $0x50] sm:$0xff] }
   0x7   :  { %399 = vmatpush.bf16.msra.mxu1 %v760_v5  ;;  %v766_v14 = vld [vmem:[%s1055_s1 + $0xa0] sm:$0xff]  ;;  %v765_v18 = vld [vmem:[%s1055_s1 + $0x98] sm:$0xff]  ;;  %v764_v22 = vld [vmem:[%s1055_s1 + $0x90] sm:$0xff] }
   0x8   :  { %428 = vmatpush.bf16.msra.mxu2 %v768_v6  ;;  %v774_v15 = vld [vmem:[%s1055_s1 + $0xe0] sm:$0xff]  ;;  %v773_v19 = vld [vmem:[%s1055_s1 + $0xd8] sm:$0xff]  ;;  %v772_v23 = vld [vmem:[%s1055_s1 + $0xd0] sm:$0xff] }
   0x9   :  { %457 = vmatpush.bf16.msra.mxu3 %v776_v7  ;;  %v747_v24 = vld [vmem:[%s1055_s1 + $0x8] sm:$0xff]  ;;  %v746_v28 = vld [vmem:[%s1055_s1] sm:$0xff]  ;;  %v732_v33 = vld [vmem:[%s1056_s0 + $0xc] sm:$0xf0] }
   0xa   :  { %371 = vmatpush.bf16.msra.mxu0 %v751_v8  ;;  %v755_v25 = vld [vmem:[%s1055_s1 + $0x48] sm:$0xff]  ;;  %v754_v29 = vld [vmem:[%s1055_s1 + $0x40] sm:$0xff]  ;;  %v542_v35 = vld [vmem:[%s1056_s0 + $0x10] sm:$0xf0] }
   0xb   :  { %400 = vmatpush.bf16.msra.mxu1 %v759_v9  ;;  %v763_v26 = vld [vmem:[%s1055_s1 + $0x88] sm:$0xff]  ;;  %v762_v30 = vld [vmem:[%s1055_s1 + $0x80] sm:$0xff]  ;;  %v733_v37 = vld [vmem:[%s1056_s0 + $0x14] sm:$0xf0] }
   0xc   :  { %429 = vmatpush.bf16.msra.mxu2 %v767_v10  ;;  %v771_v27 = vld [vmem:[%s1055_s1 + $0xc8] sm:$0xff]  ;;  %v770_v31 = vld [vmem:[%s1055_s1 + $0xc0] sm:$0xff]  ;;  %v550_v39 = vld [vmem:[%s1056_s0 + $0x18] sm:$0xf0] }
   0xd   :  { %458 = vmatpush.bf16.msra.mxu3 %v775_v11  ;;  %v540_v32 = vld [vmem:[%s1056_s0] sm:$0xf]  ;;  %v730_v34 = vld [vmem:[%s1056_s0 + $0x4] sm:$0xf]  ;;  %v548_v36 = vld [vmem:[%s1056_s0 + $0x8] sm:$0xf] }
   0xe   :  { %372 = vmatpush.bf16.msra.mxu0 %v750_v12  ;;  %v731_v38 = vld [vmem:[%s1056_s0 + $0xc] sm:$0xf]  ;;  %v541_v40 = vor.u32 %v732_v33, %v540_v32  ;;  %v545_v41 = vor.u32 %v730_v34, %v542_v35  ;;  %v549_v42 = vor.u32 %v733_v37, %v548_v36  ;;  %v556_v44 = vld [vmem:[%s1056_s0 + $0x20] sm:$0xf]  ;;  %v736_v45 = vld [vmem:[%s1056_s0 + $0x2c] sm:$0xf0] }
   0xf   :  { %401 = vmatpush.bf16.msra.mxu1 %v758_v13  ;;  %v553_v43 = vor.u32 %v731_v38, %v550_v39  ;;  %v734_v46 = vld [vmem:[%s1056_s0 + $0x24] sm:$0xf]  ;;  %v558_v47 = vld [vmem:[%s1056_s0 + $0x30] sm:$0xf0]  ;;  %v564_v48 = vld [vmem:[%s1056_s0 + $0x28] sm:$0xf]  ;;  %v557_v52 = vor.u32 %v736_v45, %v556_v44 }
  0x10   :  { %430 = vmatpush.bf16.msra.mxu2 %v766_v14  ;;  %v737_v49 = vld [vmem:[%s1056_s0 + $0x34] sm:$0xf0]  ;;  %v735_v50 = vld [vmem:[%s1056_s0 + $0x2c] sm:$0xf]  ;;  %v566_v51 = vld [vmem:[%s1056_s0 + $0x38] sm:$0xf0]  ;;  %v561_v53 = vor.u32 %v734_v46, %v558_v47 }
  0x11   :  { %459 = vmatpush.bf16.msra.mxu3 %v774_v15  ;;  %v565_v54 = vor.u32 %v737_v49, %v564_v48  ;;  %v569_v55 = vor.u32 %v735_v50, %v566_v51  ;;  %v572_v56 = vld [vmem:[%s1056_s0 + $0x40] sm:$0xf]  ;;  %v740_v57 = vld [vmem:[%s1056_s0 + $0x4c] sm:$0xf0]  ;;  %v738_v58 = vld [vmem:[%s1056_s0 + $0x44] sm:$0xf] }
  0x12   :  { %373 = vmatpush.bf16.msra.mxu0 %v749_v16  ;;  %v574_v59 = vld [vmem:[%s1056_s0 + $0x50] sm:$0xf0]  ;;  %v580_v60 = vld [vmem:[%s1056_s0 + $0x48] sm:$0xf]  ;;  %v741_v61 = vld [vmem:[%s1056_s0 + $0x54] sm:$0xf0]  ;;  %v573_v0 = vor.u32 %v740_v57, %v572_v56 }
  0x13   :  { %402 = vmatpush.bf16.msra.mxu1 %v757_v17  ;;  %v739_v62 = vld [vmem:[%s1056_s0 + $0x4c] sm:$0xf]  ;;  %v582_v63 = vld [vmem:[%s1056_s0 + $0x58] sm:$0xf0]  ;;  %v577_v1 = vor.u32 %v738_v58, %v574_v59  ;;  %v581_v2 = vor.u32 %v741_v61, %v580_v60  ;;  %v588_v4 = vld [vmem:[%s1056_s0 + $0x60] sm:$0xf] }
  0x14   :  { %431 = vmatpush.bf16.msra.mxu2 %v765_v18  ;;  %v585_v3 = vor.u32 %v739_v62, %v582_v63  ;;  %v744_v5 = vld [vmem:[%s1056_s0 + $0x6c] sm:$0xf0]  ;;  %v742_v6 = vld [vmem:[%s1056_s0 + $0x64] sm:$0xf]  ;;  %v590_v7 = vld [vmem:[%s1056_s0 + $0x70] sm:$0xf0] }
  0x15   :  { %460 = vmatpush.bf16.msra.mxu3 %v773_v19  ;;  %v596_v8 = vld [vmem:[%s1056_s0 + $0x68] sm:$0xf]  ;;  %v745_v9 = vld [vmem:[%s1056_s0 + $0x74] sm:$0xf0]  ;;  %v743_v10 = vld [vmem:[%s1056_s0 + $0x6c] sm:$0xf]  ;;  %v589_v12 = vor.u32 %v744_v5, %v588_v4  ;;  %v593_v13 = vor.u32 %v742_v6, %v590_v7 }
  0x16   :  { %374 = vmatpush.bf16.msra.mxu0 %v748_v20  ;;  %v598_v11 = vld [vmem:[%s1056_s0 + $0x78] sm:$0xf0]  ;;  %v597_v14 = vor.u32 %v745_v9, %v596_v8 }
  0x17   :  { %403 = vmatpush.bf16.msra.mxu1 %v756_v21  ;;  %v601_v15 = vor.u32 %v743_v10, %v598_v11 }
  0x18   :  { %432 = vmatpush.bf16.msra.mxu2 %v764_v22  ;;  %v1000_v22 = vld [vmem:[%s1057_s2] ss:$0 sm:$0xff] }
  0x19   :  { %461 = vmatpush.bf16.msra.mxu3 %v772_v23 }
  0x1a   :  { %375 = vmatpush.bf16.msra.mxu0 %v747_v24 }
  0x1b   :  { %404 = vmatpush.bf16.msra.mxu1 %v755_v25 }
  0x1c   :  { %433 = vmatpush.bf16.msra.mxu2 %v763_v26  ;;  %v1005_v26 = vld [vmem:[%s1058_s3] ss:$0 sm:$0xff] }
  0x1d   :  { %462 = vmatpush.bf16.msra.mxu3 %v771_v27 }
  0x1e   :  { %376 = vmatpush.bf16.msra.mxu0 %v746_v28 }
  0x1f   :  { %405 = vmatpush.bf16.msra.mxu1 %v754_v29 }
  0x20   :  { %434 = vmatpush.bf16.msra.mxu2 %v762_v30 }
  0x21   :  { %463 = vmatpush.bf16.msra.mxu3 %v770_v31  ;;  %377 = vmatmul.bf16.vlgmr.msra.gmra.mxu0 %v541_v40 }
  0x22   :  { %406 = vmatmul.bf16.vlgmr.msra.gmra.mxu1 %v545_v41 }
  0x23   :  { %435 = vmatmul.bf16.vlgmr.msra.gmra.mxu2 %v549_v42 }
  0x24   :  { %464 = vmatmul.bf16.vlgmr.msra.gmra.mxu3 %v553_v43 }
  0x31   :  { %382 = vmatmul.bf16.gmra.mxu0 %v557_v52 }
  0x32   :  { %411 = vmatmul.bf16.gmra.mxu1 %v561_v53 }
  0x33   :  { %440 = vmatmul.bf16.gmra.mxu2 %v565_v54 }
  0x34   :  { %469 = vmatmul.bf16.gmra.mxu3 %v569_v55 }
  0x41   :  { %387 = vmatmul.bf16.gmra.mxu0 %v573_v0 }
  0x42   :  { %416 = vmatmul.bf16.gmra.mxu1 %v577_v1 }
  0x43   :  { %445 = vmatmul.bf16.gmra.mxu2 %v581_v2 }
  0x44   :  { %474 = vmatmul.bf16.gmra.mxu3 %v585_v3 }
  0x51   :  { %392 = vmatmul.bf16.gmra.mxu0 %v589_v12 }
  0x52   :  { %421 = vmatmul.bf16.gmra.mxu1 %v593_v13 }
  0x53   :  { %450 = vmatmul.bf16.gmra.mxu2 %v597_v14 }
  0x54   :  { %479 = vmatmul.bf16.gmra.mxu3 %v601_v15 }
  0x9e   :  { %v378_v16 = vpop.f32.mrf.mxu0 }
  0x9f   :  { %v407_v17 = vpop.f32.mrf.mxu1 }
  0xa0   :  { %v408_v18 = vadd.f32 %v407_v17, %v378_v16 }
  0xa6   :  { %v436_v19 = vpop.f32.mrf.mxu2  ;;  %v380_v23 = vpop.f32.mrf.mxu0 }
  0xa7   :  { %v465_v20 = vpop.f32.mrf.mxu3  ;;  %v437_v21 = vadd.f32 %v436_v19, %v408_v18  ;;  %v409_v24 = vpop.f32.mrf.mxu1 }
  0xa8   :  { %v410_v29 = vadd.f32 %v409_v24, %v380_v23 }
  0xa9   :  { %v466_v25 = vadd.f32 %v465_v20, %v437_v21 }
  0xab   :  { %v489_v27 = vmul.f32 %v1000_v22, %v466_v25 }
  0xad   :  { %v501_v28 = vadd.f32 %v1005_v26, %v489_v27 }
  0xae   :  { %v438_v30 = vpop.f32.mrf.mxu2  ;;  %v383_v34 = vpop.f32.mrf.mxu0 }
  0xaf   :  { %v467_v31 = vpop.f32.mrf.mxu3  ;;  %v509_v32 = vmul.f32 0.2, %v501_v28  ;;  %v439_v33 = vadd.f32 %v438_v30, %v410_v29  ;;  %v412_v35 = vpop.f32.mrf.mxu1 }
  0xb0   :  { %v413_v39 = vadd.f32 %v412_v35, %v383_v34 }
  0xb1   :  { %v517_v36 = vmax.f32 %v501_v28, %v509_v32  ;;  %v468_v37 = vadd.f32 %v467_v31, %v439_v33 }
  0xb3   :  { %526 = vst.msk [vmem:[%s1059_s4] sm:$0xff] %vm525_vm0, %v517_v36  ;;  %v490_v38 = vmul.f32 %v1000_v22, %v468_v37 }
  0xb5   :  { %v502_v40 = vadd.f32 %v1005_v26, %v490_v38 }
  0xb6   :  { %v441_v41 = vpop.f32.mrf.mxu2  ;;  %v385_v45 = vpop.f32.mrf.mxu0 }
  0xb7   :  { %v470_v42 = vpop.f32.mrf.mxu3  ;;  %v510_v43 = vmul.f32 0.2, %v502_v40  ;;  %v442_v44 = vadd.f32 %v441_v41, %v413_v39  ;;  %v414_v46 = vpop.f32.mrf.mxu1 }
  0xb8   :  { %v415_v51 = vadd.f32 %v414_v46, %v385_v45 }
  0xb9   :  { %v518_v47 = vmax.f32 %v502_v40, %v510_v43  ;;  %v471_v48 = vadd.f32 %v470_v42, %v442_v44 }
  0xbb   :  { %527 = vst.msk [vmem:[%s1059_s4 + $0x8] sm:$0xff] %vm525_vm0, %v518_v47  ;;  %v491_v49 = vmul.f32 %v1000_v22, %v471_v48 }
  0xbd   :  { %v503_v50 = vadd.f32 %v1005_v26, %v491_v49 }
  0xbe   :  { %v443_v52 = vpop.f32.mrf.mxu2  ;;  %v388_v56 = vpop.f32.mrf.mxu0 }
  0xbf   :  { %v472_v53 = vpop.f32.mrf.mxu3  ;;  %v511_v54 = vmul.f32 0.2, %v503_v50  ;;  %v444_v55 = vadd.f32 %v443_v52, %v415_v51  ;;  %v417_v57 = vpop.f32.mrf.mxu1 }
  0xc0   :  { %v418_v61 = vadd.f32 %v417_v57, %v388_v56 }
  0xc1   :  { %v519_v58 = vmax.f32 %v503_v50, %v511_v54  ;;  %v473_v59 = vadd.f32 %v472_v53, %v444_v55 }
  0xc3   :  { %528 = vst.msk [vmem:[%s1059_s4 + $0x10] sm:$0xff] %vm525_vm0, %v519_v58  ;;  %v492_v60 = vmul.f32 %v1000_v22, %v473_v59 }
  0xc5   :  { %v504_v62 = vadd.f32 %v1005_v26, %v492_v60 }
  0xc6   :  { %v446_v63 = vpop.f32.mrf.mxu2  ;;  %v390_v3 = vpop.f32.mrf.mxu0 }
  0xc7   :  { %v475_v0 = vpop.f32.mrf.mxu3  ;;  %v512_v1 = vmul.f32 0.2, %v504_v62  ;;  %v447_v2 = vadd.f32 %v446_v63, %v418_v61  ;;  %v419_v4 = vpop.f32.mrf.mxu1 }
  0xc8   :  { %v420_v9 = vadd.f32 %v419_v4, %v390_v3 }
  0xc9   :  { %v520_v5 = vmax.f32 %v504_v62, %v512_v1  ;;  %v476_v6 = vadd.f32 %v475_v0, %v447_v2 }
  0xcb   :  { %529 = vst.msk [vmem:[%s1059_s4 + $0x18] sm:$0xff] %vm525_vm0, %v520_v5  ;;  %v493_v7 = vmul.f32 %v1000_v22, %v476_v6 }
  0xcd   :  { %v505_v8 = vadd.f32 %v1005_v26, %v493_v7 }
  0xce   :  { %v448_v10 = vpop.f32.mrf.mxu2  ;;  %v393_v14 = vpop.f32.mrf.mxu0 }
  0xcf   :  { %v477_v11 = vpop.f32.mrf.mxu3  ;;  %v513_v12 = vmul.f32 0.2, %v505_v8  ;;  %v449_v13 = vadd.f32 %v448_v10, %v420_v9  ;;  %v422_v15 = vpop.f32.mrf.mxu1 }
  0xd0   :  { %v423_v19 = vadd.f32 %v422_v15, %v393_v14 }
  0xd1   :  { %v521_v16 = vmax.f32 %v505_v8, %v513_v12  ;;  %v478_v17 = vadd.f32 %v477_v11, %v449_v13 }
  0xd3   :  { %530 = vst.msk [vmem:[%s1059_s4 + $0x20] sm:$0xff] %vm525_vm0, %v521_v16  ;;  %v494_v18 = vmul.f32 %v1000_v22, %v478_v17 }
  0xd5   :  { %v506_v20 = vadd.f32 %v1005_v26, %v494_v18 }
  0xd6   :  { %v451_v21 = vpop.f32.mrf.mxu2  ;;  %v395_v29 = vpop.f32.mrf.mxu0 }
  0xd7   :  { %v480_v23 = vpop.f32.mrf.mxu3  ;;  %v514_v24 = vmul.f32 0.2, %v506_v20  ;;  %v452_v25 = vadd.f32 %v451_v21, %v423_v19  ;;  %v424_v30 = vpop.f32.mrf.mxu1 }
  0xd8   :  { %v425_v33 = vadd.f32 %v424_v30, %v395_v29 }
  0xd9   :  { %v522_v27 = vmax.f32 %v506_v20, %v514_v24  ;;  %v481_v28 = vadd.f32 %v480_v23, %v452_v25 }
  0xdb   :  { %531 = vst.msk [vmem:[%s1059_s4 + $0x28] sm:$0xff] %vm525_vm0, %v522_v27  ;;  %v495_v31 = vmul.f32 %v1000_v22, %v481_v28 }
  0xdd   :  { %v507_v32 = vadd.f32 %v1005_v26, %v495_v31 }
  0xde   :  { %v453_v34 = vpop.f32.mrf.mxu2 }
  0xdf   :  { %v515_v35 = vmul.f32 0.2, %v507_v32  ;;  %v454_v36 = vadd.f32 %v453_v34, %v425_v33  ;;  %v482_v37 = vpop.f32.mrf.mxu3 }
  0xe1   :  { %v523_v38 = vmax.f32 %v507_v32, %v515_v35  ;;  %v483_v39 = vadd.f32 %v482_v37, %v454_v36 }
  0xe3   :  { %532 = vst.msk [vmem:[%s1059_s4 + $0x30] sm:$0xff] %vm525_vm0, %v523_v38  ;;  %v496_v40 = vmul.f32 %v1000_v22, %v483_v39 }
  0xe5   :  { %v508_v41 = vadd.f32 %v1005_v26, %v496_v40 }
  0xe7   :  { %v516_v42 = vmul.f32 0.2, %v508_v41 }
  0xe9   :  { %v524_v43 = vmax.f32 %v508_v41, %v516_v42 }
  0xeb   :  { %533 = vst.msk [vmem:[%s1059_s4 + $0x38] sm:$0xff] %vm525_vm0, %v524_v43 }

// kernel: point_manifold_nnml_forward.17
= control target key start
LH: loop header
LB: loop body
LE: loop exit
PB: predicated region body
PF: predicated region fallthrough
CT: control target
= control target key end

     0   :  { %s2075_s3 = inlined_call_operand.vmem [shape: bf16[128,256], index: 3, kind: input, shape index: {}]   ;;  %s2076_s2 = inlined_call_operand.vmem [shape: bf16[128,256], index: 2, kind: input, shape index: {}]   ;;  %s2077_s1 = inlined_call_operand.vmem [shape: bf16[64,128], index: 1, kind: input, shape index: {}]   ;;  %s2078_s0 = inlined_call_operand.vmem [shape: bf16[256,128], index: 0, kind: input, shape index: {}]   ;;  %s2079_s4 = inlined_call_operand.vmem [shape: f32[1,256], index: 4, kind: input, shape index: {}]   ;;  %s2080_s5 = inlined_call_operand.vmem [shape: f32[1,256], index: 5, kind: input, shape index: {}]   ;;  %s2081_s6 = inlined_call_operand.vmem [shape: f32[64,256], index: 6, kind: output, shape index: {}]  }
   0x1   :  { %v1053_v0 = vld [vmem:[%s2075_s3 + $0x70] sm:$0xf]  ;;  %v1206_v1 = vld [vmem:[%s2075_s3 + $0x74] sm:$0xf0]  ;;  %v1205_v2 = vld [vmem:[%s2075_s3 + $0x74] sm:$0xf] }
   0x2   :  { %v1054_v3 = vor.u32 %v1206_v1, %v1053_v0  ;;  %v1055_v4 = vld [vmem:[%s2075_s3 + $0x78] sm:$0xf0]  ;;  %v1181_v5 = vld [vmem:[%s2076_s2 + $0x70] sm:$0xf]  ;;  %v1238_v6 = vld [vmem:[%s2076_s2 + $0x74] sm:$0xf0] }
   0x3   :  { %v1058_v7 = vor.u32 %v1205_v2, %v1055_v4  ;;  %v1308_v8 = vor.u32 %v1238_v6, %v1181_v5  ;;  %v1237_v9 = vld [vmem:[%s2076_s2 + $0x74] sm:$0xf]  ;;  %v1183_v10 = vld [vmem:[%s2076_s2 + $0x78] sm:$0xf0]  ;;  %v1045_v11 = vld [vmem:[%s2075_s3 + $0x60] sm:$0xf] }
   0x4   :  { %153 = vmatpush.bf16.msra.mxu0 %v1054_v3  ;;  %v1319_v12 = vor.u32 %v1237_v9, %v1183_v10  ;;  %v1204_v13 = vld [vmem:[%s2075_s3 + $0x64] sm:$0xf0]  ;;  %v1203_v14 = vld [vmem:[%s2075_s3 + $0x64] sm:$0xf]  ;;  %v1047_v15 = vld [vmem:[%s2075_s3 + $0x68] sm:$0xf0] }
   0x5   :  { %182 = vmatpush.bf16.msra.mxu1 %v1058_v7  ;;  %1239 = vmatpush.bf16.msra.mxu2 %v1308_v8  ;;  %v1046_v16 = vor.u32 %v1204_v13, %v1045_v11  ;;  %v1050_v17 = vor.u32 %v1203_v14, %v1047_v15  ;;  %v1173_v18 = vld [vmem:[%s2076_s2 + $0x60] sm:$0xf]  ;;  %v1236_v19 = vld [vmem:[%s2076_s2 + $0x64] sm:$0xf0]  ;;  %v1235_v20 = vld [vmem:[%s2076_s2 + $0x64] sm:$0xf] }
   0x6   :  { %1247 = vmatpush.bf16.msra.mxu3 %v1319_v12  ;;  %v1341_v21 = vor.u32 %v1236_v19, %v1173_v18  ;;  %v1175_v22 = vld [vmem:[%s2076_s2 + $0x68] sm:$0xf0]  ;;  %v1037_v23 = vld [vmem:[%s2075_s3 + $0x50] sm:$0xf]  ;;  %v1202_v24 = vld [vmem:[%s2075_s3 + $0x54] sm:$0xf0] }
   0x7   :  { %v1352_v25 = vor.u32 %v1235_v20, %v1175_v22  ;;  %v1201_v26 = vld [vmem:[%s2075_s3 + $0x54] sm:$0xf]  ;;  %v1039_v27 = vld [vmem:[%s2075_s3 + $0x58] sm:$0xf0]  ;;  %v1165_v28 = vld [vmem:[%s2076_s2 + $0x50] sm:$0xf]  ;;  %v1038_v29 = vor.u32 %v1202_v24, %v1037_v23 }
   0x8   :  { %154 = vmatpush.bf16.msra.mxu0 %v1046_v16  ;;  %v1234_v30 = vld [vmem:[%s2076_s2 + $0x54] sm:$0xf0]  ;;  %v1233_v31 = vld [vmem:[%s2076_s2 + $0x54] sm:$0xf]  ;;  %v1167_v32 = vld [vmem:[%s2076_s2 + $0x58] sm:$0xf0]  ;;  %v1042_v33 = vor.u32 %v1201_v26, %v1039_v27 }
   0x9   :  { %183 = vmatpush.bf16.msra.mxu1 %v1050_v17  ;;  %1240 = vmatpush.bf16.msra.mxu2 %v1341_v21  ;;  %v1373_v34 = vor.u32 %v1234_v30, %v1165_v28  ;;  %v1029_v35 = vld [vmem:[%s2075_s3 + $0x40] sm:$0xf]  ;;  %v1200_v36 = vld [vmem:[%s2075_s3 + $0x44] sm:$0xf0]  ;;  %v1199_v37 = vld [vmem:[%s2075_s3 + $0x44] sm:$0xf]  ;;  %v1385_v38 = vor.u32 %v1233_v31, %v1167_v32 }
   0xa   :  { %1248 = vmatpush.bf16.msra.mxu3 %v1352_v25  ;;  %v1031_v39 = vld [vmem:[%s2075_s3 + $0x48] sm:$0xf0]  ;;  %v1157_v40 = vld [vmem:[%s2076_s2 + $0x40] sm:$0xf]  ;;  %v1232_v41 = vld [vmem:[%s2076_s2 + $0x44] sm:$0xf0]  ;;  %v1030_v44 = vor.u32 %v1200_v36, %v1029_v35 }
   0xb   :  { %v1231_v42 = vld [vmem:[%s2076_s2 + $0x44] sm:$0xf]  ;;  %v1159_v43 = vld [vmem:[%s2076_s2 + $0x48] sm:$0xf0]  ;;  %v1034_v45 = vor.u32 %v1199_v37, %v1031_v39  ;;  %v1403_v46 = vor.u32 %v1232_v41, %v1157_v40  ;;  %v1021_v47 = vld [vmem:[%s2075_s3 + $0x30] sm:$0xf] }
   0xc   :  { %155 = vmatpush.bf16.msra.mxu0 %v1038_v29  ;;  %v1198_v48 = vld [vmem:[%s2075_s3 + $0x34] sm:$0xf0]  ;;  %v1197_v49 = vld [vmem:[%s2075_s3 + $0x34] sm:$0xf]  ;;  %v1415_v50 = vor.u32 %v1231_v42, %v1159_v43  ;;  %v1023_v51 = vld [vmem:[%s2075_s3 + $0x38] sm:$0xf0] }
   0xd   :  { %184 = vmatpush.bf16.msra.mxu1 %v1042_v33  ;;  %1241 = vmatpush.bf16.msra.mxu2 %v1373_v34  ;;  %v1149_v52 = vld [vmem:[%s2076_s2 + $0x30] sm:$0xf]  ;;  %v1230_v53 = vld [vmem:[%s2076_s2 + $0x34] sm:$0xf0]  ;;  %v1229_v54 = vld [vmem:[%s2076_s2 + $0x34] sm:$0xf]  ;;  %v1022_v56 = vor.u32 %v1198_v48, %v1021_v47  ;;  %v1026_v57 = vor.u32 %v1197_v49, %v1023_v51 }
   0xe   :  { %1249 = vmatpush.bf16.msra.mxu3 %v1385_v38  ;;  %v1151_v55 = vld [vmem:[%s2076_s2 + $0x38] sm:$0xf0]  ;;  %v1433_v58 = vor.u32 %v1230_v53, %v1149_v52  ;;  %v1013_v59 = vld [vmem:[%s2075_s3 + $0x20] sm:$0xf]  ;;  %v1196_v60 = vld [vmem:[%s2075_s3 + $0x24] sm:$0xf0] }
   0xf   :  { %v1195_v61 = vld [vmem:[%s2075_s3 + $0x24] sm:$0xf]  ;;  %v1445_v62 = vor.u32 %v1229_v54, %v1151_v55  ;;  %v1015_v63 = vld [vmem:[%s2075_s3 + $0x28] sm:$0xf0]  ;;  %v1141_v0 = vld [vmem:[%s2076_s2 + $0x20] sm:$0xf]  ;;  %v1014_v4 = vor.u32 %v1196_v60, %v1013_v59 }
  0x10   :  { %156 = vmatpush.bf16.msra.mxu0 %v1030_v44  ;;  %v1228_v1 = vld [vmem:[%s2076_s2 + $0x24] sm:$0xf0]  ;;  %v1227_v2 = vld [vmem:[%s2076_s2 + $0x24] sm:$0xf]  ;;  %v1143_v3 = vld [vmem:[%s2076_s2 + $0x28] sm:$0xf0]  ;;  %v1018_v5 = vor.u32 %v1195_v61, %v1015_v63 }
  0x11   :  { %185 = vmatpush.bf16.msra.mxu1 %v1034_v45  ;;  %1242 = vmatpush.bf16.msra.mxu2 %v1403_v46  ;;  %v1142_v6 = vor.u32 %v1228_v1, %v1141_v0  ;;  %v1005_v7 = vld [vmem:[%s2075_s3 + $0x10] sm:$0xf]  ;;  %v1194_v9 = vld [vmem:[%s2075_s3 + $0x14] sm:$0xf0]  ;;  %v1193_v10 = vld [vmem:[%s2075_s3 + $0x14] sm:$0xf]  ;;  %v1146_v11 = vor.u32 %v1227_v2, %v1143_v3 }
  0x12   :  { %1250 = vmatpush.bf16.msra.mxu3 %v1415_v50  ;;  %v1007_v13 = vld [vmem:[%s2075_s3 + $0x18] sm:$0xf0]  ;;  %v1133_v14 = vld [vmem:[%s2076_s2 + $0x10] sm:$0xf]  ;;  %v1226_v15 = vld [vmem:[%s2076_s2 + $0x14] sm:$0xf0]  ;;  %v1006_v18 = vor.u32 %v1194_v9, %v1005_v7 }
  0x13   :  { %v1225_v16 = vld [vmem:[%s2076_s2 + $0x14] sm:$0xf]  ;;  %v1135_v17 = vld [vmem:[%s2076_s2 + $0x18] sm:$0xf0]  ;;  %v1010_v19 = vor.u32 %v1193_v10, %v1007_v13  ;;  %v1134_v20 = vor.u32 %v1226_v15, %v1133_v14  ;;  %v997_v22 = vld [vmem:[%s2075_s3] sm:$0xf] }
  0x14   :  { %157 = vmatpush.bf16.msra.mxu0 %v1022_v56  ;;  %v1192_v23 = vld [vmem:[%s2075_s3 + $0x4] sm:$0xf0]  ;;  %v1191_v24 = vld [vmem:[%s2075_s3 + $0x4] sm:$0xf]  ;;  %v1138_v26 = vor.u32 %v1225_v16, %v1135_v17  ;;  %v999_v27 = vld [vmem:[%s2075_s3 + $0x8] sm:$0xf0] }
  0x15   :  { %186 = vmatpush.bf16.msra.mxu1 %v1026_v57  ;;  %1243 = vmatpush.bf16.msra.mxu2 %v1433_v58  ;;  %v1125_v28 = vld [vmem:[%s2076_s2] sm:$0xf]  ;;  %v1224_v29 = vld [vmem:[%s2076_s2 + $0x4] sm:$0xf0]  ;;  %v1223_v30 = vld [vmem:[%s2076_s2 + $0x4] sm:$0xf]  ;;  %v998_v32 = vor.u32 %v1192_v23, %v997_v22  ;;  %v1002_v33 = vor.u32 %v1191_v24, %v999_v27 }
  0x16   :  { %1251 = vmatpush.bf16.msra.mxu3 %v1445_v62  ;;  %v1127_v31 = vld [vmem:[%s2076_s2 + $0x8] sm:$0xf0]  ;;  %v1126_v35 = vor.u32 %v1224_v29, %v1125_v28  ;;  %v1187_v37 = vld [vmem:[%s2077_s1] sm:$0xff]  ;;  %v1213_v39 = vld [vmem:[%s2078_s0 + $0x30] sm:$0xff] }
  0x17   :  { %v1130_v36 = vor.u32 %v1223_v30, %v1127_v31  ;;  %v1207_v40 = vld [vmem:[%s2078_s0] sm:$0xff]  ;;  %v1217_v41 = vld [vmem:[%s2078_s0 + $0x50] sm:$0xff]  ;;  %v1208_v42 = vld [vmem:[%s2078_s0 + $0x8] sm:$0xff] }
  0x18   :  { %158 = vmatpush.bf16.msra.mxu0 %v1014_v4  ;;  %v1218_v43 = vld [vmem:[%s2078_s0 + $0x58] sm:$0xff]  ;;  %v1209_v44 = vld [vmem:[%s2078_s0 + $0x10] sm:$0xff]  ;;  %v1219_v45 = vld [vmem:[%s2078_s0 + $0x60] sm:$0xff] }
  0x19   :  { %187 = vmatpush.bf16.msra.mxu1 %v1018_v5  ;;  %1244 = vmatpush.bf16.msra.mxu2 %v1142_v6  ;;  %v1220_v47 = vld [vmem:[%s2078_s0 + $0x68] sm:$0xff]  ;;  %v1211_v48 = vld [vmem:[%s2078_s0 + $0x20] sm:$0xff]  ;;  %v1222_v60 = vld [vmem:[%s2078_s0 + $0x78] sm:$0xff] }
  0x1a   :  { %1252 = vmatpush.bf16.msra.mxu3 %v1146_v11  ;;  %v1212_v57 = vld [vmem:[%s2078_s0 + $0x28] sm:$0xff]  ;;  %v23_v2 = vld [vmem:[%s2079_s4] sm:$0x3] }
  0x1b   :  { %v24_v3 = vld [vmem:[%s2080_s5] sm:$0x3]  ;;  %v1596_v4 = vperm.slane %v23_v2, 0 }
  0x1c   :  { %159 = vmatpush.bf16.msra.mxu0 %v1006_v18  ;;  %v1604_v10 = vperm.slane %v24_v3, 0  ;;  %v1607_v14 = vperm.slane %v24_v3, 1 }
  0x1d   :  { %188 = vmatpush.bf16.msra.mxu1 %v1010_v19  ;;  %1245 = vmatpush.bf16.msra.mxu2 %v1134_v20 }
  0x1e   :  { %1253 = vmatpush.bf16.msra.mxu3 %v1138_v26 }
  0x20   :  { %160 = vmatpush.bf16.msra.mxu0 %v998_v32 }
  0x21   :  { %189 = vmatpush.bf16.msra.mxu1 %v1002_v33  ;;  %1246 = vmatpush.bf16.msra.mxu2 %v1126_v35 }
  0x22   :  { %1254 = vmatpush.bf16.msra.mxu3 %v1130_v36 }
  0x23   :  { %161 = vmatmul.bf16.vlgmr.msra.gmra.mxu0 %v1187_v37 }
  0x24   :  { %477 = vmatpush.bf16.msrb.mxu0 %v1308_v8  ;;  %190 = vmatmul.bf16.vlgmr.msra.gmra.mxu1 %v1187_v37  ;;  %v1188_v8 = vld [vmem:[%s2077_s1 + $0x8] sm:$0xff] }
  0x25   :  { %566 = vmatpush.bf16.msrb.mxu1 %v1319_v12  ;;  %515 = vmatmul.bf16.vlgmr.msra.gmra.mxu2 %v1213_v39  ;;  %v1214_v12 = vld [vmem:[%s2078_s0 + $0x38] sm:$0xff] }
  0x26   :  { %604 = vmatmul.bf16.vlgmr.msra.gmra.mxu3 %v1213_v39 }
  0x28   :  { %478 = vmatpush.bf16.msrb.mxu0 %v1341_v21  ;;  %v1189_v21 = vld [vmem:[%s2077_s1 + $0x10] sm:$0xff] }
  0x29   :  { %567 = vmatpush.bf16.msrb.mxu1 %v1352_v25  ;;  %v1215_v25 = vld [vmem:[%s2078_s0 + $0x40] sm:$0xff] }
  0x2c   :  { %479 = vmatpush.bf16.msrb.mxu0 %v1373_v34  ;;  %v1190_v34 = vld [vmem:[%s2077_s1 + $0x18] sm:$0xff] }
  0x2d   :  { %568 = vmatpush.bf16.msrb.mxu1 %v1385_v38  ;;  %v1216_v38 = vld [vmem:[%s2078_s0 + $0x48] sm:$0xff] }
  0x30   :  { %480 = vmatpush.bf16.msrb.mxu0 %v1403_v46  ;;  %v1210_v46 = vld [vmem:[%s2078_s0 + $0x18] sm:$0xff] }
  0x31   :  { %569 = vmatpush.bf16.msrb.mxu1 %v1415_v50  ;;  %v1221_v50 = vld [vmem:[%s2078_s0 + $0x70] sm:$0xff] }
  0x33   :  { %166 = vmatmul.bf16.gmra.mxu0 %v1188_v8 }
  0x34   :  { %481 = vmatpush.bf16.msrb.mxu0 %v1433_v58  ;;  %195 = vmatmul.bf16.gmra.mxu1 %v1188_v8 }
  0x35   :  { %570 = vmatpush.bf16.msrb.mxu1 %v1445_v62  ;;  %520 = vmatmul.bf16.gmra.mxu2 %v1214_v12 }
  0x36   :  { %609 = vmatmul.bf16.gmra.mxu3 %v1214_v12 }
  0x38   :  { %482 = vmatpush.bf16.msrb.mxu0 %v1142_v6  ;;  %v1600_v6 = vperm.slane %v23_v2, 1 }
  0x39   :  { %571 = vmatpush.bf16.msrb.mxu1 %v1146_v11 }
  0x3c   :  { %483 = vmatpush.bf16.msrb.mxu0 %v1134_v20 }
  0x3d   :  { %572 = vmatpush.bf16.msrb.mxu1 %v1138_v26 }
  0x40   :  { %484 = vmatpush.bf16.msrb.mxu0 %v1126_v35 }
  0x41   :  { %573 = vmatpush.bf16.msrb.mxu1 %v1130_v36 }
  0x43   :  { %171 = vmatmul.bf16.gmra.mxu0 %v1189_v21 }
  0x44   :  { %200 = vmatmul.bf16.gmra.mxu1 %v1189_v21 }
  0x45   :  { %525 = vmatmul.bf16.gmra.mxu2 %v1215_v25 }
  0x46   :  { %614 = vmatmul.bf16.gmra.mxu3 %v1215_v25 }
  0x53   :  { %176 = vmatmul.bf16.gmra.mxu0 %v1190_v34 }
  0x54   :  { %205 = vmatmul.bf16.gmra.mxu1 %v1190_v34 }
  0x55   :  { %530 = vmatmul.bf16.gmra.mxu2 %v1216_v38 }
  0x56   :  { %619 = vmatmul.bf16.gmra.mxu3 %v1216_v38 }
  0x63   :  { %485 = vmatmul.bf16.vlgmr.msrb.gmra.mxu0 %v1207_v40 }
  0x64   :  { %574 = vmatmul.bf16.vlgmr.msrb.gmra.mxu1 %v1207_v40 }
  0x65   :  { %535 = vmatmul.bf16.gmra.mxu2 %v1217_v41 }
  0x66   :  { %624 = vmatmul.bf16.gmra.mxu3 %v1217_v41 }
  0x73   :  { %490 = vmatmul.bf16.gmra.mxu0 %v1208_v42 }
  0x74   :  { %579 = vmatmul.bf16.gmra.mxu1 %v1208_v42 }
  0x75   :  { %540 = vmatmul.bf16.gmra.mxu2 %v1218_v43 }
  0x76   :  { %629 = vmatmul.bf16.gmra.mxu3 %v1218_v43 }
  0x83   :  { %495 = vmatmul.bf16.gmra.mxu0 %v1209_v44 }
  0x84   :  { %584 = vmatmul.bf16.gmra.mxu1 %v1209_v44 }
  0x85   :  { %545 = vmatmul.bf16.gmra.mxu2 %v1219_v45 }
  0x86   :  { %634 = vmatmul.bf16.gmra.mxu3 %v1219_v45 }
  0x93   :  { %500 = vmatmul.bf16.gmra.mxu0 %v1210_v46 }
  0x94   :  { %589 = vmatmul.bf16.gmra.mxu1 %v1210_v46 }
  0x95   :  { %550 = vmatmul.bf16.gmra.mxu2 %v1220_v47 }
  0x96   :  { %639 = vmatmul.bf16.gmra.mxu3 %v1220_v47 }
  0xa0   :  { %v162_v49 = vpop.f32.mrf.mxu0 }
  0xa1   :  { %v191_v51 = vpop.f32.mrf.mxu1  ;;  %v216_v18 = vmul.f32 %v1596_v4, %v162_v49 }
  0xa2   :  { %v217_v22 = vmul.f32 %v1600_v6, %v191_v51 }
  0xa3   :  { %505 = vmatmul.bf16.gmra.mxu0 %v1211_v48  ;;  %v1627_v27 = vadd.f32 %v1604_v10, %v216_v18 }
  0xa4   :  { %594 = vmatmul.bf16.gmra.mxu1 %v1211_v48  ;;  %v1631_v31 = vadd.f32 %v1607_v14, %v217_v22 }
  0xa5   :  { %555 = vmatmul.bf16.gmra.mxu2 %v1221_v50 }
  0xa6   :  { %644 = vmatmul.bf16.gmra.mxu3 %v1221_v50 }
  0xa8   :  { %v516_v52 = vpop.f32.mrf.mxu2  ;;  %v164_v54 = vpop.f32.mrf.mxu0 }
  0xa9   :  { %v605_v53 = vpop.f32.mrf.mxu3  ;;  %v193_v55 = vpop.f32.mrf.mxu1  ;;  %v727_v16 = vmul.f32 %v516_v52, %v1596_v4  ;;  %v218_v21 = vmul.f32 %v1596_v4, %v164_v54 }
  0xaa   :  { %v728_v19 = vmul.f32 %v605_v53, %v1600_v6  ;;  %v219_v38 = vmul.f32 %v1600_v6, %v193_v55 }
  0xab   :  { %v1659_v43 = vadd.f32 %v1604_v10, %v218_v21 }
  0xac   :  { %v1663_v47 = vadd.f32 %v1607_v14, %v219_v38 }
  0xb0   :  { %v518_v56 = vpop.f32.mrf.mxu2  ;;  %v1579_v59 = vpop.f32.mrf.mxu0 }
  0xb1   :  { %v607_v58 = vpop.f32.mrf.mxu3  ;;  %v1584_v61 = vpop.f32.mrf.mxu1  ;;  %v729_v39 = vmul.f32 %v518_v56, %v1596_v4  ;;  %v220_v56 = vmul.f32 %v1596_v4, %v1579_v59 }
  0xb2   :  { %v730_v25 = vmul.f32 %v607_v58, %v1600_v6 }
  0xb3   :  { %510 = vmatmul.bf16.gmra.mxu0 %v1212_v57 }
  0xb4   :  { %599 = vmatmul.bf16.gmra.mxu1 %v1212_v57 }
  0xb5   :  { %560 = vmatmul.bf16.gmra.mxu2 %v1222_v60 }
  0xb6   :  { %649 = vmatmul.bf16.gmra.mxu3 %v1222_v60  ;;  %v221_v60 = vmul.f32 %v1600_v6, %v1584_v61 }
  0xb8   :  { %v521_v62 = vpop.f32.mrf.mxu2  ;;  %v1586_v0 = vpop.f32.mrf.mxu0 }
  0xb9   :  { %v610_v63 = vpop.f32.mrf.mxu3  ;;  %v1588_v1 = vpop.f32.mrf.mxu1  ;;  %v731_v53 = vmul.f32 %v521_v62, %v1596_v4 }
  0xba   :  { %v732_v57 = vmul.f32 %v610_v63, %v1600_v6 }
  0xc0   :  { %v1598_v5 = vpop.f32.mrf.mxu2  ;;  %v172_v9 = vpop.f32.mrf.mxu0 }
  0xc1   :  { %v1602_v7 = vpop.f32.mrf.mxu3  ;;  %v224_v11 = vmul.f32 %v1596_v4, %v172_v9  ;;  %v201_v13 = vpop.f32.mrf.mxu1  ;;  %v1693_v9 = vadd.f32 %v1604_v10, %v220_v56  ;;  %v733_v22 = vmul.f32 %v1598_v5, %v1596_v4 }
  0xc2   :  { %v225_v15 = vmul.f32 %v1600_v6, %v201_v13  ;;  %v1697_v13 = vadd.f32 %v1607_v14, %v221_v60 }
  0xc3   :  { %v1612_v17 = vadd.f32 %v1604_v10, %v224_v11  ;;  %2101 = vst [vmem:[#allocation5_spill] sm:$0xff] %v1693_v9 }
  0xc4   :  { %v1617_v20 = vadd.f32 %v1607_v14, %v225_v15  ;;  %2102 = vst [vmem:[#allocation6_spill] sm:$0xff] %v1697_v13 }
  0xc5   :  { %v1621_v23 = vadd.f32 %v727_v16, %v1612_v17 }
  0xc6   :  { %v1624_v24 = vadd.f32 %v728_v19, %v1617_v20 }
  0xc8   :  { %v526_v26 = vpop.f32.mrf.mxu2  ;;  %v174_v30 = vpop.f32.mrf.mxu0 }
  0xc9   :  { %v799_v28 = vmul.f32 %v526_v26, %v1596_v4  ;;  %v615_v29 = vpop.f32.mrf.mxu3  ;;  %v226_v33 = vmul.f32 %v1596_v4, %v174_v30  ;;  %v203_v35 = vpop.f32.mrf.mxu1  ;;  %v734_v30 = vmul.f32 %v1602_v7, %v1600_v6 }
  0xca   :  { %v800_v32 = vmul.f32 %v615_v29, %v1600_v6  ;;  %v227_v37 = vmul.f32 %v1600_v6, %v203_v35  ;;  %v222_v29 = vmul.f32 %v1596_v4, %v1586_v0 }
  0xcb   :  { %v1636_v36 = vadd.f32 %v799_v28, %v1627_v27  ;;  %v1644_v12 = vadd.f32 %v1604_v10, %v226_v33  ;;  %v223_v33 = vmul.f32 %v1600_v6, %v1588_v1 }
  0xcc   :  { %v1641_v8 = vadd.f32 %v800_v32, %v1631_v31  ;;  %v1649_v34 = vadd.f32 %v1607_v14, %v227_v37 }
  0xcd   :  { %v1653_v40 = vadd.f32 %v729_v39, %v1644_v12  ;;  %v1729_v39 = vadd.f32 %v1604_v10, %v222_v29 }
  0xce   :  { %2098 = vst [vmem:[#allocation2_spill] sm:$0xff] %v1649_v34  ;;  %v1656_v41 = vadd.f32 %v730_v25, %v1649_v34  ;;  %v1733_v25 = vadd.f32 %v1607_v14, %v223_v33 }
  0xcf   :  { %2105 = vst [vmem:[#allocation9_spill] sm:$0xff] %v1729_v39 }
  0xd0   :  { %v528_v42 = vpop.f32.mrf.mxu2  ;;  %v177_v46 = vpop.f32.mrf.mxu0  ;;  %2106 = vst [vmem:[#allocation10_spill] sm:$0xff] %v1733_v25 }
  0xd1   :  { %v801_v44 = vmul.f32 %v528_v42, %v1596_v4  ;;  %v617_v45 = vpop.f32.mrf.mxu3  ;;  %v228_v49 = vmul.f32 %v1596_v4, %v177_v46  ;;  %v206_v50 = vpop.f32.mrf.mxu1 }
  0xd2   :  { %v802_v48 = vmul.f32 %v617_v45, %v1600_v6  ;;  %v229_v52 = vmul.f32 %v1600_v6, %v206_v50 }
  0xd3   :  { %v1668_v51 = vadd.f32 %v801_v44, %v1659_v43  ;;  %v1676_v55 = vadd.f32 %v1604_v10, %v228_v49 }
  0xd4   :  { %v1673_v54 = vadd.f32 %v802_v48, %v1663_v47  ;;  %v1682_v58 = vadd.f32 %v1607_v14, %v229_v52 }
  0xd5   :  { %2099 = vst [vmem:[#allocation3_spill] sm:$0xff] %v1676_v55  ;;  %v1687_v2 = vadd.f32 %v731_v53, %v1676_v55 }
  0xd6   :  { %2100 = vst [vmem:[#allocation4_spill] sm:$0xff] %v1682_v58  ;;  %v1690_v62 = vadd.f32 %v732_v57, %v1682_v58 }
  0xd8   :  { %v531_v3 = vpop.f32.mrf.mxu2  ;;  %v179_v63 = vpop.f32.mrf.mxu0 }
  0xd9   :  { %v803_v59 = vmul.f32 %v531_v3, %v1596_v4  ;;  %v620_v11 = vpop.f32.mrf.mxu3  ;;  %v230_v61 = vmul.f32 %v1596_v4, %v179_v63  ;;  %v208_v16 = vpop.f32.mrf.mxu1 }
  0xda   :  { %v804_v15 = vmul.f32 %v620_v11, %v1600_v6  ;;  %v231_v19 = vmul.f32 %v1600_v6, %v208_v16 }
  0xdb   :  { %v1702_v18 = vadd.f32 %v803_v59, %v1693_v9  ;;  %v1711_v28 = vadd.f32 %v1604_v10, %v230_v61 }
  0xdc   :  { %v1708_v26 = vadd.f32 %v804_v15, %v1697_v13  ;;  %v1718_v32 = vadd.f32 %v1607_v14, %v231_v19 }
  0xdd   :  { %2103 = vst [vmem:[#allocation7_spill] sm:$0xff] %v1711_v28  ;;  %v1723_v5 = vadd.f32 %v733_v22, %v1711_v28 }
  0xde   :  { %2104 = vst [vmem:[#allocation8_spill] sm:$0xff] %v1718_v32  ;;  %v1726_v35 = vadd.f32 %v734_v30, %v1718_v32 }
  0xe0   :  { %v533_v37 = vpop.f32.mrf.mxu2  ;;  %v486_v7 = vpop.f32.mrf.mxu0 }
  0xe1   :  { %v805_v0 = vmul.f32 %v533_v37, %v1596_v4  ;;  %v622_v21 = vpop.f32.mrf.mxu3  ;;  %v655_v1 = vmul.f32 %v486_v7, %v1596_v4  ;;  %v575_v42 = vpop.f32.mrf.mxu1 }
  0xe2   :  { %v806_v38 = vmul.f32 %v622_v21, %v1600_v6  ;;  %v656_v45 = vmul.f32 %v575_v42, %v1600_v6 }
  0xe3   :  { %v1738_v44 = vadd.f32 %v805_v0, %v1729_v39  ;;  %v1745_v46 = vadd.f32 %v655_v1, %v1627_v27 }
  0xe4   :  { %v1742_v10 = vadd.f32 %v806_v38, %v1733_v25  ;;  %v1748_v48 = vadd.f32 %v656_v45, %v1631_v31 }
  0xe6   :  { %2107 = vst [vmem:[#allocation11_spill] sm:$0xff] %v1742_v10 }
  0xe8   :  { %v536_v14 = vpop.f32.mrf.mxu2  ;;  %v488_v50 = vpop.f32.mrf.mxu0 }
  0xe9   :  { %v625_v49 = vpop.f32.mrf.mxu3  ;;  %v657_v52 = vmul.f32 %v488_v50, %v1596_v4  ;;  %v577_v53 = vpop.f32.mrf.mxu1  ;;  %v807_v38 = vmul.f32 %v536_v14, %v1596_v4  ;;  %v759_v14 = vmul.f32 0.2, %v1621_v23 }
  0xea   :  { %v658_v56 = vmul.f32 %v577_v53, %v1600_v6  ;;  %v808_v1 = vmul.f32 %v625_v49, %v1600_v6 }
  0xeb   :  { %v1753_v57 = vadd.f32 %v657_v52, %v1659_v43  ;;  %v823_v52 = vadd.f32 %v807_v38, %v1612_v17 }
  0xec   :  { %v1756_v60 = vadd.f32 %v658_v56, %v1663_v47 }
  0xf0   :  { %v538_v3 = vpop.f32.mrf.mxu2  ;;  %v491_v11 = vpop.f32.mrf.mxu0 }
  0xf1   :  { %v627_v59 = vpop.f32.mrf.mxu3  ;;  %v659_v63 = vmul.f32 %v491_v11, %v1596_v4  ;;  %v580_v15 = vpop.f32.mrf.mxu1  ;;  %v824_v11 = vadd.f32 %v808_v1, %v1617_v20  ;;  %v775_v1 = vmax.f32 %v1621_v23, %v759_v14 }
  0xf2   :  { %v660_v61 = vmul.f32 %v580_v15, %v1600_v6  ;;  %v810_v38 = vmul.f32 %v627_v59, %v1600_v6 }
  0xf3   :  { %v1761_v16 = vadd.f32 %v659_v63, %v1693_v9 }
  0xf4   :  { %v1764_v19 = vadd.f32 %v660_v61, %v1697_v13  ;;  %v760_v61 = vmul.f32 0.2, %v1624_v24 }
  0xf8   :  { %v541_v22 = vpop.f32.mrf.mxu2  ;;  %v493_v30 = vpop.f32.mrf.mxu0 }
  0xf9   :  { %v630_v29 = vpop.f32.mrf.mxu3  ;;  %v661_v33 = vmul.f32 %v493_v30, %v1596_v4  ;;  %v582_v37 = vpop.f32.mrf.mxu1  ;;  %v839_v30 = vmul.f32 0.2, %v823_v52 }
  0xfa   :  { %v662_v0 = vmul.f32 %v582_v37, %v1600_v6 }
  0xfb   :  { %v1769_v21 = vadd.f32 %v661_v33, %v1729_v39  ;;  %v809_v33 = vmul.f32 %v538_v3, %v1596_v4 }
  0xfc   :  { %v1772_v7 = vadd.f32 %v662_v0, %v1733_v25  ;;  %v840_v0 = vmul.f32 0.2, %v824_v11  ;;  %v776_v25 = vmax.f32 %v1624_v24, %v760_v61  ;;  %v761_v24 = vmul.f32 0.2, %v1653_v40 }
  0xfd   :  { %2108 = vst [vmem:[#allocation12_spill] sm:$0xff] %v1769_v21  ;;  %v825_v13 = vadd.f32 %v809_v33, %v1644_v12  ;;  %v762_v61 = vmul.f32 0.2, %v1656_v41 }
  0xfe   :  { %2109 = vst [vmem:[#allocation13_spill] sm:$0xff] %v1772_v7  ;;  %v855_v7 = vmax.f32 %v823_v52, %v839_v30  ;;  %v856_v59 = vmax.f32 %v824_v11, %v840_v0  ;;  %v811_v11 = vmul.f32 %v541_v22, %v1596_v4 }
  0xff   :  { %v841_v30 = vmul.f32 0.2, %v825_v13 }
 0x100   :  { %v1776_v42 = vpop.f32.mrf.mxu2  ;;  %v496_v50 = vpop.f32.mrf.mxu0 }
 0x101   :  { %v1778_v45 = vpop.f32.mrf.mxu3  ;;  %v663_v53 = vmul.f32 %v496_v50, %v1596_v4  ;;  %v585_v56 = vpop.f32.mrf.mxu1 }
 0x102   :  { %v664_v63 = vmul.f32 %v585_v56, %v1600_v6 }
 0x103   :  { %v679_v15 = vadd.f32 %v663_v53, %v1612_v17 }
 0x104   :  { %v680_v49 = vadd.f32 %v664_v63, %v1617_v20 }
 0x105   :  { %v695_v37 = vmul.f32 0.2, %v679_v15 }
 0x106   :  { %v696_v50 = vmul.f32 0.2, %v680_v49 }
 0x107   :  { %v711_v10 = vmax.f32 %v679_v15, %v695_v37  ;;  %v826_v15 = vadd.f32 %v810_v38, %v1649_v34 }
 0x108   :  { %v1791_v56 = vpop.f32.mrf.mxu2  ;;  %v712_v53 = vmax.f32 %v680_v49, %v696_v50  ;;  %v498_v63 = vpop.f32.mrf.mxu0 }
 0x109   :  { %v1794_v39 = vpop.f32.mrf.mxu3  ;;  %v791_v3 = vmax.f32 %v711_v10, %v775_v1  ;;  %v665_v9 = vmul.f32 %v498_v63, %v1596_v4  ;;  %v587_v21 = vpop.f32.mrf.mxu1  ;;  %v842_v0 = vmul.f32 0.2, %v826_v15  ;;  %v1817_v1 = vmul.f32 0.2, %v1641_v8 }
 0x10a   :  { %v792_v37 = vmax.f32 %v712_v53, %v776_v25  ;;  %v666_v23 = vmul.f32 %v587_v21, %v1600_v6  ;;  %v812_v25 = vmul.f32 %v630_v29, %v1600_v6  ;;  %v778_v63 = vmax.f32 %v1656_v41, %v762_v61 }
 0x10b   :  { %v681_v14 = vadd.f32 %v665_v9, %v1644_v12  ;;  %v1802_v49 = vmax.f32 %v791_v3, %v855_v7  ;;  %v777_v9 = vmax.f32 %v1653_v40, %v761_v24  ;;  %v1814_v7 = vmul.f32 0.2, %v1636_v36 }
 0x10c   :  { %v682_v52 = vadd.f32 %v666_v23, %v1649_v34  ;;  %v1806_v10 = vmax.f32 %v792_v37, %v856_v59  ;;  %v857_v59 = vmax.f32 %v825_v13, %v841_v30  ;;  %v827_v29 = vadd.f32 %v811_v11, %v1676_v55 }
 0x10d   :  { %v697_v33 = vmul.f32 0.2, %v681_v14  ;;  %v828_v24 = vadd.f32 %v812_v25, %v1682_v58  ;;  %v763_v41 = vmul.f32 0.2, %v1687_v2  ;;  %v764_v30 = vmul.f32 0.2, %v1690_v62 }
 0x10e   :  { %v698_v21 = vmul.f32 0.2, %v682_v52  ;;  %v813_v25 = vmul.f32 %v1776_v42, %v1596_v4  ;;  %v1852_v42 = vmul.f32 0.2, %v1702_v18 }
 0x10f   :  { %v713_v38 = vmax.f32 %v681_v14, %v697_v33  ;;  %v858_v14 = vmax.f32 %v826_v15, %v842_v0  ;;  %v843_v0 = vmul.f32 0.2, %v827_v29 }
 0x110   :  { %v1811_v50 = vpop.f32.mrf.mxu2  ;;  %v714_v53 = vmax.f32 %v682_v52, %v698_v21  ;;  %v501_v3 = vpop.f32.mrf.mxu0 }
 0x111   :  { %v1820_v22 = vpop.f32.mrf.mxu3  ;;  %v793_v37 = vmax.f32 %v713_v38, %v777_v9  ;;  %v667_v40 = vmul.f32 %v501_v3, %v1596_v4  ;;  %v590_v23 = vpop.f32.mrf.mxu1  ;;  %v844_v9 = vmul.f32 0.2, %v828_v24  ;;  %v1846_v3 = vmul.f32 0.2, %v1673_v54 }
 0x112   :  { %v794_v33 = vmax.f32 %v714_v53, %v778_v63  ;;  %v668_v34 = vmul.f32 %v590_v23, %v1600_v6  ;;  %v814_v53 = vmul.f32 %v1778_v45, %v1600_v6  ;;  %v1843_v63 = vmul.f32 0.2, %v1668_v51 }
 0x113   :  { %v683_v52 = vadd.f32 %v667_v40, %v1676_v55  ;;  %v1828_v61 = vmax.f32 %v793_v37, %v857_v59  ;;  %v779_v37 = vmax.f32 %v1687_v2, %v763_v41  ;;  %v1855_v23 = vmul.f32 0.2, %v1708_v26 }
 0x114   :  { %v684_v13 = vadd.f32 %v668_v34, %v1682_v58  ;;  %v1832_v11 = vmax.f32 %v794_v33, %v858_v14  ;;  %v780_v45 = vmax.f32 %v1690_v62, %v764_v30  ;;  %v859_v15 = vmax.f32 %v827_v29, %v843_v0 }
 0x115   :  { %2110 = vst [vmem:[#allocation14_spill] sm:$0xff] %v1828_v61  ;;  %v699_v21 = vmul.f32 0.2, %v683_v52  ;;  %v829_v58 = vadd.f32 %v813_v25, %v1711_v28  ;;  %v830_v55 = vadd.f32 %v814_v53, %v1718_v32  ;;  %v765_v62 = vmul.f32 0.2, %v1723_v5 }
 0x116   :  { %2111 = vst [vmem:[#allocation15_spill] sm:$0xff] %v1832_v11  ;;  %v700_v34 = vmul.f32 0.2, %v684_v13  ;;  %v766_v30 = vmul.f32 0.2, %v1726_v35  ;;  %v879_v0 = vmul.f32 %v1791_v56, %v1596_v4  ;;  %v880_v53 = vmul.f32 %v1794_v39, %v1600_v6 }
 0x117   :  { %v715_v59 = vmax.f32 %v683_v52, %v699_v21  ;;  %v860_v21 = vmax.f32 %v828_v24, %v844_v9  ;;  %v845_v9 = vmul.f32 0.2, %v829_v58  ;;  %v688_v39 = vmul.f32 0.2, %v1748_v48 }
 0x118   :  { %v1849_v40 = vpop.f32.mrf.mxu2  ;;  %v716_v14 = vmax.f32 %v684_v13, %v700_v34  ;;  %v503_v38 = vpop.f32.mrf.mxu0 }
 0x119   :  { %v1858_v33 = vpop.f32.mrf.mxu3  ;;  %v795_v52 = vmax.f32 %v715_v59, %v779_v37  ;;  %v669_v2 = vmul.f32 %v503_v38, %v1596_v4  ;;  %v592_v41 = vpop.f32.mrf.mxu1  ;;  %v861_v29 = vmax.f32 %v829_v58, %v845_v9 }
 0x11a   :  { %v796_v11 = vmax.f32 %v716_v14, %v780_v45  ;;  %v670_v61 = vmul.f32 %v592_v41, %v1600_v6  ;;  %v846_v14 = vmul.f32 0.2, %v830_v55  ;;  %v781_v45 = vmax.f32 %v1723_v5, %v765_v62 }
 0x11b   :  { %v685_v13 = vadd.f32 %v669_v2, %v1711_v28  ;;  %v1867_v34 = vmax.f32 %v795_v52, %v859_v15  ;;  %v782_v52 = vmax.f32 %v1726_v35, %v766_v30  ;;  %v1891_v41 = vmul.f32 0.2, %v1753_v57 }
 0x11c   :  { %v686_v24 = vadd.f32 %v670_v61, %v1718_v32  ;;  %v1874_v25 = vmax.f32 %v796_v11, %v860_v21  ;;  %v687_v61 = vmul.f32 0.2, %v1745_v46  ;;  %v895_v21 = vadd.f32 %v879_v0, %v1627_v27 }
 0x11d   :  { %v701_v59 = vmul.f32 0.2, %v685_v13  ;;  %v1899_v62 = vmul.f32 0.2, %v1756_v60  ;;  %v862_v30 = vmax.f32 %v830_v55, %v846_v14  ;;  %v1903_v0 = vmul.f32 0.2, %v1761_v16 }
 0x11e   :  { %v702_v56 = vmul.f32 0.2, %v686_v24  ;;  %v703_v14 = vmax.f32 %v1745_v46, %v687_v61 }
 0x11f   :  { %v717_v11 = vmax.f32 %v685_v13, %v701_v59  ;;  %v896_v13 = vadd.f32 %v880_v53, %v1631_v31  ;;  %v911_v53 = vmul.f32 0.2, %v895_v21 }
 0x120   :  { %v1887_v2 = vpop.f32.mrf.mxu2  ;;  %v718_v15 = vmax.f32 %v686_v24, %v702_v56  ;;  %v506_v38 = vpop.f32.mrf.mxu0  ;;  %v1906_v24 = vmul.f32 0.2, %v1764_v19 }
 0x121   :  { %v1894_v37 = vpop.f32.mrf.mxu3  ;;  %v797_v59 = vmax.f32 %v717_v11, %v781_v45  ;;  %v719_v5 = vmul.f32 %v506_v38, %v1596_v4  ;;  %v595_v35 = vpop.f32.mrf.mxu1  ;;  %v881_v38 = vmul.f32 %v1811_v50, %v1596_v4  ;;  %v912_v11 = vmul.f32 0.2, %v896_v13 }
 0x122   :  { %v798_v32 = vmax.f32 %v718_v15, %v782_v52  ;;  %v720_v28 = vmul.f32 %v595_v35, %v1600_v6  ;;  %v1917_v15 = vmul.f32 0.2, %v1738_v44  ;;  %v704_v52 = vmax.f32 %v1748_v48, %v688_v39 }
 0x123   :  { %v735_v58 = vadd.f32 %v719_v5, %v1627_v27  ;;  %v1909_v9 = vmax.f32 %v797_v59, %v861_v29  ;;  %v705_v27 = vmax.f32 %v1753_v57, %v1891_v41  ;;  %v882_v29 = vmul.f32 %v1820_v22, %v1600_v6 }
 0x124   :  { %v736_v56 = vadd.f32 %v720_v28, %v1631_v31  ;;  %v1914_v55 = vmax.f32 %v798_v32, %v862_v30  ;;  %v706_v31 = vmax.f32 %v1756_v60, %v1899_v62  ;;  %v707_v28 = vmax.f32 %v1761_v16, %v1903_v0  ;;  %v2125_v16 = vld [vmem:[#allocation9_spill] sm:$0xff] }
 0x125   :  { %v751_v45 = vmul.f32 0.2, %v735_v58  ;;  %v927_v59 = vmax.f32 %v895_v21, %v911_v53  ;;  %v1932_v48 = vadd.f32 %v881_v38, %v1659_v43  ;;  %v928_v5 = vmax.f32 %v896_v13, %v912_v11 }
 0x126   :  { %v752_v50 = vmul.f32 0.2, %v736_v56  ;;  %v898_v32 = vadd.f32 %v882_v29, %v1663_v47  ;;  %v883_v38 = vmul.f32 %v1849_v40, %v1596_v4 }
 0x127   :  { %v767_v46 = vmax.f32 %v735_v58, %v751_v45  ;;  %v913_v45 = vmul.f32 0.2, %v1932_v48 }
 0x128   :  { %v556_v61 = vpop.f32.mrf.mxu2  ;;  %v768_v57 = vmax.f32 %v736_v56, %v752_v50  ;;  %v508_v41 = vpop.f32.mrf.mxu0  ;;  %v2112_v56 = vmax.f32 %v1636_v36, %v1814_v7 }
 0x129   :  { %v887_v39 = vmul.f32 %v556_v61, %v1596_v4  ;;  %v645_v22 = vpop.f32.mrf.mxu3  ;;  %v783_v35 = vmax.f32 %v703_v14, %v767_v46  ;;  %v721_v62 = vmul.f32 %v508_v41, %v1596_v4  ;;  %v597_v30 = vpop.f32.mrf.mxu1  ;;  %v2114_v46 = vld [vmem:[#allocation12_spill] sm:$0xff]  ;;  %v2115_v41 = vld [vmem:[#allocation5_spill] sm:$0xff] }
 0x12a   :  { %v888_v60 = vmul.f32 %v645_v22, %v1600_v6  ;;  %v784_v58 = vmax.f32 %v704_v52, %v768_v57  ;;  %v722_v53 = vmul.f32 %v597_v30, %v1600_v6  ;;  %v2113_v52 = vmax.f32 %v1641_v8, %v1817_v1 }
 0x12b   :  { %v903_v21 = vadd.f32 %v887_v39, %v1612_v17  ;;  %v863_v13 = vmax.f32 %v783_v35, %v2112_v56  ;;  %v737_v11 = vadd.f32 %v721_v62, %v1659_v43  ;;  %v1953_v61 = vmul.f32 0.2, %v2114_v46 }
 0x12c   :  { %v904_v14 = vadd.f32 %v888_v60, %v1617_v20  ;;  %v864_v29 = vmax.f32 %v784_v58, %v2113_v52  ;;  %v738_v50 = vadd.f32 %v722_v53, %v1663_v47  ;;  %v884_v20 = vmul.f32 %v1858_v33, %v1600_v6  ;;  %v2118_v52 = vld [vmem:[#allocation2_spill] sm:$0xff] }
 0x12d   :  { %v919_v17 = vmul.f32 0.2, %v903_v21  ;;  %v943_v40 = vmax.f32 %v863_v13, %v927_v59  ;;  %v753_v36 = vmul.f32 0.2, %v737_v11  ;;  %v914_v22 = vmul.f32 0.2, %v898_v32 }
 0x12e   :  { %v920_v57 = vmul.f32 0.2, %v904_v14  ;;  %v944_v7 = vmax.f32 %v864_v29, %v928_v5  ;;  %v754_v39 = vmul.f32 0.2, %v738_v50  ;;  %v1958_v35 = vadd.f32 %v883_v38, %v2115_v41 }
 0x12f   :  { %v935_v43 = vmax.f32 %v903_v21, %v919_v17  ;;  %959 = vst [vmem:[%s2081_s6] sm:$0xff] %v943_v40  ;;  %v769_v47 = vmax.f32 %v737_v11, %v753_v36  ;;  %v929_v59 = vmax.f32 %v1932_v48, %v913_v45  ;;  %v2116_v48 = vld [vmem:[#allocation6_spill] sm:$0xff]  ;;  %v2120_v36 = vld [vmem:[#allocation13_spill] sm:$0xff] }
 0x130   :  { %v936_v8 = vmax.f32 %v904_v14, %v920_v57  ;;  %v558_v1 = vpop.f32.mrf.mxu2  ;;  %960 = vst [vmem:[%s2081_s6 + $0x8] sm:$0xff] %v944_v7  ;;  %v770_v5 = vmax.f32 %v738_v50, %v754_v39  ;;  %v511_v30 = vpop.f32.mrf.mxu0  ;;  %v900_v13 = vadd.f32 %v884_v20, %v2116_v48  ;;  %v915_v45 = vmul.f32 0.2, %v1958_v35 }
 0x131   :  { %v951_v33 = vmax.f32 %v1802_v49, %v935_v43  ;;  %v889_v60 = vmul.f32 %v558_v1, %v1596_v4  ;;  %v647_v62 = vpop.f32.mrf.mxu3  ;;  %v785_v21 = vmax.f32 %v705_v27, %v769_v47  ;;  %v723_v38 = vmul.f32 %v511_v30, %v1596_v4  ;;  %v600_v56 = vpop.f32.mrf.mxu1 }
 0x132   :  { %v952_v58 = vmax.f32 %v1806_v10, %v936_v8  ;;  %v890_v53 = vmul.f32 %v647_v62, %v1600_v6  ;;  %v786_v49 = vmax.f32 %v706_v31, %v770_v5  ;;  %v724_v11 = vmul.f32 %v600_v56, %v1600_v6  ;;  %v2122_v62 = vld [vmem:[#allocation15_spill] sm:$0xff] }
 0x133   :  { %967 = vst [vmem:[%s2081_s6 + $0x40] sm:$0xff] %v951_v33  ;;  %v905_v14 = vadd.f32 %v889_v60, %v1644_v12  ;;  %v2117_v10 = vmax.f32 %v1668_v51, %v1843_v63  ;;  %v739_v17 = vadd.f32 %v723_v38, %v2115_v41  ;;  %v930_v50 = vmax.f32 %v898_v32, %v914_v22 }
 0x134   :  { %968 = vst [vmem:[%s2081_s6 + $0x48] sm:$0xff] %v952_v58  ;;  %v906_v29 = vadd.f32 %v890_v53, %v2118_v52  ;;  %v2119_v12 = vmax.f32 %v1673_v54, %v1846_v3  ;;  %v740_v57 = vadd.f32 %v724_v11, %v2116_v48  ;;  %v1992_v20 = vmul.f32 0.2, %v2120_v36 }
 0x135   :  { %v865_v27 = vmax.f32 %v785_v21, %v2117_v10  ;;  %v921_v40 = vmul.f32 0.2, %v905_v14  ;;  %v755_v39 = vmul.f32 0.2, %v739_v17  ;;  %v916_v51 = vmul.f32 0.2, %v900_v13 }
 0x136   :  { %v866_v31 = vmax.f32 %v786_v49, %v2119_v12  ;;  %v922_v43 = vmul.f32 0.2, %v906_v29  ;;  %v756_v47 = vmul.f32 0.2, %v740_v57  ;;  %v931_v41 = vmax.f32 %v1958_v35, %v915_v45  ;;  %v2124_v49 = vld [vmem:[#allocation3_spill] sm:$0xff]  ;;  %v2127_v45 = vld [vmem:[#allocation4_spill] sm:$0xff] }
 0x137   :  { %v945_v7 = vmax.f32 %v865_v27, %v929_v59  ;;  %v937_v8 = vmax.f32 %v905_v14, %v921_v40  ;;  %v885_v32 = vmul.f32 %v1887_v2, %v1596_v4  ;;  %v771_v3 = vmax.f32 %v739_v17, %v755_v39  ;;  %v2121_v59 = vld [vmem:[#allocation14_spill] sm:$0xff]  ;;  %v2130_v12 = vld [vmem:[#allocation11_spill] sm:$0xff] }
 0x138   :  { %v946_v63 = vmax.f32 %v866_v31, %v930_v50  ;;  %v938_v54 = vmax.f32 %v906_v29, %v922_v43  ;;  %v561_v22 = vpop.f32.mrf.mxu2  ;;  %v886_v1 = vmul.f32 %v1894_v37, %v1600_v6  ;;  %v772_v35 = vmax.f32 %v740_v57, %v756_v47  ;;  %v513_v60 = vpop.f32.mrf.mxu0 }
 0x139   :  { %961 = vst [vmem:[%s2081_s6 + $0x10] sm:$0xff] %v945_v7  ;;  %v953_v33 = vmax.f32 %v2121_v59, %v937_v8  ;;  %v891_v5 = vmul.f32 %v561_v22, %v1596_v4  ;;  %v650_v2 = vpop.f32.mrf.mxu3  ;;  %v787_v58 = vmax.f32 %v707_v28, %v771_v3  ;;  %v725_v37 = vmul.f32 %v513_v60, %v1596_v4  ;;  %v602_v53 = vpop.f32.mrf.mxu1 }
 0x13a   :  { %962 = vst [vmem:[%s2081_s6 + $0x18] sm:$0xff] %v946_v63  ;;  %v954_v30 = vmax.f32 %v2122_v62, %v938_v54  ;;  %v892_v21 = vmul.f32 %v650_v2, %v1600_v6  ;;  %v932_v38 = vmax.f32 %v900_v13, %v916_v51  ;;  %v2123_v56 = vmax.f32 %v1764_v19, %v1906_v24  ;;  %v2128_v19 = vld [vmem:[#allocation10_spill] sm:$0xff] }
 0x13b   :  { %969 = vst [vmem:[%s2081_s6 + $0x50] sm:$0xff] %v953_v33  ;;  %v907_v14 = vadd.f32 %v891_v5, %v2124_v49  ;;  %v726_v11 = vmul.f32 %v602_v53, %v1600_v6  ;;  %v901_v0 = vadd.f32 %v885_v32, %v2125_v16  ;;  %v2126_v28 = vmax.f32 %v1702_v18, %v1852_v42 }
 0x13c   :  { %v788_v48 = vmax.f32 %v2123_v56, %v772_v35  ;;  %970 = vst [vmem:[%s2081_s6 + $0x58] sm:$0xff] %v954_v30  ;;  %v908_v10 = vadd.f32 %v892_v21, %v2127_v45  ;;  %v741_v27 = vadd.f32 %v725_v37, %v2125_v16  ;;  %v902_v24 = vadd.f32 %v886_v1, %v2128_v19 }
 0x13d   :  { %v867_v13 = vmax.f32 %v787_v58, %v2126_v28  ;;  %v2129_v52 = vmax.f32 %v1708_v26, %v1855_v23  ;;  %v923_v17 = vmul.f32 0.2, %v907_v14  ;;  %v742_v50 = vadd.f32 %v726_v11, %v2128_v19 }
 0x13e   :  { %v838_v31 = vmul.f32 0.2, %v2130_v12  ;;  %v924_v57 = vmul.f32 0.2, %v908_v10  ;;  %v757_v7 = vmul.f32 0.2, %v741_v27  ;;  %v709_v18 = vmax.f32 %v2114_v46, %v1953_v61 }
 0x13f   :  { %v868_v29 = vmax.f32 %v788_v48, %v2129_v52  ;;  %v947_v40 = vmax.f32 %v867_v13, %v931_v41  ;;  %v939_v43 = vmax.f32 %v907_v14, %v923_v17  ;;  %v758_v39 = vmul.f32 0.2, %v742_v50 }
 0x140   :  { %v710_v51 = vmax.f32 %v2120_v36, %v1992_v20  ;;  %v917_v63 = vmul.f32 0.2, %v901_v0  ;;  %v940_v26 = vmax.f32 %v908_v10, %v924_v57  ;;  %v773_v23 = vmax.f32 %v741_v27, %v757_v7  ;;  %v563_v8 = vpop.f32.mrf.mxu2 }
 0x141   :  { %v948_v42 = vmax.f32 %v868_v29, %v932_v38  ;;  %963 = vst [vmem:[%s2081_s6 + $0x20] sm:$0xff] %v947_v40  ;;  %v918_v47 = vmul.f32 0.2, %v902_v24  ;;  %v955_v46 = vmax.f32 %v1867_v34, %v939_v43  ;;  %v774_v61 = vmax.f32 %v742_v50, %v758_v39  ;;  %v652_v32 = vpop.f32.mrf.mxu3  ;;  %v2131_v34 = vld [vmem:[#allocation7_spill] sm:$0xff] }
 0x142   :  { %v893_v41 = vmul.f32 %v563_v8, %v1596_v4  ;;  %v853_v36 = vmax.f32 %v1738_v44, %v1917_v15  ;;  %v956_v20 = vmax.f32 %v1874_v25, %v940_v26  ;;  %v789_v54 = vmax.f32 %v709_v18, %v773_v23  ;;  %v2132_v44 = vld [vmem:[#allocation8_spill] sm:$0xff] }
 0x143   :  { %964 = vst [vmem:[%s2081_s6 + $0x28] sm:$0xff] %v948_v42  ;;  %v894_v3 = vmul.f32 %v652_v32, %v1600_v6  ;;  %v854_v22 = vmax.f32 %v2130_v12, %v838_v31  ;;  %v790_v1 = vmax.f32 %v710_v51, %v774_v61  ;;  %v933_v33 = vmax.f32 %v901_v0, %v917_v63 }
 0x144   :  { %971 = vst [vmem:[%s2081_s6 + $0x60] sm:$0xff] %v955_v46  ;;  %v909_v59 = vadd.f32 %v893_v41, %v2131_v34  ;;  %v869_v4 = vmax.f32 %v789_v54, %v853_v36  ;;  %v934_v15 = vmax.f32 %v902_v24, %v918_v47 }
 0x145   :  { %972 = vst [vmem:[%s2081_s6 + $0x68] sm:$0xff] %v956_v20  ;;  %v910_v25 = vadd.f32 %v894_v3, %v2132_v44  ;;  %v870_v35 = vmax.f32 %v790_v1, %v854_v22 }
 0x146   :  { %v925_v6 = vmul.f32 0.2, %v909_v59  ;;  %v949_v5 = vmax.f32 %v869_v4, %v933_v33 }
 0x147   :  { %v926_v2 = vmul.f32 0.2, %v910_v25  ;;  %v950_v60 = vmax.f32 %v870_v35, %v934_v15 }
 0x148   :  { %v941_v62 = vmax.f32 %v909_v59, %v925_v6  ;;  %965 = vst [vmem:[%s2081_s6 + $0x30] sm:$0xff] %v949_v5 }
 0x149   :  { %v942_v30 = vmax.f32 %v910_v25, %v926_v2  ;;  %966 = vst [vmem:[%s2081_s6 + $0x38] sm:$0xff] %v950_v60 }
 0x14a   :  { %v957_v58 = vmax.f32 %v1909_v9, %v941_v62 }
 0x14b   :  { %v958_v21 = vmax.f32 %v1914_v55, %v942_v30 }
 0x14c   :  { %973 = vst [vmem:[%s2081_s6 + $0x70] sm:$0xff] %v957_v58 }
 0x14d   :  { %974 = vst [vmem:[%s2081_s6 + $0x78] sm:$0xff] %v958_v21 }

// kernel: point_manifold_nnml_forward.19
= control target key start
LH: loop header
LB: loop body
LE: loop exit
PB: predicated region body
PF: predicated region fallthrough
CT: control target
= control target key end

     0   :  { %s1388_s0 = inlined_call_operand.vmem [shape: f32[2,128], index: 0, kind: input, shape index: {}]   ;;  %s1389_s1 = inlined_call_operand.vmem [shape: f32[128,512], index: 1, kind: input, shape index: {}]   ;;  %s1390_s2 = inlined_call_operand.vmem [shape: f32[1,512], index: 2, kind: input, shape index: {}]   ;;  %s1391_s3 = inlined_call_operand.vmem [shape: f32[1,512], index: 3, kind: input, shape index: {}]   ;;  %s1392_s4 = inlined_call_operand.vmem [shape: f32[512,256], index: 4, kind: input, shape index: {}]   ;;  %s1393_s5 = inlined_call_operand.vmem [shape: f32[1,256], index: 5, kind: input, shape index: {}]   ;;  %s1394_s6 = inlined_call_operand.vmem [shape: f32[1,256], index: 6, kind: input, shape index: {}]   ;;  %s1395_s7 = inlined_call_operand.vmem [shape: f32[256,40], index: 7, kind: input, shape index: {}]   ;;  %s1396_s8 = inlined_call_operand.vmem [shape: f32[1,40], index: 8, kind: input, shape index: {}]   ;;  %s1397_s9 = inlined_call_operand.hbm [shape: f32[2,40], index: 9, kind: output, shape index: {}]  }
   0x1   :  { %v94_v0 = vld [vmem:[%s1389_s1 + $0x1e0] sm:$0xff]  ;;  %v95_v1 = vld [vmem:[%s1389_s1 + $0x1e8] sm:$0xff]  ;;  %v96_v2 = vld [vmem:[%s1389_s1 + $0x1f0] sm:$0xff] }
   0x2   :  { %98 = vmatpush.msra.mxu0 %v94_v0  ;;  %118 = vmatpush.msra.mxu1 %v95_v1  ;;  %v97_v3 = vld [vmem:[%s1389_s1 + $0x1f8] sm:$0xff]  ;;  %v90_v4 = vld [vmem:[%s1389_s1 + $0x1c0] sm:$0xff]  ;;  %v91_v5 = vld [vmem:[%s1389_s1 + $0x1c8] sm:$0xff] }
   0x3   :  { %138 = vmatpush.msra.mxu2 %v96_v2  ;;  %158 = vmatpush.msra.mxu3 %v97_v3  ;;  %v92_v6 = vld [vmem:[%s1389_s1 + $0x1d0] sm:$0xff]  ;;  %v93_v7 = vld [vmem:[%s1389_s1 + $0x1d8] sm:$0xff]  ;;  %v86_v8 = vld [vmem:[%s1389_s1 + $0x1a0] sm:$0xff] }
   0x4   :  { %99 = vmatpush.msra.mxu0 %v90_v4  ;;  %119 = vmatpush.msra.mxu1 %v91_v5  ;;  %v87_v9 = vld [vmem:[%s1389_s1 + $0x1a8] sm:$0xff]  ;;  %v88_v10 = vld [vmem:[%s1389_s1 + $0x1b0] sm:$0xff]  ;;  %v89_v11 = vld [vmem:[%s1389_s1 + $0x1b8] sm:$0xff] }
   0x5   :  { %139 = vmatpush.msra.mxu2 %v92_v6  ;;  %159 = vmatpush.msra.mxu3 %v93_v7  ;;  %v82_v12 = vld [vmem:[%s1389_s1 + $0x180] sm:$0xff]  ;;  %v83_v13 = vld [vmem:[%s1389_s1 + $0x188] sm:$0xff]  ;;  %v84_v14 = vld [vmem:[%s1389_s1 + $0x190] sm:$0xff] }
   0x6   :  { %100 = vmatpush.msra.mxu0 %v86_v8  ;;  %120 = vmatpush.msra.mxu1 %v87_v9  ;;  %v85_v15 = vld [vmem:[%s1389_s1 + $0x198] sm:$0xff]  ;;  %v78_v16 = vld [vmem:[%s1389_s1 + $0x160] sm:$0xff]  ;;  %v79_v17 = vld [vmem:[%s1389_s1 + $0x168] sm:$0xff] }
   0x7   :  { %140 = vmatpush.msra.mxu2 %v88_v10  ;;  %160 = vmatpush.msra.mxu3 %v89_v11  ;;  %v80_v18 = vld [vmem:[%s1389_s1 + $0x170] sm:$0xff]  ;;  %v81_v19 = vld [vmem:[%s1389_s1 + $0x178] sm:$0xff]  ;;  %v74_v20 = vld [vmem:[%s1389_s1 + $0x140] sm:$0xff] }
   0x8   :  { %101 = vmatpush.msra.mxu0 %v82_v12  ;;  %121 = vmatpush.msra.mxu1 %v83_v13  ;;  %v75_v21 = vld [vmem:[%s1389_s1 + $0x148] sm:$0xff]  ;;  %v76_v22 = vld [vmem:[%s1389_s1 + $0x150] sm:$0xff]  ;;  %v77_v23 = vld [vmem:[%s1389_s1 + $0x158] sm:$0xff] }
   0x9   :  { %141 = vmatpush.msra.mxu2 %v84_v14  ;;  %161 = vmatpush.msra.mxu3 %v85_v15  ;;  %v70_v24 = vld [vmem:[%s1389_s1 + $0x120] sm:$0xff]  ;;  %v71_v25 = vld [vmem:[%s1389_s1 + $0x128] sm:$0xff]  ;;  %v72_v26 = vld [vmem:[%s1389_s1 + $0x130] sm:$0xff] }
   0xa   :  { %102 = vmatpush.msra.mxu0 %v78_v16  ;;  %122 = vmatpush.msra.mxu1 %v79_v17  ;;  %v73_v27 = vld [vmem:[%s1389_s1 + $0x138] sm:$0xff]  ;;  %v66_v28 = vld [vmem:[%s1389_s1 + $0x100] sm:$0xff]  ;;  %v67_v29 = vld [vmem:[%s1389_s1 + $0x108] sm:$0xff] }
   0xb   :  { %142 = vmatpush.msra.mxu2 %v80_v18  ;;  %162 = vmatpush.msra.mxu3 %v81_v19  ;;  %v68_v30 = vld [vmem:[%s1389_s1 + $0x110] sm:$0xff]  ;;  %v69_v31 = vld [vmem:[%s1389_s1 + $0x118] sm:$0xff]  ;;  %v62_v32 = vld [vmem:[%s1389_s1 + $0xe0] sm:$0xff] }
   0xc   :  { %103 = vmatpush.msra.mxu0 %v74_v20  ;;  %123 = vmatpush.msra.mxu1 %v75_v21  ;;  %v63_v33 = vld [vmem:[%s1389_s1 + $0xe8] sm:$0xff]  ;;  %v64_v34 = vld [vmem:[%s1389_s1 + $0xf0] sm:$0xff]  ;;  %v65_v35 = vld [vmem:[%s1389_s1 + $0xf8] sm:$0xff] }
   0xd   :  { %143 = vmatpush.msra.mxu2 %v76_v22  ;;  %163 = vmatpush.msra.mxu3 %v77_v23  ;;  %v58_v36 = vld [vmem:[%s1389_s1 + $0xc0] sm:$0xff]  ;;  %v59_v37 = vld [vmem:[%s1389_s1 + $0xc8] sm:$0xff]  ;;  %v60_v38 = vld [vmem:[%s1389_s1 + $0xd0] sm:$0xff] }
   0xe   :  { %104 = vmatpush.msra.mxu0 %v70_v24  ;;  %124 = vmatpush.msra.mxu1 %v71_v25  ;;  %v61_v39 = vld [vmem:[%s1389_s1 + $0xd8] sm:$0xff]  ;;  %v54_v40 = vld [vmem:[%s1389_s1 + $0xa0] sm:$0xff]  ;;  %v55_v41 = vld [vmem:[%s1389_s1 + $0xa8] sm:$0xff] }
   0xf   :  { %144 = vmatpush.msra.mxu2 %v72_v26  ;;  %164 = vmatpush.msra.mxu3 %v73_v27  ;;  %v56_v42 = vld [vmem:[%s1389_s1 + $0xb0] sm:$0xff]  ;;  %v57_v43 = vld [vmem:[%s1389_s1 + $0xb8] sm:$0xff]  ;;  %v50_v44 = vld [vmem:[%s1389_s1 + $0x80] sm:$0xff] }
  0x10   :  { %105 = vmatpush.msra.mxu0 %v66_v28  ;;  %125 = vmatpush.msra.mxu1 %v67_v29  ;;  %v51_v45 = vld [vmem:[%s1389_s1 + $0x88] sm:$0xff]  ;;  %v52_v46 = vld [vmem:[%s1389_s1 + $0x90] sm:$0xff]  ;;  %v53_v47 = vld [vmem:[%s1389_s1 + $0x98] sm:$0xff] }
  0x11   :  { %145 = vmatpush.msra.mxu2 %v68_v30  ;;  %165 = vmatpush.msra.mxu3 %v69_v31  ;;  %v46_v48 = vld [vmem:[%s1389_s1 + $0x60] sm:$0xff]  ;;  %v47_v49 = vld [vmem:[%s1389_s1 + $0x68] sm:$0xff]  ;;  %v48_v50 = vld [vmem:[%s1389_s1 + $0x70] sm:$0xff] }
  0x12   :  { %106 = vmatpush.msra.mxu0 %v62_v32  ;;  %126 = vmatpush.msra.mxu1 %v63_v33  ;;  %v49_v51 = vld [vmem:[%s1389_s1 + $0x78] sm:$0xff]  ;;  %v42_v52 = vld [vmem:[%s1389_s1 + $0x40] sm:$0xff]  ;;  %v43_v53 = vld [vmem:[%s1389_s1 + $0x48] sm:$0xff] }
  0x13   :  { %146 = vmatpush.msra.mxu2 %v64_v34  ;;  %166 = vmatpush.msra.mxu3 %v65_v35  ;;  %v44_v54 = vld [vmem:[%s1389_s1 + $0x50] sm:$0xff]  ;;  %v45_v55 = vld [vmem:[%s1389_s1 + $0x58] sm:$0xff]  ;;  %v38_v56 = vld [vmem:[%s1389_s1 + $0x20] sm:$0xff] }
  0x14   :  { %107 = vmatpush.msra.mxu0 %v58_v36  ;;  %127 = vmatpush.msra.mxu1 %v59_v37  ;;  %v39_v57 = vld [vmem:[%s1389_s1 + $0x28] sm:$0xff]  ;;  %v40_v58 = vld [vmem:[%s1389_s1 + $0x30] sm:$0xff]  ;;  %v41_v59 = vld [vmem:[%s1389_s1 + $0x38] sm:$0xff] }
  0x15   :  { %147 = vmatpush.msra.mxu2 %v60_v38  ;;  %167 = vmatpush.msra.mxu3 %v61_v39  ;;  %v34_v60 = vld [vmem:[%s1389_s1] sm:$0xff]  ;;  %v35_v61 = vld [vmem:[%s1389_s1 + $0x8] sm:$0xff]  ;;  %v36_v62 = vld [vmem:[%s1389_s1 + $0x10] sm:$0xff] }
  0x16   :  { %108 = vmatpush.msra.mxu0 %v54_v40  ;;  %128 = vmatpush.msra.mxu1 %v55_v41  ;;  %v37_v63 = vld [vmem:[%s1389_s1 + $0x18] sm:$0xff]  ;;  %v33_v0 = vld [vmem:[%s1388_s0] sm:$0x3]  ;;  %v244_v1 = vld [vmem:[%s1392_s4 + $0xf0] sm:$0xff] }
  0x17   :  { %148 = vmatpush.msra.mxu2 %v56_v42  ;;  %168 = vmatpush.msra.mxu3 %v57_v43  ;;  %v276_v2 = vld [vmem:[%s1392_s4 + $0x1f0] sm:$0xff]  ;;  %v242_v5 = vld [vmem:[%s1392_s4 + $0xe0] sm:$0xff] }
  0x18   :  { %109 = vmatpush.msra.mxu0 %v50_v44  ;;  %129 = vmatpush.msra.mxu1 %v51_v45  ;;  %v308_v3 = vld [vmem:[%s1392_s4 + $0x2f0] sm:$0xff]  ;;  %v274_v6 = vld [vmem:[%s1392_s4 + $0x1e0] sm:$0xff] }
  0x19   :  { %149 = vmatpush.msra.mxu2 %v52_v46  ;;  %169 = vmatpush.msra.mxu3 %v53_v47  ;;  %v340_v4 = vld [vmem:[%s1392_s4 + $0x3f0] sm:$0xff]  ;;  %v306_v7 = vld [vmem:[%s1392_s4 + $0x2e0] sm:$0xff] }
  0x1a   :  { %110 = vmatpush.msra.mxu0 %v46_v48  ;;  %130 = vmatpush.msra.mxu1 %v47_v49  ;;  %v338_v8 = vld [vmem:[%s1392_s4 + $0x3e0] sm:$0xff]  ;;  %v240_v9 = vld [vmem:[%s1392_s4 + $0xd0] sm:$0xff] }
  0x1b   :  { %150 = vmatpush.msra.mxu2 %v48_v50  ;;  %170 = vmatpush.msra.mxu3 %v49_v51  ;;  %v272_v10 = vld [vmem:[%s1392_s4 + $0x1d0] sm:$0xff]  ;;  %v238_v13 = vld [vmem:[%s1392_s4 + $0xc0] sm:$0xff] }
  0x1c   :  { %111 = vmatpush.msra.mxu0 %v42_v52  ;;  %131 = vmatpush.msra.mxu1 %v43_v53  ;;  %v304_v11 = vld [vmem:[%s1392_s4 + $0x2d0] sm:$0xff]  ;;  %v270_v14 = vld [vmem:[%s1392_s4 + $0x1c0] sm:$0xff] }
  0x1d   :  { %151 = vmatpush.msra.mxu2 %v44_v54  ;;  %171 = vmatpush.msra.mxu3 %v45_v55  ;;  %v336_v12 = vld [vmem:[%s1392_s4 + $0x3d0] sm:$0xff]  ;;  %v302_v15 = vld [vmem:[%s1392_s4 + $0x2c0] sm:$0xff] }
  0x1e   :  { %112 = vmatpush.msra.mxu0 %v38_v56  ;;  %132 = vmatpush.msra.mxu1 %v39_v57  ;;  %v334_v16 = vld [vmem:[%s1392_s4 + $0x3c0] sm:$0xff]  ;;  %v236_v17 = vld [vmem:[%s1392_s4 + $0xb0] sm:$0xff] }
  0x1f   :  { %152 = vmatpush.msra.mxu2 %v40_v58  ;;  %172 = vmatpush.msra.mxu3 %v41_v59  ;;  %v268_v18 = vld [vmem:[%s1392_s4 + $0x1b0] sm:$0xff]  ;;  %v234_v21 = vld [vmem:[%s1392_s4 + $0xa0] sm:$0xff] }
  0x20   :  { %113 = vmatpush.msra.mxu0 %v34_v60  ;;  %133 = vmatpush.msra.mxu1 %v35_v61  ;;  %v300_v19 = vld [vmem:[%s1392_s4 + $0x2b0] sm:$0xff]  ;;  %v266_v22 = vld [vmem:[%s1392_s4 + $0x1a0] sm:$0xff] }
  0x21   :  { %153 = vmatpush.msra.mxu2 %v36_v62  ;;  %173 = vmatpush.msra.mxu3 %v37_v63  ;;  %v332_v20 = vld [vmem:[%s1392_s4 + $0x3b0] sm:$0xff]  ;;  %v298_v23 = vld [vmem:[%s1392_s4 + $0x2a0] sm:$0xff] }
  0x22   :  { %114 = vmatmul.f32.vlgmr.msra.gmra.mxu0 %v33_v0  ;;  %134 = vmatmul.f32.vlgmr.msra.gmra.mxu1 %v33_v0  ;;  %v330_v24 = vld [vmem:[%s1392_s4 + $0x3a0] sm:$0xff]  ;;  %v232_v25 = vld [vmem:[%s1392_s4 + $0x90] sm:$0xff] }
  0x23   :  { %154 = vmatmul.f32.vlgmr.msra.gmra.mxu2 %v33_v0  ;;  %174 = vmatmul.f32.vlgmr.msra.gmra.mxu3 %v33_v0  ;;  %v264_v26 = vld [vmem:[%s1392_s4 + $0x190] sm:$0xff]  ;;  %v230_v29 = vld [vmem:[%s1392_s4 + $0x80] sm:$0xff] }
  0x24   :  { %342 = vmatpush.msrb.mxu0 %v244_v1  ;;  %362 = vmatpush.msrb.mxu1 %v276_v2  ;;  %v296_v27 = vld [vmem:[%s1392_s4 + $0x290] sm:$0xff]  ;;  %v262_v30 = vld [vmem:[%s1392_s4 + $0x180] sm:$0xff] }
  0x25   :  { %382 = vmatpush.msrb.mxu2 %v308_v3  ;;  %402 = vmatpush.msrb.mxu3 %v340_v4  ;;  %v328_v28 = vld [vmem:[%s1392_s4 + $0x390] sm:$0xff]  ;;  %v294_v31 = vld [vmem:[%s1392_s4 + $0x280] sm:$0xff] }
  0x26   :  { %343 = vmatpush.msrb.mxu0 %v242_v5  ;;  %363 = vmatpush.msrb.mxu1 %v274_v6  ;;  %v326_v32 = vld [vmem:[%s1392_s4 + $0x380] sm:$0xff]  ;;  %v228_v33 = vld [vmem:[%s1392_s4 + $0x70] sm:$0xff] }
  0x27   :  { %383 = vmatpush.msrb.mxu2 %v306_v7  ;;  %403 = vmatpush.msrb.mxu3 %v338_v8  ;;  %v260_v34 = vld [vmem:[%s1392_s4 + $0x170] sm:$0xff]  ;;  %v226_v35 = vld [vmem:[%s1392_s4 + $0x60] sm:$0xff] }
  0x28   :  { %344 = vmatpush.msrb.mxu0 %v240_v9  ;;  %364 = vmatpush.msrb.mxu1 %v272_v10  ;;  %v292_v36 = vld [vmem:[%s1392_s4 + $0x270] sm:$0xff]  ;;  %v258_v38 = vld [vmem:[%s1392_s4 + $0x160] sm:$0xff] }
  0x29   :  { %384 = vmatpush.msrb.mxu2 %v304_v11  ;;  %404 = vmatpush.msrb.mxu3 %v336_v12  ;;  %v324_v37 = vld [vmem:[%s1392_s4 + $0x370] sm:$0xff] }
  0x2a   :  { %345 = vmatpush.msrb.mxu0 %v238_v13  ;;  %365 = vmatpush.msrb.mxu1 %v270_v14 }
  0x2b   :  { %385 = vmatpush.msrb.mxu2 %v302_v15  ;;  %405 = vmatpush.msrb.mxu3 %v334_v16 }
  0x2c   :  { %346 = vmatpush.msrb.mxu0 %v236_v17  ;;  %366 = vmatpush.msrb.mxu1 %v268_v18 }
  0x2d   :  { %386 = vmatpush.msrb.mxu2 %v300_v19  ;;  %406 = vmatpush.msrb.mxu3 %v332_v20 }
  0x2e   :  { %347 = vmatpush.msrb.mxu0 %v234_v21  ;;  %367 = vmatpush.msrb.mxu1 %v266_v22 }
  0x2f   :  { %387 = vmatpush.msrb.mxu2 %v298_v23  ;;  %407 = vmatpush.msrb.mxu3 %v330_v24 }
  0x30   :  { %348 = vmatpush.msrb.mxu0 %v232_v25  ;;  %368 = vmatpush.msrb.mxu1 %v264_v26 }
  0x31   :  { %388 = vmatpush.msrb.mxu2 %v296_v27  ;;  %408 = vmatpush.msrb.mxu3 %v328_v28 }
  0x32   :  { %349 = vmatpush.msrb.mxu0 %v230_v29  ;;  %369 = vmatpush.msrb.mxu1 %v262_v30 }
  0x33   :  { %389 = vmatpush.msrb.mxu2 %v294_v31  ;;  %409 = vmatpush.msrb.mxu3 %v326_v32 }
  0x34   :  { %14 = vsyncpa [#allocation3], 0  ;;  %350 = vmatpush.msrb.mxu0 %v228_v33  ;;  %370 = vmatpush.msrb.mxu1 %v260_v34  ;;  %v290_v39 = vld [vmem:[%s1392_s4 + $0x260] sm:$0xff]  ;;  %v224_v41 = vld [vmem:[%s1392_s4 + $0x50] sm:$0xff]  ;;  %s607_s13 = sshll.u32 %s1397_s9, 4  ;;  %vm598_vm0 = vcmask 320512   ;;  %s608_s13 = int_to_ptr.hbm [resolvable:$true] %s607_s13 }
  0x35   :  { %v322_v40 = vld [vmem:[%s1392_s4 + $0x360] sm:$0xff]  ;;  %v256_v42 = vld [vmem:[%s1392_s4 + $0x150] sm:$0xff]  ;;  %390 = vmatpush.msrb.mxu2 %v292_v36  ;;  %410 = vmatpush.msrb.mxu3 %v324_v37  ;;  %v245_v63 = vld [vmem:[%s1392_s4 + $0xf8] sm:$0xff] }
  0x36   :  { %351 = vmatpush.msrb.mxu0 %v226_v35  ;;  %371 = vmatpush.msrb.mxu1 %v258_v38  ;;  %v288_v43 = vld [vmem:[%s1392_s4 + $0x250] sm:$0xff]  ;;  %v222_v45 = vld [vmem:[%s1392_s4 + $0x40] sm:$0xff]  ;;  %v277_v0 = vld [vmem:[%s1392_s4 + $0x1f8] sm:$0xff] }
  0x37   :  { %v320_v44 = vld [vmem:[%s1392_s4 + $0x350] sm:$0xff]  ;;  %v254_v46 = vld [vmem:[%s1392_s4 + $0x140] sm:$0xff]  ;;  %391 = vmatpush.msrb.mxu2 %v290_v39  ;;  %411 = vmatpush.msrb.mxu3 %v322_v40  ;;  %v243_v3 = vld [vmem:[%s1392_s4 + $0xe8] sm:$0xff] }
  0x38   :  { %352 = vmatpush.msrb.mxu0 %v224_v41  ;;  %372 = vmatpush.msrb.mxu1 %v256_v42  ;;  %v286_v47 = vld [vmem:[%s1392_s4 + $0x240] sm:$0xff]  ;;  %v220_v49 = vld [vmem:[%s1392_s4 + $0x30] sm:$0xff]  ;;  %v275_v4 = vld [vmem:[%s1392_s4 + $0x1e8] sm:$0xff] }
  0x39   :  { %v318_v48 = vld [vmem:[%s1392_s4 + $0x340] sm:$0xff]  ;;  %v252_v50 = vld [vmem:[%s1392_s4 + $0x130] sm:$0xff]  ;;  %392 = vmatpush.msrb.mxu2 %v288_v43  ;;  %412 = vmatpush.msrb.mxu3 %v320_v44  ;;  %v309_v5 = vld [vmem:[%s1392_s4 + $0x2f8] sm:$0xff] }
  0x3a   :  { %353 = vmatpush.msrb.mxu0 %v222_v45  ;;  %373 = vmatpush.msrb.mxu1 %v254_v46  ;;  %v284_v51 = vld [vmem:[%s1392_s4 + $0x230] sm:$0xff]  ;;  %v218_v53 = vld [vmem:[%s1392_s4 + $0x20] sm:$0xff]  ;;  %v341_v6 = vld [vmem:[%s1392_s4 + $0x3f8] sm:$0xff] }
  0x3b   :  { %v316_v52 = vld [vmem:[%s1392_s4 + $0x330] sm:$0xff]  ;;  %v250_v54 = vld [vmem:[%s1392_s4 + $0x120] sm:$0xff]  ;;  %393 = vmatpush.msrb.mxu2 %v286_v47  ;;  %413 = vmatpush.msrb.mxu3 %v318_v48  ;;  %v241_v7 = vld [vmem:[%s1392_s4 + $0xd8] sm:$0xff] }
  0x3c   :  { %354 = vmatpush.msrb.mxu0 %v220_v49  ;;  %374 = vmatpush.msrb.mxu1 %v252_v50  ;;  %v282_v55 = vld [vmem:[%s1392_s4 + $0x220] sm:$0xff]  ;;  %v216_v57 = vld [vmem:[%s1392_s4 + $0x10] sm:$0xff]  ;;  %v273_v8 = vld [vmem:[%s1392_s4 + $0x1d8] sm:$0xff] }
  0x3d   :  { %v314_v56 = vld [vmem:[%s1392_s4 + $0x320] sm:$0xff]  ;;  %v248_v58 = vld [vmem:[%s1392_s4 + $0x110] sm:$0xff]  ;;  %394 = vmatpush.msrb.mxu2 %v284_v51  ;;  %414 = vmatpush.msrb.mxu3 %v316_v52  ;;  %v307_v9 = vld [vmem:[%s1392_s4 + $0x2e8] sm:$0xff] }
  0x3e   :  { %355 = vmatpush.msrb.mxu0 %v218_v53  ;;  %375 = vmatpush.msrb.mxu1 %v250_v54  ;;  %v280_v59 = vld [vmem:[%s1392_s4 + $0x210] sm:$0xff]  ;;  %v214_v61 = vld [vmem:[%s1392_s4] sm:$0xff]  ;;  %v339_v10 = vld [vmem:[%s1392_s4 + $0x3e8] sm:$0xff] }
  0x3f   :  { %v312_v60 = vld [vmem:[%s1392_s4 + $0x310] sm:$0xff]  ;;  %v246_v62 = vld [vmem:[%s1392_s4 + $0x100] sm:$0xff]  ;;  %395 = vmatpush.msrb.mxu2 %v282_v55  ;;  %415 = vmatpush.msrb.mxu3 %v314_v56  ;;  %v239_v11 = vld [vmem:[%s1392_s4 + $0xc8] sm:$0xff] }
  0x40   :  { %356 = vmatpush.msrb.mxu0 %v216_v57  ;;  %376 = vmatpush.msrb.mxu1 %v248_v58  ;;  %v278_v1 = vld [vmem:[%s1392_s4 + $0x200] sm:$0xff]  ;;  %v271_v12 = vld [vmem:[%s1392_s4 + $0x1c8] sm:$0xff]  ;;  %v305_v13 = vld [vmem:[%s1392_s4 + $0x2d8] sm:$0xff] }
  0x41   :  { %396 = vmatpush.msrb.mxu2 %v280_v59  ;;  %416 = vmatpush.msrb.mxu3 %v312_v60  ;;  %v310_v2 = vld [vmem:[%s1392_s4 + $0x300] sm:$0xff]  ;;  %v337_v14 = vld [vmem:[%s1392_s4 + $0x3d8] sm:$0xff]  ;;  %v303_v17 = vld [vmem:[%s1392_s4 + $0x2c8] sm:$0xff] }
  0x42   :  { %357 = vmatpush.msrb.mxu0 %v214_v61  ;;  %377 = vmatpush.msrb.mxu1 %v246_v62  ;;  %v237_v15 = vld [vmem:[%s1392_s4 + $0xb8] sm:$0xff]  ;;  %v335_v18 = vld [vmem:[%s1392_s4 + $0x3c8] sm:$0xff] }
  0x43   :  { %397 = vmatpush.msrb.mxu2 %v278_v1  ;;  %417 = vmatpush.msrb.mxu3 %v310_v2  ;;  %v269_v16 = vld [vmem:[%s1392_s4 + $0x1b8] sm:$0xff]  ;;  %v235_v19 = vld [vmem:[%s1392_s4 + $0xa8] sm:$0xff]  ;;  %v178_v1 = vld [vmem:[%s1390_s2] sm:$0xf] }
  0x44   :  { %422 = vmatpush.msra.mxu0 %v245_v63  ;;  %442 = vmatpush.msra.mxu1 %v277_v0  ;;  %v267_v20 = vld [vmem:[%s1392_s4 + $0x1a8] sm:$0xff]  ;;  %v233_v21 = vld [vmem:[%s1392_s4 + $0x98] sm:$0xff]  ;;  %v192_v2 = vld [vmem:[%s1391_s3] sm:$0xf] }
  0x45   :  { %462 = vmatpush.msra.mxu2 %v309_v5  ;;  %482 = vmatpush.msra.mxu3 %v341_v6  ;;  %v265_v22 = vld [vmem:[%s1392_s4 + $0x198] sm:$0xff]  ;;  %v231_v23 = vld [vmem:[%s1392_s4 + $0x88] sm:$0xff]  ;;  %v194_v5 = vperm.slane %v192_v2, 0  ;;  %v195_v6 = vperm.slane %v192_v2, 1 }
  0x46   :  { %423 = vmatpush.msra.mxu0 %v243_v3  ;;  %443 = vmatpush.msra.mxu1 %v275_v4  ;;  %v263_v24 = vld [vmem:[%s1392_s4 + $0x188] sm:$0xff]  ;;  %v301_v25 = vld [vmem:[%s1392_s4 + $0x2b8] sm:$0xff]  ;;  %v180_v3 = vperm.slane %v178_v1, 0  ;;  %v181_v4 = vperm.slane %v178_v1, 1 }
  0x47   :  { %463 = vmatpush.msra.mxu2 %v307_v9  ;;  %483 = vmatpush.msra.mxu3 %v339_v10  ;;  %v333_v26 = vld [vmem:[%s1392_s4 + $0x3b8] sm:$0xff]  ;;  %v299_v29 = vld [vmem:[%s1392_s4 + $0x2a8] sm:$0xff] }
  0x48   :  { %424 = vmatpush.msra.mxu0 %v241_v7  ;;  %444 = vmatpush.msra.mxu1 %v273_v8  ;;  %v229_v27 = vld [vmem:[%s1392_s4 + $0x78] sm:$0xff]  ;;  %v331_v30 = vld [vmem:[%s1392_s4 + $0x3a8] sm:$0xff] }
  0x49   :  { %464 = vmatpush.msra.mxu2 %v305_v13  ;;  %484 = vmatpush.msra.mxu3 %v337_v14  ;;  %v261_v28 = vld [vmem:[%s1392_s4 + $0x178] sm:$0xff]  ;;  %v227_v31 = vld [vmem:[%s1392_s4 + $0x68] sm:$0xff]  ;;  %v182_v13 = vperm.slane %v178_v1, 2  ;;  %v183_v14 = vperm.slane %v178_v1, 3  ;;  %v502_v1 = vld [vmem:[%s1393_s5] sm:$0x3] }
  0x4a   :  { %425 = vmatpush.msra.mxu0 %v239_v11  ;;  %445 = vmatpush.msra.mxu1 %v271_v12  ;;  %v259_v32 = vld [vmem:[%s1392_s4 + $0x168] sm:$0xff]  ;;  %v297_v33 = vld [vmem:[%s1392_s4 + $0x298] sm:$0xff] }
  0x4b   :  { %465 = vmatpush.msra.mxu2 %v303_v17  ;;  %485 = vmatpush.msra.mxu3 %v335_v18  ;;  %v329_v34 = vld [vmem:[%s1392_s4 + $0x398] sm:$0xff]  ;;  %v295_v37 = vld [vmem:[%s1392_s4 + $0x288] sm:$0xff]  ;;  %v196_v17 = vperm.slane %v192_v2, 2  ;;  %v197_v18 = vperm.slane %v192_v2, 3 }
  0x4c   :  { %426 = vmatpush.msra.mxu0 %v237_v15  ;;  %446 = vmatpush.msra.mxu1 %v269_v16  ;;  %v225_v35 = vld [vmem:[%s1392_s4 + $0x58] sm:$0xff]  ;;  %v327_v38 = vld [vmem:[%s1392_s4 + $0x388] sm:$0xff] }
  0x4d   :  { %466 = vmatpush.msra.mxu2 %v301_v25  ;;  %486 = vmatpush.msra.mxu3 %v333_v26  ;;  %v257_v36 = vld [vmem:[%s1392_s4 + $0x158] sm:$0xff]  ;;  %v223_v39 = vld [vmem:[%s1392_s4 + $0x48] sm:$0xff]  ;;  %v536_v26 = vld [vmem:[%s1395_s7 + $0x70] sm:$0xff] }
  0x4e   :  { %427 = vmatpush.msra.mxu0 %v235_v19  ;;  %447 = vmatpush.msra.mxu1 %v267_v20  ;;  %v255_v40 = vld [vmem:[%s1392_s4 + $0x148] sm:$0xff]  ;;  %v293_v41 = vld [vmem:[%s1392_s4 + $0x278] sm:$0xff] }
  0x4f   :  { %467 = vmatpush.msra.mxu2 %v299_v29  ;;  %487 = vmatpush.msra.mxu3 %v331_v30  ;;  %v325_v42 = vld [vmem:[%s1392_s4 + $0x378] sm:$0xff]  ;;  %v291_v45 = vld [vmem:[%s1392_s4 + $0x268] sm:$0xff] }
  0x50   :  { %428 = vmatpush.msra.mxu0 %v233_v21  ;;  %448 = vmatpush.msra.mxu1 %v265_v22  ;;  %v221_v43 = vld [vmem:[%s1392_s4 + $0x38] sm:$0xff]  ;;  %v323_v46 = vld [vmem:[%s1392_s4 + $0x368] sm:$0xff] }
  0x51   :  { %468 = vmatpush.msra.mxu2 %v297_v33  ;;  %488 = vmatpush.msra.mxu3 %v329_v34  ;;  %v253_v44 = vld [vmem:[%s1392_s4 + $0x138] sm:$0xff]  ;;  %v219_v47 = vld [vmem:[%s1392_s4 + $0x28] sm:$0xff]  ;;  %v534_v34 = vld [vmem:[%s1395_s7 + $0x60] sm:$0xff] }
  0x52   :  { %429 = vmatpush.msra.mxu0 %v231_v23  ;;  %449 = vmatpush.msra.mxu1 %v263_v24  ;;  %v251_v48 = vld [vmem:[%s1392_s4 + $0x128] sm:$0xff]  ;;  %v289_v49 = vld [vmem:[%s1392_s4 + $0x258] sm:$0xff] }
  0x53   :  { %469 = vmatpush.msra.mxu2 %v295_v37  ;;  %489 = vmatpush.msra.mxu3 %v327_v38  ;;  %v321_v50 = vld [vmem:[%s1392_s4 + $0x358] sm:$0xff]  ;;  %v287_v53 = vld [vmem:[%s1392_s4 + $0x248] sm:$0xff]  ;;  %v532_v37 = vld [vmem:[%s1395_s7 + $0x50] sm:$0xff] }
  0x54   :  { %430 = vmatpush.msra.mxu0 %v229_v27  ;;  %450 = vmatpush.msra.mxu1 %v261_v28  ;;  %v217_v51 = vld [vmem:[%s1392_s4 + $0x18] sm:$0xff]  ;;  %v319_v54 = vld [vmem:[%s1392_s4 + $0x348] sm:$0xff]  ;;  %v552_v38 = vld [vmem:[%s1395_s7 + $0xf0] sm:$0xff] }
  0x55   :  { %470 = vmatpush.msra.mxu2 %v293_v41  ;;  %490 = vmatpush.msra.mxu3 %v325_v42  ;;  %v249_v52 = vld [vmem:[%s1392_s4 + $0x118] sm:$0xff]  ;;  %v215_v55 = vld [vmem:[%s1392_s4 + $0x8] sm:$0xff]  ;;  %v530_v41 = vld [vmem:[%s1395_s7 + $0x40] sm:$0xff] }
  0x56   :  { %431 = vmatpush.msra.mxu0 %v227_v31  ;;  %451 = vmatpush.msra.mxu1 %v259_v32  ;;  %v247_v56 = vld [vmem:[%s1392_s4 + $0x108] sm:$0xff]  ;;  %v285_v57 = vld [vmem:[%s1392_s4 + $0x238] sm:$0xff]  ;;  %v550_v42 = vld [vmem:[%s1395_s7 + $0xe0] sm:$0xff] }
  0x57   :  { %471 = vmatpush.msra.mxu2 %v291_v45  ;;  %491 = vmatpush.msra.mxu3 %v323_v46  ;;  %v317_v58 = vld [vmem:[%s1392_s4 + $0x338] sm:$0xff]  ;;  %v283_v59 = vld [vmem:[%s1392_s4 + $0x228] sm:$0xff]  ;;  %v528_v45 = vld [vmem:[%s1395_s7 + $0x30] sm:$0xff] }
  0x58   :  { %432 = vmatpush.msra.mxu0 %v225_v35  ;;  %452 = vmatpush.msra.mxu1 %v257_v36  ;;  %v315_v60 = vld [vmem:[%s1392_s4 + $0x328] sm:$0xff]  ;;  %v281_v61 = vld [vmem:[%s1392_s4 + $0x218] sm:$0xff]  ;;  %v548_v46 = vld [vmem:[%s1395_s7 + $0xd0] sm:$0xff] }
  0x59   :  { %472 = vmatpush.msra.mxu2 %v289_v49  ;;  %492 = vmatpush.msra.mxu3 %v321_v50  ;;  %v313_v62 = vld [vmem:[%s1392_s4 + $0x318] sm:$0xff]  ;;  %v279_v63 = vld [vmem:[%s1392_s4 + $0x208] sm:$0xff]  ;;  %v526_v49 = vld [vmem:[%s1395_s7 + $0x20] sm:$0xff] }
  0x5a   :  { %433 = vmatpush.msra.mxu0 %v223_v39  ;;  %453 = vmatpush.msra.mxu1 %v255_v40  ;;  %v311_v0 = vld [vmem:[%s1392_s4 + $0x308] sm:$0xff]  ;;  %v537_v23 = vld [vmem:[%s1395_s7 + $0x78] sm:$0xff]  ;;  %v546_v50 = vld [vmem:[%s1395_s7 + $0xc0] sm:$0xff] }
  0x5b   :  { %473 = vmatpush.msra.mxu2 %v287_v53  ;;  %493 = vmatpush.msra.mxu3 %v319_v54  ;;  %v535_v29 = vld [vmem:[%s1395_s7 + $0x68] sm:$0xff]  ;;  %v533_v35 = vld [vmem:[%s1395_s7 + $0x58] sm:$0xff]  ;;  %v524_v53 = vld [vmem:[%s1395_s7 + $0x10] sm:$0xff] }
  0x5c   :  { %434 = vmatpush.msra.mxu0 %v221_v43  ;;  %454 = vmatpush.msra.mxu1 %v253_v44  ;;  %v553_v36 = vld [vmem:[%s1395_s7 + $0xf8] sm:$0xff]  ;;  %v551_v39 = vld [vmem:[%s1395_s7 + $0xe8] sm:$0xff]  ;;  %v544_v54 = vld [vmem:[%s1395_s7 + $0xb0] sm:$0xff] }
  0x5d   :  { %474 = vmatpush.msra.mxu2 %v285_v57  ;;  %494 = vmatpush.msra.mxu3 %v317_v58  ;;  %v531_v40 = vld [vmem:[%s1395_s7 + $0x48] sm:$0xff]  ;;  %v529_v43 = vld [vmem:[%s1395_s7 + $0x38] sm:$0xff]  ;;  %v522_v57 = vld [vmem:[%s1395_s7] sm:$0xff] }
  0x5e   :  { %435 = vmatpush.msra.mxu0 %v219_v47  ;;  %455 = vmatpush.msra.mxu1 %v251_v48  ;;  %v549_v44 = vld [vmem:[%s1395_s7 + $0xd8] sm:$0xff]  ;;  %v527_v47 = vld [vmem:[%s1395_s7 + $0x28] sm:$0xff]  ;;  %v542_v58 = vld [vmem:[%s1395_s7 + $0xa0] sm:$0xff] }
  0x5f   :  { %475 = vmatpush.msra.mxu2 %v283_v59  ;;  %495 = vmatpush.msra.mxu3 %v315_v60  ;;  %v547_v48 = vld [vmem:[%s1395_s7 + $0xc8] sm:$0xff]  ;;  %v541_v59 = vld [vmem:[%s1395_s7 + $0x98] sm:$0xff]  ;;  %v540_v60 = vld [vmem:[%s1395_s7 + $0x90] sm:$0xff] }
  0x60   :  { %436 = vmatpush.msra.mxu0 %v217_v51  ;;  %456 = vmatpush.msra.mxu1 %v249_v52  ;;  %v525_v51 = vld [vmem:[%s1395_s7 + $0x18] sm:$0xff] }
  0x61   :  { %476 = vmatpush.msra.mxu2 %v281_v61  ;;  %496 = vmatpush.msra.mxu3 %v313_v62  ;;  %v545_v52 = vld [vmem:[%s1395_s7 + $0xb8] sm:$0xff]  ;;  %v539_v61 = vld [vmem:[%s1395_s7 + $0x88] sm:$0xff]  ;;  %v538_v62 = vld [vmem:[%s1395_s7 + $0x80] sm:$0xff] }
  0x62   :  { %437 = vmatpush.msra.mxu0 %v215_v55  ;;  %457 = vmatpush.msra.mxu1 %v247_v56  ;;  %v523_v55 = vld [vmem:[%s1395_s7 + $0x8] sm:$0xff] }
  0x63   :  { %477 = vmatpush.msra.mxu2 %v279_v63  ;;  %497 = vmatpush.msra.mxu3 %v311_v0  ;;  %v543_v56 = vld [vmem:[%s1395_s7 + $0xa8] sm:$0xff]  ;;  %s644_s7 = smov [#allocation2]  }
  0x64   :  { %s605_s10 = sshll.u32 %s644_s7, 4  ;;  %s606_s10 = int_to_ptr.vmem [resolvable:$true] %s605_s10 }
  0x9f   :  { %v115_v7 = vpop.f32.mrf.mxu0  ;;  %v135_v8 = vpop.f32.mrf.mxu1 }
  0xa0   :  { %v188_v9 = vmul.f32 %v180_v3, %v115_v7  ;;  %v189_v10 = vmul.f32 %v181_v4, %v135_v8  ;;  %v504_v7 = vperm.slane %v502_v1, 0 }
  0xa2   :  { %v202_v11 = vadd.f32 %v194_v5, %v188_v9  ;;  %v203_v12 = vadd.f32 %v195_v6, %v189_v10  ;;  %v510_v5 = vld [vmem:[%s1394_s6] sm:$0x3] }
  0xa3   :  { %v512_v9 = vperm.slane %v510_v5, 0 }
  0xa4   :  { %v206_v15 = vmul.f32 0.2, %v202_v11  ;;  %v207_v16 = vmul.f32 0.2, %v203_v12 }
  0xa6   :  { %v155_v19 = vpop.f32.mrf.mxu2  ;;  %v175_v20 = vpop.f32.mrf.mxu3  ;;  %v210_v21 = vmax.f32 %v202_v11, %v206_v15  ;;  %v211_v22 = vmax.f32 %v203_v12, %v207_v16 }
  0xa7   :  { %v190_v24 = vmul.f32 %v182_v13, %v155_v19  ;;  %v191_v25 = vmul.f32 %v183_v14, %v175_v20 }
  0xa8   :  { %358 = vmatmul.f32.vlgmr.msrb.gmra.mxu0 %v210_v21  ;;  %378 = vmatmul.f32.vlgmr.msrb.gmra.mxu1 %v211_v22 }
  0xa9   :  { %v204_v27 = vadd.f32 %v196_v17, %v190_v24  ;;  %v205_v28 = vadd.f32 %v197_v18, %v191_v25  ;;  %558 = vmatpush.msrb.mxu0 %v537_v23  ;;  %578 = vmatpush.msrb.mxu1 %v553_v36  ;;  %v505_v18 = vperm.slane %v502_v1, 1 }
  0xab   :  { %v208_v30 = vmul.f32 0.2, %v204_v27  ;;  %v209_v31 = vmul.f32 0.2, %v205_v28  ;;  %559 = vmatpush.msrb.mxu0 %v536_v26  ;;  %579 = vmatpush.msrb.mxu1 %v552_v38 }
  0xad   :  { %v212_v32 = vmax.f32 %v204_v27, %v208_v30  ;;  %v213_v33 = vmax.f32 %v205_v28, %v209_v31  ;;  %560 = vmatpush.msrb.mxu0 %v535_v29  ;;  %580 = vmatpush.msrb.mxu1 %v551_v39  ;;  %v617_v27 = vld [vmem:[%s1396_s8] ss:$0 sm:$0xff] }
  0xaf   :  { %398 = vmatmul.f32.vlgmr.msrb.gmra.mxu2 %v212_v32  ;;  %418 = vmatmul.f32.vlgmr.msrb.gmra.mxu3 %v213_v33 }
  0xb0   :  { %438 = vmatmul.f32.vlgmr.msra.gmra.mxu0 %v210_v21  ;;  %458 = vmatmul.f32.vlgmr.msra.gmra.mxu1 %v211_v22  ;;  %v513_v22 = vperm.slane %v510_v5, 1 }
  0xb1   :  { %561 = vmatpush.msrb.mxu0 %v534_v34  ;;  %581 = vmatpush.msrb.mxu1 %v550_v42 }
  0xb3   :  { %562 = vmatpush.msrb.mxu0 %v533_v35  ;;  %582 = vmatpush.msrb.mxu1 %v549_v44 }
  0xb5   :  { %563 = vmatpush.msrb.mxu0 %v532_v37  ;;  %583 = vmatpush.msrb.mxu1 %v548_v46 }
  0xb7   :  { %478 = vmatmul.f32.vlgmr.msra.gmra.mxu2 %v212_v32  ;;  %498 = vmatmul.f32.vlgmr.msra.gmra.mxu3 %v213_v33 }
  0xb8   :  { %564 = vmatpush.msrb.mxu0 %v531_v40  ;;  %584 = vmatpush.msrb.mxu1 %v547_v48 }
  0xba   :  { %565 = vmatpush.msrb.mxu0 %v530_v41  ;;  %585 = vmatpush.msrb.mxu1 %v546_v50 }
  0xbc   :  { %566 = vmatpush.msrb.mxu0 %v529_v43  ;;  %586 = vmatpush.msrb.mxu1 %v545_v52 }
  0xbe   :  { %567 = vmatpush.msrb.mxu0 %v528_v45  ;;  %587 = vmatpush.msrb.mxu1 %v544_v54 }
  0xc0   :  { %568 = vmatpush.msrb.mxu0 %v527_v47  ;;  %588 = vmatpush.msrb.mxu1 %v543_v56 }
  0xc2   :  { %569 = vmatpush.msrb.mxu0 %v526_v49  ;;  %589 = vmatpush.msrb.mxu1 %v542_v58 }
  0xc4   :  { %570 = vmatpush.msrb.mxu0 %v525_v51  ;;  %590 = vmatpush.msrb.mxu1 %v541_v59 }
  0xc6   :  { %571 = vmatpush.msrb.mxu0 %v524_v53  ;;  %591 = vmatpush.msrb.mxu1 %v540_v60 }
  0xc8   :  { %572 = vmatpush.msrb.mxu0 %v523_v55  ;;  %592 = vmatpush.msrb.mxu1 %v539_v61 }
  0xca   :  { %573 = vmatpush.msrb.mxu0 %v522_v57  ;;  %593 = vmatpush.msrb.mxu1 %v538_v62 }
 0x125   :  { %v359_v63 = vpop.f32.mrf.mxu0  ;;  %v379_v0 = vpop.f32.mrf.mxu1 }
 0x126   :  { %v380_v2 = vadd.f32 %v379_v0, %v359_v63 }
 0x12d   :  { %v439_v10 = vpop.f32.mrf.mxu0  ;;  %v459_v11 = vpop.f32.mrf.mxu1 }
 0x12e   :  { %v460_v13 = vadd.f32 %v459_v11, %v439_v10 }
 0x132   :  { %v399_v3 = vpop.f32.mrf.mxu2  ;;  %v419_v4 = vpop.f32.mrf.mxu3 }
 0x133   :  { %v400_v6 = vadd.f32 %v399_v3, %v380_v2 }
 0x135   :  { %v420_v8 = vadd.f32 %v419_v4, %v400_v6 }
 0x137   :  { %v508_v12 = vmul.f32 %v504_v7, %v420_v8 }
 0x139   :  { %v516_v14 = vadd.f32 %v512_v9, %v508_v12 }
 0x13a   :  { %v479_v15 = vpop.f32.mrf.mxu2  ;;  %v499_v19 = vpop.f32.mrf.mxu3 }
 0x13b   :  { %v518_v16 = vmul.f32 0.2, %v516_v14  ;;  %v480_v17 = vadd.f32 %v479_v15, %v460_v13 }
 0x13d   :  { %v520_v20 = vmax.f32 %v516_v14, %v518_v16  ;;  %v500_v21 = vadd.f32 %v499_v19, %v480_v17 }
 0x13f   :  { %v509_v23 = vmul.f32 %v505_v18, %v500_v21  ;;  %574 = vmatmul.f32.vlgmr.msrb.gmra.mxu0 %v520_v20 }
 0x141   :  { %v517_v24 = vadd.f32 %v513_v22, %v509_v23 }
 0x143   :  { %v519_v25 = vmul.f32 0.2, %v517_v24 }
 0x145   :  { %v521_v26 = vmax.f32 %v517_v24, %v519_v25 }
 0x147   :  { %594 = vmatmul.f32.vlgmr.msrb.gmra.mxu1 %v521_v26 }
 0x1bc   :  { %v575_v28 = vpop.f32.mrf.mxu0 }
 0x1bd   :  { %v576_v29 = vadd.f32 %v617_v27, %v575_v28 }
 0x1c4   :  { %v595_v30 = vpop.f32.mrf.mxu1 }
 0x1c5   :  { %v596_v31 = vadd.f32 %v595_v30, %v576_v29 }
 0x1c7   :  { %599 = vst.msk [vmem:[#allocation2] sm:$0x3] %vm598_vm0, %v596_v31 }
 0x1c8   :  { %610 = dma.vmem_to_hbm [thread:$0]  %s606_s10, 32, %s608_s13, [#allocation3]  }
 0x1c9   :  { %642 = dma.done.wait [#allocation3], 32  }
 0x1ca   :  { %643 = vsyncadd [#allocation3], 4294967264 }
 0x1cb   :  { %615 = vsyncpa [#allocation3], 1 }

</bundles_post_ra>
